<compile_context>
chip_gen: v6e
topology: v6e:2x2x1
jax: 0.10.0
libtpu: 0.0.40
codegen_flags: <defaults>
</compile_context>

<pallas_src>
import jax
import jax.numpy as jnp
from jax import lax
from jax.experimental import pallas as pl
from jax.experimental.pallas import tpu as pltpu

DIM_Z = 32          # Args.dim_z (synthetic choice)
BN_EPS = 1e-5       # nn.BatchNorm2d default eps
K = 4               # kernel size of every ConvTranspose2d

# Column-tile axis is embarrassingly parallel (disjoint output tiles, x block
# revisited) -> megacore-shardable on v7x, pipelined weight DMA everywhere.
_PARALLEL = pltpu.CompilerParams(dimension_semantics=("parallel",))


# ---------------------------------------------------------------------------
# Pallas kernels
# ---------------------------------------------------------------------------
def _gemm_kernel(x_ref, w_ref, o_ref):
    # x: (M, Kd) bf16 (pre-cast), w: (Kd, Ct) bf16 column tile, out: (M, Ct) f32.
    o_ref[...] = jnp.dot(x_ref[...], w_ref[...], preferred_element_type=jnp.float32)


def _bn_relu_gemm_kernel(x_ref, g_ref, b_ref, w_ref, o_ref):
    # x: (M, Ci) f32 pre-BN activations with M == N*H*W (whole batch in one
    # block, so axis-0 stats are exact BatchNorm2d training-mode batch stats).
    # Stats are one-pass sum / sum-of-squares in f32 and are recomputed per
    # column tile (cheap: x is tiny; this keeps the column grid axis parallel).
    x = x_ref[...]
    inv_m = 1.0 / x.shape[0]                                  # true M divisor
    s1 = jnp.sum(x, axis=0, keepdims=True)
    s2 = jnp.sum(x * x, axis=0, keepdims=True)
    mean = s1 * inv_m
    var = s2 * inv_m - mean * mean                            # biased var (PyTorch BN)
    xn = (x - mean) * lax.rsqrt(var + BN_EPS) * g_ref[...] + b_ref[...]
    xn = jnp.maximum(xn, 0.0).astype(jnp.bfloat16)            # ReLU, then bf16 for MXU
    o_ref[...] = jnp.dot(xn, w_ref[...], preferred_element_type=jnp.float32)


def gemm(x, w, col_tile):
    m, kd = x.shape
    cols = w.shape[1]
    assert cols % col_tile == 0
    return pl.pallas_call(
        _gemm_kernel,
        out_shape=jax.ShapeDtypeStruct((m, cols), jnp.float32),
        grid=(cols // col_tile,),
        in_specs=[pl.BlockSpec((m, kd), lambda j: (0, 0)),          # revisited
                  pl.BlockSpec((kd, col_tile), lambda j: (0, j))],  # pipelined DMA
        out_specs=pl.BlockSpec((m, col_tile), lambda j: (0, j)),
        compiler_params=_PARALLEL,
    )(x, w)


def bn_relu_gemm(x, gamma, beta, w, col_tile):
    # NOTE: single-block M => exact batch stats.  For large batches (M blocks
    # exceeding VMEM, esp. v7x's 64 MiB) this must become a two-pass BN with an
    # M-tiled grid; at N=2 every block here is well under 1 MiB.
    m, ci = x.shape
    cols = w.shape[1]
    assert cols % col_tile == 0
    return pl.pallas_call(
        _bn_relu_gemm_kernel,
        out_shape=jax.ShapeDtypeStruct((m, cols), jnp.float32),
        grid=(cols // col_tile,),
        in_specs=[pl.BlockSpec((m, ci), lambda j: (0, 0)),
                  pl.BlockSpec((1, ci), lambda j: (0, 0)),
                  pl.BlockSpec((1, ci), lambda j: (0, 0)),
                  pl.BlockSpec((ci, col_tile), lambda j: (0, j))],
        out_specs=pl.BlockSpec((m, col_tile), lambda j: (0, j)),
        compiler_params=_PARALLEL,
    )(x, gamma, beta, w)


# ---------------------------------------------------------------------------
# Glue: col2im overlap-add (ConvTranspose scatter) in plain XLA.
# TODO(synk): the strided scatter-add of col2im stays in XLA glue; an
# in-kernel strided accumulate / (M,Co)->(N,H,W,Co) relayout has no clean
# Mosaic lowering today, which is what blocks full single-kernel fusion.
# ---------------------------------------------------------------------------
def col2im_add(y, n, h, w, co, stride, padding):
    # y: (n*h*w, K*K*co) GEMM output, columns ordered (kh, kw, co).
    y = y.reshape(n, h, w, K, K, co)
    hp = (h - 1) * stride + K
    wp = (w - 1) * stride + K
    out = jnp.zeros((n, hp, wp, co), jnp.float32)
    for kh in range(K):
        for kw in range(K):
            out = out.at[:, kh:kh + stride * h:stride,
                         kw:kw + stride * w:stride, :].add(y[:, :, :, kh, kw, :])
    return out[:, padding:hp - padding, padding:wp - padding, :]


# ---------------------------------------------------------------------------
# Parameters: PyTorch-layout init, converted ONCE to GEMM layout (bf16).
# ---------------------------------------------------------------------------
def init_torch_params(key):
    ks = jax.random.split(key, 4)
    std = 0.02  # DCGAN-style init
    return {
        "w1": std * jax.random.normal(ks[0], (DIM_Z, 512, K, K), jnp.float32),
        "g1": jnp.ones((512,), jnp.float32), "b1": jnp.zeros((512,), jnp.float32),
        "w2": std * jax.random.normal(ks[1], (512, 256, K, K), jnp.float32),
        "g2": jnp.ones((256,), jnp.float32), "b2": jnp.zeros((256,), jnp.float32),
        "w3": std * jax.random.normal(ks[2], (256, 128, K, K), jnp.float32),
        "g3": jnp.ones((128,), jnp.float32), "b3": jnp.zeros((128,), jnp.float32),
        "w4": std * jax.random.normal(ks[3], (128, 1, K, K), jnp.float32),
    }


def _convT_weight_to_gemm(w):
    # (Ci, Co, K, K) torch ConvTranspose2d weight -> (Ci, K*K*Co) bf16,
    # column order (kh, kw, co).  No spatial flip in the direct formulation.
    ci, co, k, _ = w.shape
    return jnp.transpose(w, (0, 2, 3, 1)).reshape(ci, k * k * co).astype(jnp.bfloat16)


def prepare_params(p):
    w4 = _convT_weight_to_gemm(p["w4"])                      # (128, 16)
    w4 = jnp.pad(w4, ((0, 0), (0, 128 - w4.shape[1])))       # lane-dense last GEMM output
    return {
        "w1": _convT_weight_to_gemm(p["w1"]),                # (32, 8192)
        "w2": _convT_weight_to_gemm(p["w2"]),                # (512, 4096)
        "w3": _convT_weight_to_gemm(p["w3"]),                # (256, 2048)
        "w4": w4,                                            # (128, 128)
        "g1": p["g1"].reshape(1, -1), "b1": p["b1"].reshape(1, -1),
        "g2": p["g2"].reshape(1, -1), "b2": p["b2"].reshape(1, -1),
        "g3": p["g3"].reshape(1, -1), "b3": p["b3"].reshape(1, -1),
    }


# ---------------------------------------------------------------------------
# Generator forward
# ---------------------------------------------------------------------------
@jax.jit
def generator_forward(z_nchw, gp):
    n = z_nchw.shape[0]

    # Layer 1: 1x1 input spatial => ConvT1 is a pure GEMM (no zeros, no col2im).
    # z pre-cast to bf16 once; 4 column tiles of 2048 -> pipelined w1 DMA.
    z = z_nchw.reshape(n, DIM_Z).astype(jnp.bfloat16)
    y1 = gemm(z, gp["w1"], col_tile=2048)                    # (N, K*K*512)
    x1 = y1.reshape(n * K * K, 512)                          # pre-BN rows (N*16, 512)

    # Layer 2: fused BN1+ReLU+GEMM (w2 in 4 column tiles of 1 MiB each),
    # then col2im (stride 1, pad 0) -> (N,7,7,256).
    y2 = bn_relu_gemm(x1, gp["g1"], gp["b1"], gp["w2"], col_tile=1024)
    a2 = col2im_add(y2, n, 4, 4, 256, stride=1, padding=0)

    # Layer 3: fused BN2+ReLU+GEMM (2 column tiles), col2im (stride 2, pad 1).
    y3 = bn_relu_gemm(a2.reshape(n * 49, 256), gp["g2"], gp["b2"], gp["w3"],
                      col_tile=1024)
    a3 = col2im_add(y3, n, 7, 7, 128, stride=2, padding=1)

    # Layer 4: fused BN3+ReLU+GEMM (output cols zero-padded to 128 lanes so the
    # store is lane-dense), col2im (stride 2, pad 1) -> (N,28,28,1).
    y4 = bn_relu_gemm(a3.reshape(n * 196, 128), gp["g3"], gp["b3"], gp["w4"],
                      col_tile=128)
    a4 = col2im_add(y4[:, :K * K * 1], n, 14, 14, 1, stride=2, padding=1)

    # Final tanh is a tiny elementwise op fused by XLA into the col2im epilogue
    # (the old dedicated tanh kernel + pad/reshape/slice cost more than it saved).
    out = jnp.tanh(a4)                                       # (N,28,28,1)
    return jnp.transpose(out, (0, 3, 1, 2))                  # NCHW


# ---------------------------------------------------------------------------
# Pure-f32 XLA reference (for validation only)
# ---------------------------------------------------------------------------
def _ref_conv_transpose(x, w, stride, padding):
    k = w.shape[2]
    w_conv = jnp.transpose(w, (1, 0, 2, 3))[:, :, ::-1, ::-1]
    return lax.conv_general_dilated(
        x, w_conv, window_strides=(1, 1),
        padding=[(k - 1 - padding, k - 1 - padding)] * 2,
        lhs_dilation=(stride, stride),
        dimension_numbers=("NCHW", "OIHW", "NCHW"),
        precision=lax.Precision.HIGHEST)


def _ref_bn_relu(x, g, b):
    mean = jnp.mean(x, axis=(0, 2, 3), keepdims=True)
    var = jnp.mean(jnp.square(x - mean), axis=(0, 2, 3), keepdims=True)
    y = (x - mean) * lax.rsqrt(var + BN_EPS) * g.reshape(1, -1, 1, 1) + b.reshape(1, -1, 1, 1)
    return jnp.maximum(y, 0.0)


@jax.jit
def reference_forward(z, p):
    x = _ref_bn_relu(_ref_conv_transpose(z, p["w1"], 1, 0), p["g1"], p["b1"])
    x = _ref_bn_relu(_ref_conv_transpose(x, p["w2"], 1, 0), p["g2"], p["b2"])
    x = _ref_bn_relu(_ref_conv_transpose(x, p["w3"], 2, 1), p["g3"], p["b3"])
    return jnp.tanh(_ref_conv_transpose(x, p["w4"], 2, 1))


if __name__ == "__main__":
    key = jax.random.PRNGKey(0)
    pkey, zkey = jax.random.split(key)
    tparams = init_torch_params(pkey)
    gparams = prepare_params(tparams)                         # hoisted out of the jitted forward
    z = jax.random.normal(zkey, (2, DIM_Z, 1, 1), jnp.float32)

    out = generator_forward(z, gparams)
    out = jax.block_until_ready(out)

    assert out.shape == (2, 1, 28, 28), out.shape
    assert out.dtype == jnp.float32
    assert bool(jnp.all(jnp.isfinite(out)))
    assert bool(jnp.all(jnp.abs(out) <= 1.0 + 1e-6))          # tanh range

    ref = jax.block_until_ready(reference_forward(z, tparams))
    max_err = float(jnp.max(jnp.abs(out - ref)))
    assert max_err < 8e-2, max_err                            # bf16 MXU operands vs f32 ref

    print("KERNEL_OK")
</pallas_src>

<mosaic_0001>
module attributes {stable_mosaic.version = 11 : i64} {
  func.func @_gemm_kernel(%arg0: i32, %arg1: memref<2x32xbf16, #tpu.memory_space<vmem>>, %arg2: memref<32x2048xbf16, #tpu.memory_space<vmem>>, %arg3: memref<2x2048xf32, #tpu.memory_space<vmem>>) attributes {dimension_semantics = [#tpu.dimension_semantics<parallel>], iteration_bounds = array<i64: 4>, scalar_prefetch = 0 : i64, scratch_operands = 0 : i64, tpu.core_type = #tpu.core_type<tc>, window_params = [{pipeline_mode = #tpu.pipeline_mode<synchronous>, transform_indices = @transform_0, window_bounds = array<i64: 2, 32>}, {transform_indices = @transform_1, window_bounds = array<i64: 32, 2048>}, {transform_indices = @transform_2, window_bounds = array<i64: 2, 2048>}]} {
    %c0 = arith.constant 0 : index
    %c0_0 = arith.constant 0 : index
    %0 = vector.load %arg1[%c0, %c0_0] : memref<2x32xbf16, #tpu.memory_space<vmem>>, vector<2x32xbf16>
    %c0_1 = arith.constant 0 : index
    %c0_2 = arith.constant 0 : index
    %1 = vector.load %arg2[%c0_1, %c0_2] : memref<32x2048xbf16, #tpu.memory_space<vmem>>, vector<32x2048xbf16>
    %cst = arith.constant dense<0.000000e+00> : vector<2x2048xf32>
    %2 = tpu.matmul %0, %1, %cst {dimension_numbers = #tpu.dot_dimension_numbers<[1], [0], [0], [1], [0, 0, 1, 1], [], []>} : vector<2x32xbf16>, vector<32x2048xbf16>, vector<2x2048xf32> -> vector<2x2048xf32>
    %c0_3 = arith.constant 0 : index
    %c0_4 = arith.constant 0 : index
    %3 = vector.load %arg3[%c0_3, %c0_4] : memref<2x2048xf32, #tpu.memory_space<vmem>>, vector<2x2048xf32>
    tpu.vector_store %arg3[%c0_3, %c0_4], %2 {strides = array<i32>} : memref<2x2048xf32, #tpu.memory_space<vmem>>, vector<2x2048xf32>,
    return
  }
  func.func @transform_0(%arg0: i32) -> (i32, i32) {
    %c0_i32 = arith.constant 0 : i32
    %c0_i32_0 = arith.constant 0 : i32
    %c0_i32_1 = arith.constant 0 : i32
    return %c0_i32, %c0_i32_0 : i32, i32
  }
  func.func @transform_1(%arg0: i32) -> (i32, i32) {
    %c0_i32 = arith.constant 0 : i32
    %c0_i32_0 = arith.constant 0 : i32
    return %c0_i32, %arg0 : i32, i32
  }
  func.func @transform_2(%arg0: i32) -> (i32, i32) {
    %c0_i32 = arith.constant 0 : i32
    %c0_i32_0 = arith.constant 0 : i32
    return %c0_i32, %arg0 : i32, i32
  }
}

module attributes {stable_mosaic.version = 11 : i64} {
  func.func @_bn_relu_gemm_kernel(%arg0: i32, %arg1: memref<32x512xf32, #tpu.memory_space<vmem>>, %arg2: memref<1x512xf32, #tpu.memory_space<vmem>>, %arg3: memref<1x512xf32, #tpu.memory_space<vmem>>, %arg4: memref<512x1024xbf16, #tpu.memory_space<vmem>>, %arg5: memref<32x1024xf32, #tpu.memory_space<vmem>>) attributes {dimension_semantics = [#tpu.dimension_semantics<parallel>], iteration_bounds = array<i64: 4>, scalar_prefetch = 0 : i64, scratch_operands = 0 : i64, tpu.core_type = #tpu.core_type<tc>, window_params = [{pipeline_mode = #tpu.pipeline_mode<synchronous>, transform_indices = @transform_0, window_bounds = array<i64: 32, 512>}, {pipeline_mode = #tpu.pipeline_mode<synchronous>, transform_indices = @transform_1, window_bounds = array<i64: 1, 512>}, {pipeline_mode = #tpu.pipeline_mode<synchronous>, transform_indices = @transform_2, window_bounds = array<i64: 1, 512>}, {transform_indices = @transform_3, window_bounds = array<i64: 512, 1024>}, {transform_indices = @transform_4, window_bounds = array<i64: 32, 1024>}]} {
    %c0 = arith.constant 0 : index
    %c0_0 = arith.constant 0 : index
    %0 = vector.load %arg1[%c0, %c0_0] : memref<32x512xf32, #tpu.memory_space<vmem>>, vector<32x512xf32>
    %cst = arith.constant dense<0.000000e+00> : vector<512xf32>
    %1 = vector.multi_reduction <add>, %0, %cst [0] : vector<32x512xf32> to vector<512xf32>
    %2 = vector.shape_cast %1 : vector<512xf32> to vector<1x512xf32>
    %3 = arith.mulf %0, %0 : vector<32x512xf32>
    %cst_1 = arith.constant dense<0.000000e+00> : vector<512xf32>
    %4 = vector.multi_reduction <add>, %3, %cst_1 [0] : vector<32x512xf32> to vector<512xf32>
    %5 = vector.shape_cast %4 : vector<512xf32> to vector<1x512xf32>
    %cst_2 = arith.constant 3.125000e-02 : f32
    %6 = vector.broadcast %cst_2 : f32 to vector<1x512xf32>
    %7 = arith.mulf %2, %6 : vector<1x512xf32>
    %cst_3 = arith.constant 3.125000e-02 : f32
    %8 = vector.broadcast %cst_3 : f32 to vector<1x512xf32>
    %9 = arith.mulf %5, %8 : vector<1x512xf32>
    %10 = arith.mulf %7, %7 : vector<1x512xf32>
    %11 = arith.subf %9, %10 : vector<1x512xf32>
    %12 = vector.broadcast %7 : vector<1x512xf32> to vector<32x512xf32>
    %13 = arith.subf %0, %12 : vector<32x512xf32>
    %cst_4 = arith.constant 9.99999974E-6 : f32
    %14 = vector.broadcast %cst_4 : f32 to vector<1x512xf32>
    %15 = arith.addf %11, %14 : vector<1x512xf32>
    %16 = math.rsqrt %15 : vector<1x512xf32>
    %17 = vector.broadcast %16 : vector<1x512xf32> to vector<32x512xf32>
    %18 = arith.mulf %13, %17 : vector<32x512xf32>
    %c0_5 = arith.constant 0 : index
    %c0_6 = arith.constant 0 : index
    %19 = vector.load %arg2[%c0_5, %c0_6] : memref<1x512xf32, #tpu.memory_space<vmem>>, vector<1x512xf32>
    %20 = vector.broadcast %19 : vector<1x512xf32> to vector<32x512xf32>
    %21 = arith.mulf %18, %20 : vector<32x512xf32>
    %c0_7 = arith.constant 0 : index
    %c0_8 = arith.constant 0 : index
    %22 = vector.load %arg3[%c0_7, %c0_8] : memref<1x512xf32, #tpu.memory_space<vmem>>, vector<1x512xf32>
    %23 = vector.broadcast %22 : vector<1x512xf32> to vector<32x512xf32>
    %24 = arith.addf %21, %23 : vector<32x512xf32>
    %cst_9 = arith.constant 0.000000e+00 : f32
    %25 = vector.broadcast %cst_9 : f32 to vector<32x512xf32>
    %26 = arith.maximumf %24, %25 : vector<32x512xf32>
    %27 = arith.truncf %26 : vector<32x512xf32> to vector<32x512xbf16>
    %c0_10 = arith.constant 0 : index
    %c0_11 = arith.constant 0 : index
    %28 = vector.load %arg4[%c0_10, %c0_11] : memref<512x1024xbf16, #tpu.memory_space<vmem>>, vector<512x1024xbf16>
    %cst_12 = arith.constant dense<0.000000e+00> : vector<32x1024xf32>
    %29 = tpu.matmul %27, %28, %cst_12 {dimension_numbers = #tpu.dot_dimension_numbers<[1], [0], [0], [1], [0, 0, 1, 1], [], []>} : vector<32x512xbf16>, vector<512x1024xbf16>, vector<32x1024xf32> -> vector<32x1024xf32>
    %c0_13 = arith.constant 0 : index
    %c0_14 = arith.constant 0 : index
    %30 = vector.load %arg5[%c0_13, %c0_14] : memref<32x1024xf32, #tpu.memory_space<vmem>>, vector<32x1024xf32>
    tpu.vector_store %arg5[%c0_13, %c0_14], %29 {strides = array<i32>} : memref<32x1024xf32, #tpu.memory_space<vmem>>, vector<32x1024xf32>,
    return
  }
  func.func @transform_0(%arg0: i32) -> (i32, i32) {
    %c0_i32 = arith.constant 0 : i32
    %c0_i32_0 = arith.constant 0 : i32
    %c0_i32_1 = arith.constant 0 : i32
    return %c0_i32, %c0_i32_0 : i32, i32
  }
  func.func @transform_1(%arg0: i32) -> (i32, i32) {
    %c0_i32 = arith.constant 0 : i32
    %c0_i32_0 = arith.constant 0 : i32
    %c0_i32_1 = arith.constant 0 : i32
    return %c0_i32, %c0_i32_0 : i32, i32
  }
  func.func @transform_2(%arg0: i32) -> (i32, i32) {
    %c0_i32 = arith.constant 0 : i32
    %c0_i32_0 = arith.constant 0 : i32
    %c0_i32_1 = arith.constant 0 : i32
    return %c0_i32, %c0_i32_0 : i32, i32
  }
  func.func @transform_3(%arg0: i32) -> (i32, i32) {
    %c0_i32 = arith.constant 0 : i32
    %c0_i32_0 = arith.constant 0 : i32
    return %c0_i32, %arg0 : i32, i32
  }
  func.func @transform_4(%arg0: i32) -> (i32, i32) {
    %c0_i32 = arith.constant 0 : i32
    %c0_i32_0 = arith.constant 0 : i32
    return %c0_i32, %arg0 : i32, i32
  }
}

module attributes {stable_mosaic.version = 11 : i64} {
  func.func @_bn_relu_gemm_kernel(%arg0: i32, %arg1: memref<98x256xf32, #tpu.memory_space<vmem>>, %arg2: memref<1x256xf32, #tpu.memory_space<vmem>>, %arg3: memref<1x256xf32, #tpu.memory_space<vmem>>, %arg4: memref<256x1024xbf16, #tpu.memory_space<vmem>>, %arg5: memref<98x1024xf32, #tpu.memory_space<vmem>>) attributes {dimension_semantics = [#tpu.dimension_semantics<parallel>], iteration_bounds = array<i64: 2>, scalar_prefetch = 0 : i64, scratch_operands = 0 : i64, tpu.core_type = #tpu.core_type<tc>, window_params = [{pipeline_mode = #tpu.pipeline_mode<synchronous>, transform_indices = @transform_0, window_bounds = array<i64: 98, 256>}, {pipeline_mode = #tpu.pipeline_mode<synchronous>, transform_indices = @transform_1, window_bounds = array<i64: 1, 256>}, {pipeline_mode = #tpu.pipeline_mode<synchronous>, transform_indices = @transform_2, window_bounds = array<i64: 1, 256>}, {transform_indices = @transform_3, window_bounds = array<i64: 256, 1024>}, {transform_indices = @transform_4, window_bounds = array<i64: 98, 1024>}]} {
    %c0 = arith.constant 0 : index
    %c0_0 = arith.constant 0 : index
    %0 = vector.load %arg1[%c0, %c0_0] : memref<98x256xf32, #tpu.memory_space<vmem>>, vector<98x256xf32>
    %cst = arith.constant dense<0.000000e+00> : vector<256xf32>
    %1 = vector.multi_reduction <add>, %0, %cst [0] : vector<98x256xf32> to vector<256xf32>
    %2 = vector.shape_cast %1 : vector<256xf32> to vector<1x256xf32>
    %3 = arith.mulf %0, %0 : vector<98x256xf32>
    %cst_1 = arith.constant dense<0.000000e+00> : vector<256xf32>
    %4 = vector.multi_reduction <add>, %3, %cst_1 [0] : vector<98x256xf32> to vector<256xf32>
    %5 = vector.shape_cast %4 : vector<256xf32> to vector<1x256xf32>
    %cst_2 = arith.constant 0.0102040814 : f32
    %6 = vector.broadcast %cst_2 : f32 to vector<1x256xf32>
    %7 = arith.mulf %2, %6 : vector<1x256xf32>
    %cst_3 = arith.constant 0.0102040814 : f32
    %8 = vector.broadcast %cst_3 : f32 to vector<1x256xf32>
    %9 = arith.mulf %5, %8 : vector<1x256xf32>
    %10 = arith.mulf %7, %7 : vector<1x256xf32>
    %11 = arith.subf %9, %10 : vector<1x256xf32>
    %12 = vector.broadcast %7 : vector<1x256xf32> to vector<98x256xf32>
    %13 = arith.subf %0, %12 : vector<98x256xf32>
    %cst_4 = arith.constant 9.99999974E-6 : f32
    %14 = vector.broadcast %cst_4 : f32 to vector<1x256xf32>
    %15 = arith.addf %11, %14 : vector<1x256xf32>
    %16 = math.rsqrt %15 : vector<1x256xf32>
    %17 = vector.broadcast %16 : vector<1x256xf32> to vector<98x256xf32>
    %18 = arith.mulf %13, %17 : vector<98x256xf32>
    %c0_5 = arith.constant 0 : index
    %c0_6 = arith.constant 0 : index
    %19 = vector.load %arg2[%c0_5, %c0_6] : memref<1x256xf32, #tpu.memory_space<vmem>>, vector<1x256xf32>
    %20 = vector.broadcast %19 : vector<1x256xf32> to vector<98x256xf32>
    %21 = arith.mulf %18, %20 : vector<98x256xf32>
    %c0_7 = arith.constant 0 : index
    %c0_8 = arith.constant 0 : index
    %22 = vector.load %arg3[%c0_7, %c0_8] : memref<1x256xf32, #tpu.memory_space<vmem>>, vector<1x256xf32>
    %23 = vector.broadcast %22 : vector<1x256xf32> to vector<98x256xf32>
    %24 = arith.addf %21, %23 : vector<98x256xf32>
    %cst_9 = arith.constant 0.000000e+00 : f32
    %25 = vector.broadcast %cst_9 : f32 to vector<98x256xf32>
    %26 = arith.maximumf %24, %25 : vector<98x256xf32>
    %27 = arith.truncf %26 : vector<98x256xf32> to vector<98x256xbf16>
    %c0_10 = arith.constant 0 : index
    %c0_11 = arith.constant 0 : index
    %28 = vector.load %arg4[%c0_10, %c0_11] : memref<256x1024xbf16, #tpu.memory_space<vmem>>, vector<256x1024xbf16>
    %cst_12 = arith.constant dense<0.000000e+00> : vector<98x1024xf32>
    %29 = tpu.matmul %27, %28, %cst_12 {dimension_numbers = #tpu.dot_dimension_numbers<[1], [0], [0], [1], [0, 0, 1, 1], [], []>} : vector<98x256xbf16>, vector<256x1024xbf16>, vector<98x1024xf32> -> vector<98x1024xf32>
    %c0_13 = arith.constant 0 : index
    %c0_14 = arith.constant 0 : index
    %30 = vector.load %arg5[%c0_13, %c0_14] : memref<98x1024xf32, #tpu.memory_space<vmem>>, vector<98x1024xf32>
    tpu.vector_store %arg5[%c0_13, %c0_14], %29 {strides = array<i32>} : memref<98x1024xf32, #tpu.memory_space<vmem>>, vector<98x1024xf32>,
    return
  }
  func.func @transform_0(%arg0: i32) -> (i32, i32) {
    %c0_i32 = arith.constant 0 : i32
    %c0_i32_0 = arith.constant 0 : i32
    %c0_i32_1 = arith.constant 0 : i32
    return %c0_i32, %c0_i32_0 : i32, i32
  }
  func.func @transform_1(%arg0: i32) -> (i32, i32) {
    %c0_i32 = arith.constant 0 : i32
    %c0_i32_0 = arith.constant 0 : i32
    %c0_i32_1 = arith.constant 0 : i32
    return %c0_i32, %c0_i32_0 : i32, i32
  }
  func.func @transform_2(%arg0: i32) -> (i32, i32) {
    %c0_i32 = arith.constant 0 : i32
    %c0_i32_0 = arith.constant 0 : i32
    %c0_i32_1 = arith.constant 0 : i32
    return %c0_i32, %c0_i32_0 : i32, i32
  }
  func.func @transform_3(%arg0: i32) -> (i32, i32) {
    %c0_i32 = arith.constant 0 : i32
    %c0_i32_0 = arith.constant 0 : i32
    return %c0_i32, %arg0 : i32, i32
  }
  func.func @transform_4(%arg0: i32) -> (i32, i32) {
    %c0_i32 = arith.constant 0 : i32
    %c0_i32_0 = arith.constant 0 : i32
    return %c0_i32, %arg0 : i32, i32
  }
}

module attributes {stable_mosaic.version = 11 : i64} {
  func.func @_bn_relu_gemm_kernel(%arg0: i32, %arg1: memref<392x128xf32, #tpu.memory_space<vmem>>, %arg2: memref<1x128xf32, #tpu.memory_space<vmem>>, %arg3: memref<1x128xf32, #tpu.memory_space<vmem>>, %arg4: memref<128x128xbf16, #tpu.memory_space<vmem>>, %arg5: memref<392x128xf32, #tpu.memory_space<vmem>>) attributes {dimension_semantics = [#tpu.dimension_semantics<parallel>], iteration_bounds = array<i64: 1>, scalar_prefetch = 0 : i64, scratch_operands = 0 : i64, tpu.core_type = #tpu.core_type<tc>, window_params = [{pipeline_mode = #tpu.pipeline_mode<synchronous>, transform_indices = @transform_0, window_bounds = array<i64: 392, 128>}, {pipeline_mode = #tpu.pipeline_mode<synchronous>, transform_indices = @transform_1, window_bounds = array<i64: 1, 128>}, {pipeline_mode = #tpu.pipeline_mode<synchronous>, transform_indices = @transform_2, window_bounds = array<i64: 1, 128>}, {transform_indices = @transform_3, window_bounds = array<i64: 128, 128>}, {transform_indices = @transform_4, window_bounds = array<i64: 392, 128>}]} {
    %c0 = arith.constant 0 : index
    %c0_0 = arith.constant 0 : index
    %0 = vector.load %arg1[%c0, %c0_0] : memref<392x128xf32, #tpu.memory_space<vmem>>, vector<392x128xf32>
    %cst = arith.constant dense<0.000000e+00> : vector<128xf32>
    %1 = vector.multi_reduction <add>, %0, %cst [0] : vector<392x128xf32> to vector<128xf32>
    %2 = vector.shape_cast %1 : vector<128xf32> to vector<1x128xf32>
    %3 = arith.mulf %0, %0 : vector<392x128xf32>
    %cst_1 = arith.constant dense<0.000000e+00> : vector<128xf32>
    %4 = vector.multi_reduction <add>, %3, %cst_1 [0] : vector<392x128xf32> to vector<128xf32>
    %5 = vector.shape_cast %4 : vector<128xf32> to vector<1x128xf32>
    %cst_2 = arith.constant 0.00255102036 : f32
    %6 = vector.broadcast %cst_2 : f32 to vector<1x128xf32>
    %7 = arith.mulf %2, %6 : vector<1x128xf32>
    %cst_3 = arith.constant 0.00255102036 : f32
    %8 = vector.broadcast %cst_3 : f32 to vector<1x128xf32>
    %9 = arith.mulf %5, %8 : vector<1x128xf32>
    %10 = arith.mulf %7, %7 : vector<1x128xf32>
    %11 = arith.subf %9, %10 : vector<1x128xf32>
    %12 = vector.broadcast %7 : vector<1x128xf32> to vector<392x128xf32>
    %13 = arith.subf %0, %12 : vector<392x128xf32>
    %cst_4 = arith.constant 9.99999974E-6 : f32
    %14 = vector.broadcast %cst_4 : f32 to vector<1x128xf32>
    %15 = arith.addf %11, %14 : vector<1x128xf32>
    %16 = math.rsqrt %15 : vector<1x128xf32>
    %17 = vector.broadcast %16 : vector<1x128xf32> to vector<392x128xf32>
    %18 = arith.mulf %13, %17 : vector<392x128xf32>
    %c0_5 = arith.constant 0 : index
    %c0_6 = arith.constant 0 : index
    %19 = vector.load %arg2[%c0_5, %c0_6] : memref<1x128xf32, #tpu.memory_space<vmem>>, vector<1x128xf32>
    %20 = vector.broadcast %19 : vector<1x128xf32> to vector<392x128xf32>
    %21 = arith.mulf %18, %20 : vector<392x128xf32>
    %c0_7 = arith.constant 0 : index
    %c0_8 = arith.constant 0 : index
    %22 = vector.load %arg3[%c0_7, %c0_8] : memref<1x128xf32, #tpu.memory_space<vmem>>, vector<1x128xf32>
    %23 = vector.broadcast %22 : vector<1x128xf32> to vector<392x128xf32>
    %24 = arith.addf %21, %23 : vector<392x128xf32>
    %cst_9 = arith.constant 0.000000e+00 : f32
    %25 = vector.broadcast %cst_9 : f32 to vector<392x128xf32>
    %26 = arith.maximumf %24, %25 : vector<392x128xf32>
    %27 = arith.truncf %26 : vector<392x128xf32> to vector<392x128xbf16>
    %c0_10 = arith.constant 0 : index
    %c0_11 = arith.constant 0 : index
    %28 = vector.load %arg4[%c0_10, %c0_11] : memref<128x128xbf16, #tpu.memory_space<vmem>>, vector<128x128xbf16>
    %cst_12 = arith.constant dense<0.000000e+00> : vector<392x128xf32>
    %29 = tpu.matmul %27, %28, %cst_12 {dimension_numbers = #tpu.dot_dimension_numbers<[1], [0], [0], [1], [0, 0, 1, 1], [], []>} : vector<392x128xbf16>, vector<128x128xbf16>, vector<392x128xf32> -> vector<392x128xf32>
    %c0_13 = arith.constant 0 : index
    %c0_14 = arith.constant 0 : index
    %30 = vector.load %arg5[%c0_13, %c0_14] : memref<392x128xf32, #tpu.memory_space<vmem>>, vector<392x128xf32>
    tpu.vector_store %arg5[%c0_13, %c0_14], %29 {strides = array<i32>} : memref<392x128xf32, #tpu.memory_space<vmem>>, vector<392x128xf32>,
    return
  }
  func.func @transform_0(%arg0: i32) -> (i32, i32) {
    %c0_i32 = arith.constant 0 : i32
    %c0_i32_0 = arith.constant 0 : i32
    %c0_i32_1 = arith.constant 0 : i32
    return %c0_i32, %c0_i32_0 : i32, i32
  }
  func.func @transform_1(%arg0: i32) -> (i32, i32) {
    %c0_i32 = arith.constant 0 : i32
    %c0_i32_0 = arith.constant 0 : i32
    %c0_i32_1 = arith.constant 0 : i32
    return %c0_i32, %c0_i32_0 : i32, i32
  }
  func.func @transform_2(%arg0: i32) -> (i32, i32) {
    %c0_i32 = arith.constant 0 : i32
    %c0_i32_0 = arith.constant 0 : i32
    %c0_i32_1 = arith.constant 0 : i32
    return %c0_i32, %c0_i32_0 : i32, i32
  }
  func.func @transform_3(%arg0: i32) -> (i32, i32) {
    %c0_i32 = arith.constant 0 : i32
    %c0_i32_0 = arith.constant 0 : i32
    return %c0_i32, %arg0 : i32, i32
  }
  func.func @transform_4(%arg0: i32) -> (i32, i32) {
    %c0_i32 = arith.constant 0 : i32
    %c0_i32_0 = arith.constant 0 : i32
    return %c0_i32, %arg0 : i32, i32
  }
}

</mosaic_0001>

<bundles_post_ra>
// kernel: generator_forward.4
= control target key start
LH: loop header
LB: loop body
LE: loop exit
PB: predicated region body
PF: predicated region fallthrough
CT: control target
= control target key end

     0   :  { %7 = vsyncpa [#allocation3], 0  ;;  %s1201_s0 = inlined_call_operand.vmem [shape: bf16[2,32], index: 0, kind: input, shape index: {}]   ;;  %s1202_s1 = inlined_call_operand.hbm [shape: bf16[32,8192], index: 1, kind: input, shape index: {}]   ;;  %s1203_s2 = inlined_call_operand.vmem [shape: f32[2,8192], index: 2, kind: output, shape index: {}]  }
   0x1   :  { %9 = vsyncpa [#allocation3 + $0x1], 0  ;;  %s1034_s9 = smov 0   ;;  %s1036_s10 = smov 0  }
   0x2   :  { %s1038_s11 = smov 0   ;;  %s1040_s12 = smov 0  }
   0x3 LB: > { %s851_s13 = sadd.s32 4294967295, %s1011_s12   ;;  %s1054_s14 = sadd.s32 1, %s1011_s12   ;;  %s1011_s12 = sphi %s1040_s12, %s1211_s12   ;;  %s1007_s11 = sphi %s1038_s11, %s1210_s11   ;;  %s1003_s10 = sphi %s1036_s10, %s1209_s10   ;;  %s999_s9 = sphi %s1034_s9, %s1208_s9  }
   0x4   : > { %s40_s15 = ssub.s32 %s1011_s12, %s1054_s14  ;;  %s43_s16 = sadd.s32 1, %s1007_s11 }
   0x5   : > { %p41_p0 = scmp.eq.s32.totalorder %s40_s15, 0  ;;  %p50_p1 = scmp.ne.s32.totalorder %s1007_s11, %s1003_s10 }
   0x6   : > { %p51_p2 = scmp.eq.s32.totalorder %s1011_s12, 0  ;;  %p56_p3 = scmp.ne.s32.totalorder %s1003_s10, %s999_s9 }
   0x7   : > { %s1064_s17 = scalar_select %p41_p0, %s1007_s11, %s43_s16  }
   0x8   : > { %p52_p4 = por %p51_p2, %p50_p1  ;;  %p57_p5 = scmp.eq.s32.totalorder %s851_s13, 0 }
   0x9   : > { %p911_p6 = scmp.lt.s32.totalorder %s1011_s12, 4  ;;  %s109_s19 = sand.u32 1, %s1007_s11  }
   0xa   : > { %p1069_p7 = por %p57_p5, %p56_p3  ;;  %s855_s20 = sshll.u32 %s109_s19, 8 }
   0xb   : > { %s904_s21 = sshll.u32 %s1011_s12, 10  ;;  %s113_s25 = scalar_lea.vmem [#allocation2], %s855_s20 }
   0xc   : > { %s1205_s18 = scalar_select %p1069_p7, 1, 0 }
   0xd   : > { %s1078_s24 = scalar_lea.hbm %s1202_s1, %s904_s21  ;;  %s120_s26 = sshll.u32 %s113_s25, 4  ;;  %s1080_s26 = int_to_ptr.vmem [resolvable:$true] %s120_s26 }
   0xe   : > { %p1082_p8 = pnand %p911_p6, %p52_p4  ;;  %s1086_s28 = scalar_lea.sflag [#allocation3], %s109_s19 }
   0xf   : > { %s949_s29 = scalar_lea.hbm %s1078_s24, 4096  ;;  %s954_s4 = scalar_lea.hbm %s1202_s1, 16384 }
  0x10   : > { %p950_p9 = scmp.ne.s32.totalorder %s1078_s24, %s949_s29  ;;  %p951_p10 = pneg %p1082_p8 }
  0x11   : > { %p955_p13 = scmp.lt.s32.totalorder %s1078_s24, %s1202_s1  ;;  %p956_p0 = scmp.lt.s32.totalorder %s954_s4, %s949_s29 }
  0x12   : > { %p952_p11 = pnand %p951_p10, %p950_p9 }
  0x13   : > { %p957_p1 = por %p956_p0, %p955_p13 }
  0x14   : > { %p953_p12 = pneg %p952_p11 }
  0x16   : > { %p958_p2 = pnand %p957_p1, %p953_p12 }
  0x18   : > { %961 = shalt.err (!%p958_p2)
}
  0x19   : > { %s962_s7 = scalar_lea.vmem %s1080_s26, 4096  ;;  %s1013_s8 = smov [#allocation2]  }
  0x1a   : > { %p963_p3 = scmp.ne.s32.totalorder %s1080_s26, %s962_s7  ;;  %s967_s9 = sshll.u32 %s1013_s8, 4  ;;  %s968_s9 = int_to_ptr.vmem [resolvable:$false] %s967_s9 }
  0x1b   : > { %s969_s15 = scalar_lea.vmem %s968_s9, 8192  ;;  %p970_p6 = scmp.lt.s32.totalorder %s1080_s26, %s968_s9 }
  0x1c   : > { %p965_p4 = pnand %p963_p3, %p951_p10  ;;  %p971_p9 = scmp.lt.s32.totalorder %s969_s15, %s962_s7 }
  0x1e   : > { %p966_p5 = pneg %p965_p4  ;;  %p972_p11 = por %p971_p9, %p970_p6 }
  0x20   : > { %p973_p7 = pnand %p972_p11, %p966_p5 }
  0x22   : > { %976 = shalt.err (!%p973_p7)
}
  0x23   : > { %s1014_s16 = smov 4096   ;;  %s1015_s19 = smov 1024  }
  0x24   : > { %s1016_s20 = smov 64   ;;  %p858_p10 = scmp.ge.s32.totalorder %s1011_s12, 1 }
  0x25   : > { %910 = dma.hbm_to_vmem [thread:$0]  (!%p1082_p8), %s1078_s24, 4096, %s1080_s26, %s1086_s28, %s1014_s16, %s1015_s19, %s1016_s20  }
  0x26   : > { %p128_p12 = scmp.lt.s32.totalorder %s1011_s12, 5 }
  0x28   : > { %p129_p13 = pnand %p858_p10, %p128_p12 }
  0x29   : > { %s134_s21 = sand.u32 (!%p129_p13), 1, %s1003_s10   ;;  %p1207_p7 = scmp.ne.s32.totalorder (!%p129_p13), %s1205_s18, 0 }
  0x2a   : > { %132 = sbr.rel (%p129_p13) target bundleno = 286 (0x11e), region = 28  ;;  %s859_s22 = sshll.u32 (!%p129_p13), %s134_s21, 8 }
  0x2b   : > { %s135_s23 = scalar_lea.sflag (!%p129_p13), [#allocation3], %s134_s21  ;;  %s1110_s25 = scalar_lea.vmem (!%p129_p13), [#allocation2], %s859_s22 }
  0x2f   : > { %994 = dma.done.wait (%p1207_p7), %s135_s23, 4096  }
  0x30   : > { %996 = vsyncadd (%p1207_p7), %s135_s23, 4294963200  ;;  %v1017_v0 = vmov 0   ;;  %v184_v1 = vld [vmem:[%s1110_s25 + $0x80] sm:$0xff]  ;;  %v185_v3 = vld [vmem:[%s1110_s25 + $0x88] sm:$0xff]  ;;  %vm360_vm0 = vcmask 261120   ;;  %s860_s26 = sshll.u32 %s851_s13, 4 }
  0x31   : > { %396 = vmatprep.mubr.bf16.mxu0 %v1017_v0  ;;  %437 = vmatprep.mubr.bf16.mxu1 %v1017_v0  ;;  %v192_v2 = vld [vmem:[%s1110_s25 + $0xc0] sm:$0xff]  ;;  %v193_v5 = vld [vmem:[%s1110_s25 + $0xc8] sm:$0xff]  ;;  %v186_v15 = vld [vmem:[%s1110_s25 + $0x90] sm:$0xff]  ;;  %p161_p8 = scmp.lt.s32.totalorder %s860_s26, 63 }
  0x32   : > { %v879_v4 = vcombine.high %v184_v1, %v192_v2  ;;  %v878_v6 = vcombine.low %v184_v1, %v192_v2  ;;  %v168_v7 = vld [vmem:[%s1110_s25] sm:$0xff]  ;;  %v881_v9 = vcombine.high %v185_v3, %v193_v5  ;;  %v880_v10 = vcombine.low %v185_v3, %v193_v5  ;;  %v169_v12 = vld [vmem:[%s1110_s25 + $0x8] sm:$0xff]  ;;  %v194_v16 = vld [vmem:[%s1110_s25 + $0xd0] sm:$0xff] }
  0x33   : > { %v176_v8 = vld [vmem:[%s1110_s25 + $0x40] sm:$0xff]  ;;  %v177_v13 = vld [vmem:[%s1110_s25 + $0x48] sm:$0xff]  ;;  %v187_v17 = vld [vmem:[%s1110_s25 + $0x98] sm:$0xff]  ;;  %v883_v21 = vcombine.high %v186_v15, %v194_v16  ;;  %v882_v28 = vcombine.low %v186_v15, %v194_v16  ;;  %v1018_v3 = vmov 1983009808   ;;  %v713_v5 = vlaneseq  ;;  %s1213_s26 = smov (!%p161_p8, %s860_s26), 63 }
  0x34   : > { %v863_v11 = vcombine.high %v168_v7, %v176_v8  ;;  %376 = vmatprep.subr.bf16.mxu0 %v879_v4  ;;  %v865_v14 = vcombine.high %v169_v12, %v177_v13  ;;  %417 = vmatprep.subr.bf16.mxu1 %v881_v9  ;;  %v862_v18 = vcombine.low %v168_v7, %v176_v8  ;;  %v195_v19 = vld [vmem:[%s1110_s25 + $0xd8] sm:$0xff]  ;;  %v170_v23 = vld [vmem:[%s1110_s25 + $0x10] sm:$0xff]  ;;  %v1137_v27 = vld [vmem:[%s1201_s0] sm:$0x1]  ;;  %v711_v4 = vunpack.c.l.s4 %v1018_v3  ;;  %s861_s27 = sshll.u32 %s1213_s26, 1 }
  0x35   : > { %377 = vmatpush1.bf16.msra.mxu0 %v878_v6  ;;  %418 = vmatpush1.bf16.msra.mxu1 %v880_v10  ;;  %v864_v20 = vcombine.low %v169_v12, %v177_v13  ;;  %v885_v22 = vcombine.high %v187_v17, %v195_v19  ;;  %v178_v24 = vld [vmem:[%s1110_s25 + $0x50] sm:$0xff]  ;;  %v171_v25 = vld [vmem:[%s1110_s25 + $0x18] sm:$0xff]  ;;  %v884_v29 = vcombine.low %v187_v17, %v195_v19  ;;  %v188_v32 = vld [vmem:[%s1110_s25 + $0xa0] sm:$0xff]  ;;  %v714_v7 = vshrl.u32 %v713_v5, 7  ;;  %s1182_s13 = scalar_lea.vmem %s1203_s2, %s861_s27 }
  0x36   : > { %378 = vmatprep.subr.bf16.mxu0 %v863_v11  ;;  %419 = vmatprep.subr.bf16.mxu1 %v865_v14  ;;  %v179_v26 = vld [vmem:[%s1110_s25 + $0x58] sm:$0xff]  ;;  %v867_v30 = vcombine.high %v170_v23, %v178_v24  ;;  %v196_v33 = vld [vmem:[%s1110_s25 + $0xe0] sm:$0xff]  ;;  %v189_v34 = vld [vmem:[%s1110_s25 + $0xa8] sm:$0xff]  ;;  %v866_v36 = vcombine.low %v170_v23, %v178_v24  ;;  %v712_v6 = vunpack.c.0.s8 %v711_v4 }
  0x37   : > { %v869_v31 = vcombine.high %v171_v25, %v179_v26  ;;  %v197_v35 = vld [vmem:[%s1110_s25 + $0xe8] sm:$0xff]  ;;  %v868_v37 = vcombine.low %v171_v25, %v179_v26  ;;  %v887_v38 = vcombine.high %v188_v32, %v196_v33  ;;  %v172_v40 = vld [vmem:[%s1110_s25 + $0x20] sm:$0xff]  ;;  %v886_v44 = vcombine.low %v188_v32, %v196_v33  ;;  %v190_v48 = vld [vmem:[%s1110_s25 + $0xb0] sm:$0xff] }
  0x38   : > { %v889_v39 = vcombine.high %v189_v34, %v197_v35  ;;  %v180_v41 = vld [vmem:[%s1110_s25 + $0x60] sm:$0xff]  ;;  %v173_v42 = vld [vmem:[%s1110_s25 + $0x28] sm:$0xff]  ;;  %v888_v45 = vcombine.low %v189_v34, %v197_v35  ;;  %v198_v49 = vld [vmem:[%s1110_s25 + $0xf0] sm:$0xff] }
  0x39   : > { %379 = vmatpush1.bf16.msra.mxu0 %v862_v18  ;;  %420 = vmatpush1.bf16.msra.mxu1 %v864_v20  ;;  %v181_v43 = vld [vmem:[%s1110_s25 + $0x68] sm:$0xff]  ;;  %v871_v46 = vcombine.high %v172_v40, %v180_v41  ;;  %v191_v50 = vld [vmem:[%s1110_s25 + $0xb8] sm:$0xff]  ;;  %v870_v52 = vcombine.low %v172_v40, %v180_v41  ;;  %v891_v54 = vcombine.high %v190_v48, %v198_v49  ;;  %v174_v56 = vld [vmem:[%s1110_s25 + $0x30] sm:$0xff] }
  0x3a   : > { %458 = vmatprep.subr.bf16.mxu0 %v883_v21  ;;  %499 = vmatprep.subr.bf16.mxu1 %v885_v22  ;;  %v873_v47 = vcombine.high %v173_v42, %v181_v43  ;;  %v199_v51 = vld [vmem:[%s1110_s25 + $0xf8] sm:$0xff]  ;;  %v872_v53 = vcombine.low %v173_v42, %v181_v43  ;;  %v182_v57 = vld [vmem:[%s1110_s25 + $0x70] sm:$0xff]  ;;  %v890_v60 = vcombine.low %v190_v48, %v198_v49 }
  0x3b   : > { %v893_v55 = vcombine.high %v191_v50, %v199_v51  ;;  %v175_v58 = vld [vmem:[%s1110_s25 + $0x38] sm:$0xff]  ;;  %v892_v61 = vcombine.low %v191_v50, %v199_v51  ;;  %v875_v62 = vcombine.high %v174_v56, %v182_v57  ;;  %v874_v1 = vcombine.low %v174_v56, %v182_v57 }
  0x3c   : > { %894 = vmatmul.mubr.msk.bf16.vlgmr.msra.gmra.mxu0 %vm360_vm0, %v1137_v27  ;;  %895 = vmatmul.mubr.msk.bf16.vlgmr.msra.gmra.mxu1 %vm360_vm0, %v1137_v27  ;;  %v183_v59 = vld [vmem:[%s1110_s25 + $0x78] sm:$0xff] }
  0x3d   : > { %459 = vmatpush1.bf16.msra.mxu0 %v882_v28  ;;  %500 = vmatpush1.bf16.msra.mxu1 %v884_v29  ;;  %v877_v63 = vcombine.high %v175_v58, %v183_v59  ;;  %v876_v2 = vcombine.low %v175_v58, %v183_v59 }
  0x3e   : > { %460 = vmatprep.subr.bf16.mxu0 %v867_v30  ;;  %501 = vmatprep.subr.bf16.mxu1 %v869_v31 }
  0x3f   : > { %478 = vmatprep.mubr.bf16.mxu0 %v1017_v0  ;;  %519 = vmatprep.mubr.bf16.mxu1 %v1017_v0 }
  0x41   : > { %461 = vmatpush1.bf16.msra.mxu0 %v866_v36  ;;  %502 = vmatpush1.bf16.msra.mxu1 %v868_v37 }
  0x42   : > { %540 = vmatprep.subr.bf16.mxu0 %v887_v38  ;;  %581 = vmatprep.subr.bf16.mxu1 %v889_v39 }
  0x44   : > { %896 = vmatmul.mubr.msk.bf16.vlgmr.msra.gmra.mxu0 %vm360_vm0, %v1137_v27  ;;  %897 = vmatmul.mubr.msk.bf16.vlgmr.msra.gmra.mxu1 %vm360_vm0, %v1137_v27 }
  0x45   : > { %541 = vmatpush1.bf16.msra.mxu0 %v886_v44  ;;  %582 = vmatpush1.bf16.msra.mxu1 %v888_v45 }
  0x46   : > { %542 = vmatprep.subr.bf16.mxu0 %v871_v46  ;;  %583 = vmatprep.subr.bf16.mxu1 %v873_v47 }
  0x47   : > { %560 = vmatprep.mubr.bf16.mxu0 %v1017_v0  ;;  %601 = vmatprep.mubr.bf16.mxu1 %v1017_v0 }
  0x49   : > { %543 = vmatpush1.bf16.msra.mxu0 %v870_v52  ;;  %584 = vmatpush1.bf16.msra.mxu1 %v872_v53 }
  0x4a   : > { %622 = vmatprep.subr.bf16.mxu0 %v891_v54  ;;  %663 = vmatprep.subr.bf16.mxu1 %v893_v55 }
  0x4c   : > { %898 = vmatmul.mubr.msk.bf16.vlgmr.msra.gmra.mxu0 %vm360_vm0, %v1137_v27  ;;  %899 = vmatmul.mubr.msk.bf16.vlgmr.msra.gmra.mxu1 %vm360_vm0, %v1137_v27 }
  0x4d   : > { %623 = vmatpush1.bf16.msra.mxu0 %v890_v60  ;;  %664 = vmatpush1.bf16.msra.mxu1 %v892_v61 }
  0x4e   : > { %624 = vmatprep.subr.bf16.mxu0 %v875_v62  ;;  %665 = vmatprep.subr.bf16.mxu1 %v877_v63 }
  0x4f   : > { %642 = vmatprep.mubr.bf16.mxu0 %v1017_v0  ;;  %683 = vmatprep.mubr.bf16.mxu1 %v1017_v0  ;;  %v715_v0 = vsub.s32 %v712_v6, %v714_v7 }
  0x51   : > { %625 = vmatpush1.bf16.msra.mxu0 %v874_v1  ;;  %666 = vmatpush1.bf16.msra.mxu1 %v876_v2 }
  0x54   : > { %900 = vmatmul.mubr.msk.bf16.vlgmr.msra.gmra.mxu0 %vm360_vm0, %v1137_v27  ;;  %901 = vmatmul.mubr.msk.bf16.vlgmr.msra.gmra.mxu1 %vm360_vm0, %v1137_v27 }
  0xfc   : > { %v398_v8 = vpop.f32.mrf.mxu0  ;;  %v439_v9 = vpop.f32.mrf.mxu1 }
  0xfe   : > { %v400_v10 = vpop.f32.mrf.mxu0  ;;  %v441_v12 = vpop.f32.mrf.mxu1 }
  0xff   : > { %v708_v11 = vcombine.low %v398_v8, %v400_v10  ;;  %v709_v13 = vcombine.low %v439_v9, %v441_v12 }
 0x100   : > { %v402_v14 = vpop.f32.mrf.mxu0  ;;  %v443_v16 = vpop.f32.mrf.mxu1 }
 0x101   : > { %v716_v15 = vrot.slane %v708_v11, %v715_v0  ;;  %v723_v17 = vrot.slane %v709_v13, %v715_v0 }
 0x102   : > { %v403_v18 = vpop.f32.mrf.mxu0  ;;  %v444_v19 = vpop.f32.mrf.mxu1 }
 0x103   : > { %v724_v20 = vcombine.low %v716_v15, %v723_v17 }
 0x104   : > { %v480_v21 = vpop.f32.mrf.mxu0  ;;  %v521_v22 = vpop.f32.mrf.mxu1 }
 0x105   : > { %780 = vst [vmem:[%s1182_s13] sm:$0xff] %v724_v20 }
 0x106   : > { %v482_v23 = vpop.f32.mrf.mxu0  ;;  %v523_v25 = vpop.f32.mrf.mxu1 }
 0x107   : > { %v725_v24 = vcombine.low %v480_v21, %v482_v23  ;;  %v726_v26 = vcombine.low %v521_v22, %v523_v25 }
 0x108   : > { %v484_v27 = vpop.f32.mrf.mxu0  ;;  %v525_v29 = vpop.f32.mrf.mxu1 }
 0x109   : > { %v733_v28 = vrot.slane %v725_v24, %v715_v0  ;;  %v740_v30 = vrot.slane %v726_v26, %v715_v0 }
 0x10a   : > { %v485_v31 = vpop.f32.mrf.mxu0  ;;  %v526_v32 = vpop.f32.mrf.mxu1 }
 0x10b   : > { %v741_v33 = vcombine.low %v733_v28, %v740_v30 }
 0x10c   : > { %v562_v34 = vpop.f32.mrf.mxu0  ;;  %v603_v35 = vpop.f32.mrf.mxu1 }
 0x10d   : > { %781 = vst [vmem:[%s1182_s13 + $0x8] sm:$0xff] %v741_v33 }
 0x10e   : > { %v564_v36 = vpop.f32.mrf.mxu0  ;;  %v605_v38 = vpop.f32.mrf.mxu1 }
 0x10f   : > { %v742_v37 = vcombine.low %v562_v34, %v564_v36  ;;  %v743_v39 = vcombine.low %v603_v35, %v605_v38 }
 0x110   : > { %v566_v40 = vpop.f32.mrf.mxu0  ;;  %v607_v42 = vpop.f32.mrf.mxu1 }
 0x111   : > { %v750_v41 = vrot.slane %v742_v37, %v715_v0  ;;  %v757_v43 = vrot.slane %v743_v39, %v715_v0 }
 0x112   : > { %v567_v44 = vpop.f32.mrf.mxu0  ;;  %v608_v45 = vpop.f32.mrf.mxu1 }
 0x113   : > { %v758_v46 = vcombine.low %v750_v41, %v757_v43 }
 0x114   : > { %v644_v47 = vpop.f32.mrf.mxu0  ;;  %v685_v48 = vpop.f32.mrf.mxu1 }
 0x115   : > { %782 = vst [vmem:[%s1182_s13 + $0x10] sm:$0xff] %v758_v46 }
 0x116   : > { %v646_v49 = vpop.f32.mrf.mxu0  ;;  %v687_v51 = vpop.f32.mrf.mxu1 }
 0x117   : > { %v759_v50 = vcombine.low %v644_v47, %v646_v49  ;;  %v760_v52 = vcombine.low %v685_v48, %v687_v51 }
 0x118   : > { %v648_v53 = vpop.f32.mrf.mxu0  ;;  %v689_v55 = vpop.f32.mrf.mxu1 }
 0x119   : > { %v767_v54 = vrot.slane %v759_v50, %v715_v0  ;;  %v774_v56 = vrot.slane %v760_v52, %v715_v0 }
 0x11a   : > { %v649_v57 = vpop.f32.mrf.mxu0  ;;  %v690_v58 = vpop.f32.mrf.mxu1 }
 0x11b   : > { %v775_v59 = vcombine.low %v767_v54, %v774_v56 }
 0x11d   : > { %783 = vst [vmem:[%s1182_s13 + $0x18] sm:$0xff] %v775_v59 }
 0x11e PF: > { %p12_p0 = scmp.ge.s32.totalorder %s1054_s14, 6   ;;  %s1208_s9 = smov %s1003_s10 }
 0x11f   : > { %s1209_s10 = smov %s1007_s11  ;;  %s1210_s11 = smov %s1064_s17 }
 0x120   : > { %s1211_s12 = smov %s1054_s14  ;;  %14 = sbr.rel (!%p12_p0) target bundleno = 3 (0x3), region = 68 }
 0x125   :  { %806 = vsyncpa [#allocation3], 1 }
 0x126   :  { %808 = vsyncpa [#allocation3 + $0x1], 1 }

// kernel: generator_forward.5
= control target key start
LH: loop header
LB: loop body
LE: loop exit
PB: predicated region body
PF: predicated region fallthrough
CT: control target
= control target key end

     0   :  { %9 = vsyncpa [#allocation3], 0  ;;  %s4130_s0 = inlined_call_operand.vmem [shape: f32[32,512], index: 0, kind: input, shape index: {}]   ;;  %s4131_s1 = inlined_call_operand.hbm [shape: f32[1,512], index: 1, kind: input, shape index: {}]   ;;  %s4132_s2 = inlined_call_operand.hbm [shape: f32[1,512], index: 2, kind: input, shape index: {}]   ;;  %s4133_s3 = inlined_call_operand.hbm [shape: bf16[512,4096], index: 3, kind: input, shape index: {}]   ;;  %s4134_s4 = inlined_call_operand.vmem [shape: f32[32,4096], index: 4, kind: output, shape index: {}]  }
   0x1   :  { %10 = vsyncpa [#allocation5], 0  ;;  %s3161_s15 = smov 0   ;;  %s3163_s16 = smov 0  }
   0x2   :  { %s3165_s17 = smov 0   ;;  %s3167_s18 = smov 0  }
   0x3 LB: > { %s3180_s19 = sadd.s32 4294967295, %s3128_s18   ;;  %s3183_s20 = sadd.s32 1, %s3128_s18   ;;  %s3128_s18 = sphi %s3167_s18, %s4156_s18   ;;  %s3124_s17 = sphi %s3165_s17, %s4155_s17   ;;  %s3120_s16 = sphi %s3163_s16, %s4154_s16   ;;  %s3116_s15 = sphi %s3161_s15, %s4153_s15  }
   0x4   : > { %s83_s21 = ssub.s32 %s3128_s18, %s3183_s20  ;;  %s86_s22 = sadd.s32 1, %s3124_s17 }
   0x5   : > { %p84_p0 = scmp.eq.s32.totalorder %s83_s21, 0  ;;  %p93_p1 = scmp.ne.s32.totalorder %s3124_s17, %s3120_s16 }
   0x6   : > { %p94_p2 = scmp.eq.s32.totalorder %s3128_s18, 0  ;;  %p99_p3 = scmp.ne.s32.totalorder %s3120_s16, %s3116_s15 }
   0x7   : > { %s3193_s23 = scalar_select %p84_p0, %s3124_s17, %s86_s22  }
   0x8   : > { %p3195_p4 = por %p94_p2, %p93_p1  ;;  %p4135_p5 = scmp.eq.s32.totalorder %s3180_s19, 0 }
   0x9   : > { %p123_p6 = scmp.eq.s32.totalorder %s3180_s19, 3  ;;  %p2660_p7 = scmp.ge.s32.totalorder %s3128_s18, 1 }
   0xa   : > { %p3204_p8 = por %p4135_p5, %p99_p3  ;;  %p136_p9 = scmp.lt.s32.totalorder %s3128_s18, 5 }
   0xb   : > { %p3209_p10 = por %p123_p6, %p93_p1  ;;  %s3130_s28 = smov [#allocation2]  }
   0xc   : > { %s4140_s25 = scalar_select %p3204_p8, 1, 0 }
   0xd   : > { %s4141_s26 = scalar_select %p3209_p10, 1, 0 }
   0xe   : > { %p3213_p11 = pnand %p2660_p7, %p136_p9  ;;  %s152_s29 = sshll.u32 %s3130_s28, 4  ;;  %s153_s29 = int_to_ptr.vmem [resolvable:$true] %s152_s29 }
   0xf   : > { %p2958_p13 = scmp.lt.s32.totalorder %s3128_s18, 4  ;;  %s3131_s5 = smov [#allocation4]  }
  0x10   : > { %s4142_s27 = scalar_select %p3213_p11, 1, 0 }
  0x11   : > { %p2945_p12 = pneg %p3213_p11  ;;  %s163_s6 = sshll.u32 %s3131_s5, 4  ;;  %s164_s6 = int_to_ptr.vmem [resolvable:$true] %s163_s6 }
  0x12   : > { %p3228_p1 = pnand %p2958_p13, %p3195_p4  ;;  %s174_s8 = sand.u32 1, %s3128_s18  }
  0x13   : > { %p3222_p0 = pnand %p2945_p12, %p4135_p5  ;;  %s3017_s9 = scalar_lea.vmem %s153_s29, 64 }
  0x14   : > { %s4144_s7 = scalar_select %p3228_p1, 1, 0 }
  0x15   : > { %p3008_p2 = pneg %p3222_p0  ;;  %p3018_p3 = scmp.ne.s32.totalorder %s153_s29, %s3017_s9 }
  0x16   : > { %p3025_p9 = scmp.lt.s32.totalorder %s153_s29, %s153_s29  ;;  %p3026_p12 = scmp.lt.s32.totalorder %s3017_s9, %s3017_s9 }
  0x17   : > { %p3020_p6 = pnand %p3018_p3, %p3008_p2 }
  0x18   : > { %p3027_p5 = por %p3026_p12, %p3025_p9 }
  0x19   : > { %p3021_p7 = pneg %p3020_p6 }
  0x1b   : > { %p3028_p10 = pnand %p3027_p5, %p3021_p7 }
  0x1d   : > { %3031 = shalt.err (!%p3028_p10)
}
  0x1e   : > { %2948 = dma.hbm_to_vmem [thread:$0]  (!%p3222_p0), %s4131_s1, 64, %s153_s29, [#allocation3]  }
  0x1f   : > { %s3043_s12 = scalar_lea.vmem %s164_s6, 64  ;;  %p3051_p3 = scmp.lt.s32.totalorder %s164_s6, %s164_s6 }
  0x20   : > { %p3044_p4 = scmp.ne.s32.totalorder %s164_s6, %s3043_s12  ;;  %p3052_p6 = scmp.lt.s32.totalorder %s3043_s12, %s3043_s12 }
  0x22   : > { %p3046_p13 = pnand %p3044_p4, %p3008_p2  ;;  %p3053_p11 = por %p3052_p6, %p3051_p3 }
  0x24   : > { %p3047_p8 = pneg %p3046_p13 }
  0x26   : > { %p3054_p1 = pnand %p3053_p11, %p3047_p8 }
  0x28   : > { %3057 = shalt.err (!%p3054_p1)
}
  0x29   : > { %2951 = dma.hbm_to_vmem [thread:$0]  (!%p3222_p0), %s4132_s2, 64, %s164_s6, [#allocation5]  }
  0x2a   : > { %s176_s15 = sand.u32 1, %s3124_s17   ;;  %s2933_s21 = sshll.u32 %s3128_s18, 9 }
  0x2b   : > { %s2664_s22 = sshll.u32 %s176_s15, 11  ;;  %s3256_s29 = scalar_lea.hbm %s4133_s3, %s2933_s21 }
  0x2c   : > { %s178_s5 = scalar_lea.vmem [#allocation6], %s2664_s22  ;;  %s3260_s9 = scalar_lea.sflag [#allocation3], %s174_s8 }
  0x2d   : > { %s185_s30 = sshll.u32 %s178_s5, 4  ;;  %s3058_s10 = scalar_lea.hbm %s3256_s29, 32768  ;;  %s3258_s30 = int_to_ptr.vmem [resolvable:$true] %s185_s30 }
  0x2e   : > { %p3059_p5 = scmp.ne.s32.totalorder %s3256_s29, %s3058_s10  ;;  %p4145_p8 = scmp.ne.s32.totalorder %s4144_s7, 0 }
  0x2f   : > { %s3063_s11 = scalar_lea.hbm %s4133_s3, 131072  ;;  %p3064_p1 = scmp.lt.s32.totalorder %s3256_s29, %s4133_s3 }
  0x30   : > { %p3060_p10 = pneg %p4145_p8  ;;  %p3065_p2 = scmp.lt.s32.totalorder %s3063_s11, %s3058_s10 }
  0x32   : > { %p3061_p11 = pnand %p3060_p10, %p3059_p5  ;;  %p3066_p7 = por %p3065_p2, %p3064_p1 }
  0x34   : > { %p3062_p0 = pneg %p3061_p11 }
  0x36   : > { %p3067_p9 = pnand %p3066_p7, %p3062_p0 }
  0x38   : > { %3070 = shalt.err (!%p3067_p9)
}
  0x39   : > { %s3071_s8 = scalar_lea.vmem %s3258_s30, 32768  ;;  %s3132_s14 = smov [#allocation6]  }
  0x3a   : > { %p3072_p12 = scmp.ne.s32.totalorder %s3258_s30, %s3071_s8  ;;  %s3076_s15 = sshll.u32 %s3132_s14, 4  ;;  %s3077_s15 = int_to_ptr.vmem [resolvable:$false] %s3076_s15 }
  0x3b   : > { %s3078_s21 = scalar_lea.vmem %s3077_s15, 65536  ;;  %p3079_p3 = scmp.lt.s32.totalorder %s3258_s30, %s3077_s15 }
  0x3c   : > { %p3074_p4 = pnand %p3072_p12, %p3060_p10  ;;  %p3080_p6 = scmp.lt.s32.totalorder %s3078_s21, %s3071_s8 }
  0x3e   : > { %p3075_p13 = pneg %p3074_p4  ;;  %p3081_p5 = por %p3080_p6, %p3079_p3 }
  0x40   : > { %p3082_p11 = pnand %p3081_p5, %p3075_p13 }
  0x42   : > { %3085 = shalt.err (!%p3082_p11)
}
  0x43   : > { %s3133_s22 = smov 2048   ;;  %s3134_s24 = smov 512  }
  0x44   : > { %s3135_s28 = smov 32   ;;  %p4146_p10 = scmp.ne.s32.totalorder %s4142_s27, 0 }
  0x45   : > { %2955 = dma.hbm_to_vmem [thread:$0]  (!%p4145_p8), %s3256_s29, 32768, %s3258_s30, %s3260_s9, %s3133_s22, %s3134_s24, %s3135_s28  }
  0x46   : > { %197 = sbr.rel (%p4146_p10) target bundleno = 605 (0x25d), region = 36  ;;  %p4147_p0 = scmp.eq.s32.totalorder (!%p4146_p10), %s3180_s19, 0 }
  0x4b   : > { %3103 = dma.done.wait (%p4147_p0), [#allocation3], 64   ;;  %p4148_p1 = pmov %p4147_p0 }
  0x4c   : > { %p4149_p2 = pmov %p4147_p0 }
  0x4d   : > { %3105 = vsyncadd (%p4148_p1), [#allocation3], 4294967232 }
  0x4e   : > { %3107 = dma.done.wait (%p4149_p2), [#allocation5], 64   ;;  %p4150_p7 = pmov %p4147_p0 }
  0x4f   : > { %s207_s7 = sand.u32 1, %s3180_s19   ;;  %s209_s29 = sand.u32 1, %s3120_s16  }
  0x50   : > { %3109 = vsyncadd (%p4150_p7), [#allocation5], 4294967232  ;;  %s2670_s27 = sshll.u32 %s209_s29, 11  ;;  %s208_s5 = scalar_lea.sflag [#allocation3], %s207_s7 }
  0x51   : > { %s3295_s30 = scalar_lea.vmem [#allocation6], %s2670_s27  ;;  %p4151_p8 = scmp.ne.s32.totalorder %s4140_s25, 0 }
  0x53   : > { %3111 = dma.done.wait (%p4151_p8), %s208_s5, 32768  }
  0x54   : > { %3113 = vsyncadd (%p4151_p8), %s208_s5, 4294934528  ;;  %v553_v0 = vld [vmem:[%s3295_s30 + $0x1c0] sm:$0xff]  ;;  %s2671_s28 = sshll.u32 %s209_s29, 8  ;;  %p4152_p9 = scmp.ne.s32.totalorder %s4141_s26, 0 }
  0x55   : > { %v557_v1 = vld [vmem:[%s3295_s30 + $0x1e0] sm:$0xff]  ;;  %s2934_s29 = sshll.u32 (%p4152_p9), %s3180_s19, 6 }
  0x56   : > { %v681_v2 = vld [vmem:[%s3295_s30 + $0x5c0] sm:$0xff]  ;;  %v2729_v3 = vcombine.high %v553_v0, %v557_v1  ;;  %v2728_v5 = vcombine.low %v553_v0, %v557_v1  ;;  %s4054_s5 = scalar_lea.vmem (%p4152_p9), %s4134_s4, %s2934_s29 }
  0x57   : > { %v685_v4 = vld [vmem:[%s3295_s30 + $0x5e0] sm:$0xff] }
  0x58   : > { %v545_v6 = vld [vmem:[%s3295_s30 + $0x180] sm:$0xff]  ;;  %v2857_v8 = vcombine.high %v681_v2, %v685_v4  ;;  %v2856_v9 = vcombine.low %v681_v2, %v685_v4  ;;  %2033 = vmatprep.subr.bf16.mxu0 %v2729_v3 }
  0x59   : > { %v549_v7 = vld [vmem:[%s3295_s30 + $0x1a0] sm:$0xff]  ;;  %2034 = vmatpush1.bf16.msra.mxu0 %v2728_v5 }
  0x5a   : > { %v2721_v10 = vcombine.high %v545_v6, %v549_v7  ;;  %v673_v11 = vld [vmem:[%s3295_s30 + $0x580] sm:$0xff]  ;;  %2086 = vmatprep.subr.bf16.mxu1 %v2857_v8  ;;  %v2720_v18 = vcombine.low %v545_v6, %v549_v7 }
  0x5b   : > { %v677_v12 = vld [vmem:[%s3295_s30 + $0x5a0] sm:$0xff]  ;;  %2087 = vmatpush1.bf16.msra.mxu1 %v2856_v9 }
  0x5c   : > { %v537_v13 = vld [vmem:[%s3295_s30 + $0x140] sm:$0xff]  ;;  %v2849_v14 = vcombine.high %v673_v11, %v677_v12  ;;  %2035 = vmatprep.subr.bf16.mxu0 %v2721_v10  ;;  %v2848_v19 = vcombine.low %v673_v11, %v677_v12 }
  0x5d   : > { %v541_v15 = vld [vmem:[%s3295_s30 + $0x160] sm:$0xff]  ;;  %2036 = vmatpush1.bf16.msra.mxu0 %v2720_v18 }
  0x5e   : > { %v665_v16 = vld [vmem:[%s3295_s30 + $0x540] sm:$0xff]  ;;  %v2713_v20 = vcombine.high %v537_v13, %v541_v15  ;;  %2088 = vmatprep.subr.bf16.mxu1 %v2849_v14  ;;  %v2712_v26 = vcombine.low %v537_v13, %v541_v15 }
  0x5f   : > { %v669_v17 = vld [vmem:[%s3295_s30 + $0x560] sm:$0xff]  ;;  %2089 = vmatpush1.bf16.msra.mxu1 %v2848_v19 }
  0x60   : > { %v2841_v21 = vcombine.high %v665_v16, %v669_v17  ;;  %v529_v22 = vld [vmem:[%s3295_s30 + $0x100] sm:$0xff]  ;;  %2037 = vmatprep.subr.bf16.mxu0 %v2713_v20  ;;  %v2840_v27 = vcombine.low %v665_v16, %v669_v17 }
  0x61   : > { %v533_v23 = vld [vmem:[%s3295_s30 + $0x120] sm:$0xff]  ;;  %2038 = vmatpush1.bf16.msra.mxu0 %v2712_v26  ;;  %v3458_v26 = vld [vmem:[%s4130_s0 + $0x18] sm:$0xff] }
  0x62   : > { %v657_v24 = vld [vmem:[%s3295_s30 + $0x500] sm:$0xff]  ;;  %v2705_v28 = vcombine.high %v529_v22, %v533_v23  ;;  %2090 = vmatprep.subr.bf16.mxu1 %v2841_v21  ;;  %v2704_v34 = vcombine.low %v529_v22, %v533_v23 }
  0x63   : > { %v661_v25 = vld [vmem:[%s3295_s30 + $0x520] sm:$0xff]  ;;  %2091 = vmatpush1.bf16.msra.mxu1 %v2840_v27  ;;  %v3463_v27 = vld [vmem:[%s4130_s0 + $0x38] sm:$0xff] }
  0x64   : > { %v2833_v29 = vcombine.high %v657_v24, %v661_v25  ;;  %v521_v30 = vld [vmem:[%s3295_s30 + $0xc0] sm:$0xff]  ;;  %2039 = vmatprep.subr.bf16.mxu0 %v2705_v28  ;;  %v2832_v35 = vcombine.low %v657_v24, %v661_v25 }
  0x65   : > { %v525_v31 = vld [vmem:[%s3295_s30 + $0xe0] sm:$0xff]  ;;  %2040 = vmatpush1.bf16.msra.mxu0 %v2704_v34  ;;  %v3485_v34 = vld [vmem:[%s4130_s0] sm:$0xff] }
  0x66   : > { %v649_v32 = vld [vmem:[%s3295_s30 + $0x4c0] sm:$0xff]  ;;  %v2697_v36 = vcombine.high %v521_v30, %v525_v31  ;;  %2092 = vmatprep.subr.bf16.mxu1 %v2833_v29  ;;  %v2696_v46 = vcombine.low %v521_v30, %v525_v31  ;;  %v3471_v30 = vld [vmem:[%s4130_s0 + $0x58] sm:$0xff] }
  0x67   : > { %v653_v33 = vld [vmem:[%s3295_s30 + $0x4e0] sm:$0xff]  ;;  %2093 = vmatpush1.bf16.msra.mxu1 %v2832_v35  ;;  %v3476_v31 = vld [vmem:[%s4130_s0 + $0x78] sm:$0xff] }
  0x68   : > { %v3322_v37 = vld [vmem:[%s3295_s30 + $0x80] sm:$0xff]  ;;  %v2825_v39 = vcombine.high %v649_v32, %v653_v33  ;;  %2041 = vmatprep.subr.bf16.mxu0 %v2697_v36  ;;  %v2824_v50 = vcombine.low %v649_v32, %v653_v33  ;;  %v280_v32 = vadd.f32 %v3463_v27, %v3458_v26  ;;  %v292_v33 = vmul.f32 %v3458_v26, %v3458_v26 }
  0x69   : > { %v3325_v38 = vld [vmem:[%s3295_s30 + $0xa0] sm:$0xff]  ;;  %2042 = vmatpush1.bf16.msra.mxu0 %v2696_v46  ;;  %v296_v36 = vmul.f32 %v3463_v27, %v3463_v27 }
  0x6a   : > { %v3328_v40 = vld [vmem:[%s3295_s30 + $0x480] sm:$0xff]  ;;  %v2689_v51 = vcombine.high %v3322_v37, %v3325_v38  ;;  %2094 = vmatprep.subr.bf16.mxu1 %v2825_v39  ;;  %v2688_v56 = vcombine.low %v3322_v37, %v3325_v38  ;;  %v300_v37 = vmul.f32 %v3471_v30, %v3471_v30  ;;  %v3494_v38 = vld [vmem:[%s4130_s0 + $0x20] sm:$0xff] }
  0x6b   : > { %v3331_v41 = vld [vmem:[%s3295_s30 + $0x4a0] sm:$0xff]  ;;  %2095 = vmatpush1.bf16.msra.mxu1 %v2824_v50  ;;  %v304_v50 = vmul.f32 %v3476_v31, %v3476_v31 }
  0x6c   : > { %v3334_v42 = vld [vmem:[%s3295_s30 + $0x40] sm:$0xff]  ;;  %v2817_v55 = vcombine.high %v3328_v40, %v3331_v41  ;;  %v2816_v57 = vcombine.low %v3328_v40, %v3331_v41  ;;  %2043 = vmatprep.subr.bf16.mxu0 %v2689_v51  ;;  %v332_v51 = vadd.f32 %v296_v36, %v292_v33 }
  0x6d   : > { %v3337_v43 = vld [vmem:[%s3295_s30 + $0x60] sm:$0xff]  ;;  %2044 = vmatpush1.bf16.msra.mxu0 %v2688_v56  ;;  %v253_v56 = vadd.f32 %v3494_v38, %v3485_v34 }
  0x6e   : > { %v3340_v44 = vld [vmem:[%s3295_s30 + $0x440] sm:$0xff]  ;;  %v2681_v58 = vcombine.high %v3334_v42, %v3337_v43  ;;  %v2680_v62 = vcombine.low %v3334_v42, %v3337_v43  ;;  %2096 = vmatprep.subr.bf16.mxu1 %v2817_v55  ;;  %v281_v42 = vadd.f32 %v280_v32, %v3471_v30  ;;  %v3505_v43 = vld [vmem:[%s4130_s0 + $0x40] sm:$0xff] }
  0x6f   : > { %v3343_v45 = vld [vmem:[%s3295_s30 + $0x460] sm:$0xff]  ;;  %2097 = vmatpush1.bf16.msra.mxu1 %v2816_v57  ;;  %v3512_v55 = vld [vmem:[%s4130_s0 + $0x60] sm:$0xff]  ;;  %v254_v32 = vadd.f32 %v253_v56, %v3505_v43 }
  0x70   : > { %v3346_v47 = vld [vmem:[%s3295_s30] sm:$0xff]  ;;  %v2809_v61 = vcombine.high %v3340_v44, %v3343_v45  ;;  %v2808_v63 = vcombine.low %v3340_v44, %v3343_v45  ;;  %2045 = vmatprep.subr.bf16.mxu0 %v2681_v58  ;;  %v282_v58 = vadd.f32 %v281_v42, %v3476_v31  ;;  %v297_v44 = vmul.f32 %v3505_v43, %v3505_v43 }
  0x71   : > { %v3349_v48 = vld [vmem:[%s3295_s30 + $0x20] sm:$0xff]  ;;  %2046 = vmatpush1.bf16.msra.mxu0 %v2680_v62  ;;  %v301_v45 = vmul.f32 %v3512_v55, %v3512_v55 }
  0x72   : > { %v3352_v49 = vld [vmem:[%s3295_s30 + $0x400] sm:$0xff]  ;;  %v2673_v0 = vcombine.high %v3346_v47, %v3349_v48  ;;  %v2672_v4 = vcombine.low %v3346_v47, %v3349_v48  ;;  %2098 = vmatprep.subr.bf16.mxu1 %v2809_v61  ;;  %v289_v61 = vmul.f32 %v3485_v34, %v3485_v34  ;;  %v283_v36 = vrot.slane %v282_v58, 4 }
  0x73   : > { %v3357_v52 = vld [vmem:[%s3295_s30 + $0x420] sm:$0xff]  ;;  %2099 = vmatpush1.bf16.msra.mxu1 %v2808_v63 }
  0x74   : > { %v3360_v53 = vld [vmem:[%s3295_s30 + $0x3c0] sm:$0xff]  ;;  %v2801_v3 = vcombine.high %v3352_v49, %v3357_v52  ;;  %v2800_v5 = vcombine.low %v3352_v49, %v3357_v52  ;;  %2047 = vmatprep.subr.bf16.mxu0 %v2673_v0  ;;  %v284_v56 = vadd.f32 %v283_v36, %v282_v58  ;;  %v3577_v58 = vld [vmem:[%s4130_s0 + $0x50] sm:$0xff] }
  0x75   : > { %v3363_v54 = vld [vmem:[%s3295_s30 + $0x3e0] sm:$0xff]  ;;  %2048 = vmatpush1.bf16.msra.mxu0 %v2672_v4 }
  0x76   : > { %v3374_v59 = vld [vmem:[%s3295_s30 + $0x7c0] sm:$0xff]  ;;  %v2793_v6 = vcombine.high %v3360_v53, %v3363_v54  ;;  %v2792_v10 = vcombine.low %v3360_v53, %v3363_v54  ;;  %2100 = vmatprep.subr.bf16.mxu1 %v2801_v3  ;;  %v3548_v3 = vld [vmem:[%s4130_s0 + $0x10] sm:$0xff] }
  0x77   : > { %v3377_v60 = vld [vmem:[%s3295_s30 + $0x7e0] sm:$0xff]  ;;  %2101 = vmatpush1.bf16.msra.mxu1 %v2800_v5  ;;  %v285_v5 = vrot.slane %v284_v56, 2 }
  0x78   : > { %v3388_v1 = vld [vmem:[%s3295_s30 + $0x380] sm:$0xff]  ;;  %v2921_v9 = vcombine.high %v3374_v59, %v3377_v60  ;;  %v2920_v11 = vcombine.low %v3374_v59, %v3377_v60  ;;  %2049 = vmatprep.subr.bf16.mxu0 %v2793_v6 }
  0x79   : > { %v3391_v2 = vld [vmem:[%s3295_s30 + $0x3a0] sm:$0xff]  ;;  %2050 = vmatpush2.bf16.msra.mxu0 %v2792_v10 }
  0x7a   : > { %v3402_v7 = vld [vmem:[%s3295_s30 + $0x780] sm:$0xff]  ;;  %v2785_v14 = vcombine.high %v3388_v1, %v3391_v2  ;;  %v2784_v15 = vcombine.low %v3388_v1, %v3391_v2  ;;  %2102 = vmatprep.subr.bf16.mxu1 %v2921_v9 }
  0x7b   : > { %v3405_v8 = vld [vmem:[%s3295_s30 + $0x7a0] sm:$0xff]  ;;  %2103 = vmatpush2.bf16.msra.mxu1 %v2920_v11 }
  0x7c   : > { %v3416_v12 = vld [vmem:[%s4130_s0 + $0x8] sm:$0xff]  ;;  %v2913_v21 = vcombine.high %v3402_v7, %v3405_v8  ;;  %v2912_v22 = vcombine.low %v3402_v7, %v3405_v8  ;;  %2051 = vmatprep.subr.bf16.mxu0 %v2785_v14  ;;  %v291_v7 = vmul.f32 %v3548_v3, %v3548_v3 }
  0x7d   : > { %v3421_v13 = vld [vmem:[%s4130_s0 + $0x28] sm:$0xff]  ;;  %v290_v20 = vmul.f32 %v3416_v12, %v3416_v12  ;;  %2052 = vmatpush2.bf16.msra.mxu0 %v2784_v15 }
  0x7e   : > { %v3428_v16 = vld [vmem:[%s3295_s30 + $0x340] sm:$0xff]  ;;  %v262_v19 = vadd.f32 %v3421_v13, %v3416_v12  ;;  %v294_v24 = vmul.f32 %v3421_v13, %v3421_v13  ;;  %2104 = vmatprep.subr.bf16.mxu1 %v2913_v21 }
  0x7f   : > { %v3433_v17 = vld [vmem:[%s4130_s0 + $0x48] sm:$0xff]  ;;  %2105 = vmatpush2.bf16.msra.mxu1 %v2912_v22 }
  0x80   : > { %v3438_v18 = vld [vmem:[%s4130_s0 + $0x68] sm:$0xff]  ;;  %v298_v25 = vmul.f32 %v3433_v17, %v3433_v17  ;;  %v263_v28 = vadd.f32 %v262_v19, %v3433_v17  ;;  %v314_v35 = vadd.f32 %v294_v24, %v290_v20  ;;  %v293_v19 = vmul.f32 %v3494_v38, %v3494_v38 }
  0x81   : > { %v3449_v23 = vld [vmem:[%s3295_s30 + $0x360] sm:$0xff]  ;;  %v302_v29 = vmul.f32 %v3438_v18, %v3438_v18 }
  0x82   : > { %v2777_v39 = vcombine.high %v3428_v16, %v3449_v23  ;;  %v2776_v40 = vcombine.low %v3428_v16, %v3449_v23  ;;  %v264_v41 = vadd.f32 %v263_v28, %v3438_v18  ;;  %v315_v46 = vadd.f32 %v314_v35, %v298_v25  ;;  %v3525_v20 = vld [vmem:[%s3295_s30 + $0x740] sm:$0xff] }
  0x83   : > { %v3528_v24 = vld [vmem:[%s3295_s30 + $0x760] sm:$0xff]  ;;  %v399_v25 = vlaneseq  ;;  %v333_v28 = vadd.f32 %v332_v51, %v300_v37  ;;  %v255_v37 = vadd.f32 %v254_v32, %v3512_v55  ;;  %v305_v42 = vadd.f32 %v293_v19, %v289_v61 }
  0x84   : > { %v265_v57 = vrot.slane %v264_v41, 4  ;;  %v316_v62 = vadd.f32 %v315_v46, %v302_v29  ;;  %v3535_v33 = vld [vmem:[%s3295_s30 + $0x300] sm:$0xff]  ;;  %v2905_v46 = vcombine.high %v3525_v20, %v3528_v24  ;;  %2053 = vmatprep.subr.bf16.mxu0 %v2777_v39 }
  0x85   : > { %v3542_v63 = vld [vmem:[%s3295_s30 + $0x320] sm:$0xff]  ;;  %v334_v29 = vadd.f32 %v333_v28, %v304_v50  ;;  %v2904_v50 = vcombine.low %v3525_v20, %v3528_v24  ;;  %v256_v61 = vrot.slane %v255_v37, 4  ;;  %v306_v19 = vadd.f32 %v305_v42, %v297_v44  ;;  %v3589_v44 = vld [vmem:[%s4130_s0 + $0x70] sm:$0xff]  ;;  %2054 = vmatpush2.bf16.msra.mxu0 %v2776_v40 }
  0x86   : > { %v266_v35 = vadd.f32 %v265_v57, %v264_v41  ;;  %v317_v0 = vrot.slane %v316_v62, 4  ;;  %v3553_v41 = vld [vmem:[%s4130_s0 + $0x30] sm:$0xff]  ;;  %v3569_v57 = vld [vmem:[%s3295_s30 + $0x700] sm:$0xff]  ;;  %v2769_v49 = vcombine.high %v3535_v33, %v3542_v63  ;;  %v2768_v54 = vcombine.low %v3535_v33, %v3542_v63  ;;  %2106 = vmatprep.subr.bf16.mxu1 %v2905_v46 }
  0x87   : > { %v3572_v47 = vld [vmem:[%s3295_s30 + $0x720] sm:$0xff]  ;;  %v335_v4 = vrot.slane %v334_v29, 4  ;;  %v271_v6 = vadd.f32 %v3553_v41, %v3548_v3  ;;  %v257_v32 = vadd.f32 %v256_v61, %v255_v37  ;;  %v307_v36 = vadd.f32 %v306_v19, %v301_v45  ;;  %2107 = vmatpush2.bf16.msra.mxu1 %v2904_v50 }
  0x88   : > { %v267_v51 = vrot.slane %v266_v35, 2  ;;  %v318_v48 = vadd.f32 %v317_v0, %v316_v62  ;;  %v2897_v9 = vcombine.high %v3569_v57, %v3572_v47  ;;  %v286_v0 = vadd.f32 %v285_v5, %v284_v56  ;;  %v589_v1 = vld [vmem:[%s3295_s30 + $0x2e0] sm:$0xff]  ;;  %2055 = vmatprep.subr.bf16.mxu0 %v2769_v49 }
  0x89   : > { %v336_v28 = vadd.f32 %v335_v4, %v334_v29  ;;  %v272_v42 = vadd.f32 %v271_v6, %v3577_v58  ;;  %v258_v37 = vrot.slane %v257_v32, 2  ;;  %v308_v53 = vrot.slane %v307_v36, 4  ;;  %v585_v4 = vld [vmem:[%s3295_s30 + $0x2c0] sm:$0xff]  ;;  %2056 = vmatpush2.bf16.msra.mxu0 %v2768_v54 }
  0x8a   : > { %v268_v52 = vadd.f32 %v267_v51, %v266_v35  ;;  %v319_v62 = vrot.slane %v318_v48, 2  ;;  %v287_v59 = vrot.slane %v286_v0, 1  ;;  %v2896_v21 = vcombine.low %v3569_v57, %v3572_v47  ;;  %v713_v22 = vld [vmem:[%s3295_s30 + $0x6c0] sm:$0xff]  ;;  %2108 = vmatprep.subr.bf16.mxu1 %v2897_v9 }
  0x8b   : > { %v337_v29 = vrot.slane %v336_v28, 2  ;;  %v273_v60 = vadd.f32 %v272_v42, %v3589_v44  ;;  %v259_v14 = vadd.f32 %v258_v37, %v257_v32  ;;  %v309_v56 = vadd.f32 %v308_v53, %v307_v36  ;;  %v717_v39 = vld [vmem:[%s3295_s30 + $0x6e0] sm:$0xff] }
  0x8c   : > { %v269_v35 = vrot.slane %v268_v52, 1  ;;  %v320_v45 = vadd.f32 %v319_v62, %v318_v48  ;;  %v288_v33 = vadd.f32 %v287_v59, %v286_v0  ;;  %v295_v8 = vmul.f32 %v3553_v41, %v3553_v41  ;;  %v577_v40 = vld [vmem:[%s3295_s30 + $0x280] sm:$0xff]  ;;  %2109 = vmatpush2.bf16.msra.mxu1 %v2896_v21 }
  0x8d   : > { %v338_v51 = vadd.f32 %v337_v29, %v336_v28  ;;  %v274_v63 = vrot.slane %v273_v60, 4  ;;  %v260_v61 = vrot.slane %v259_v14, 1  ;;  %v310_v57 = vrot.slane %v309_v56, 2  ;;  %v709_v59 = vld [vmem:[%s3295_s30 + $0x6a0] sm:$0xff] }
  0x8e   : > { %v270_v10 = vadd.f32 %v269_v35, %v268_v52  ;;  %v321_v11 = vrot.slane %v320_v45, 1  ;;  %v3626_v19 = vmul.f32 0.03125, %v288_v33  ;;  %v2761_v46 = vcombine.high %v585_v4, %v589_v1  ;;  %v697_v54 = vld [vmem:[%s3295_s30 + $0x640] sm:$0xff] }
  0x8f   : > { %v339_v15 = vrot.slane %v338_v51, 1  ;;  %v261_v6 = vadd.f32 %v260_v61, %v259_v14  ;;  %v311_v62 = vadd.f32 %v310_v57, %v309_v56  ;;  %v275_v32 = vadd.f32 %v274_v63, %v273_v60 }
  0x90   : > { %v3614_v48 = vmul.f32 0.03125, %v270_v10  ;;  %v322_v2 = vadd.f32 %v321_v11, %v320_v45  ;;  %v352_v28 = vmul.f32 %v3626_v19, %v3626_v19  ;;  %v299_v36 = vmul.f32 %v3577_v58, %v3577_v58  ;;  %v581_v45 = vld [vmem:[%s3295_s30 + $0x2a0] sm:$0xff]  ;;  %2057 = vmatprep.subr.bf16.mxu0 %v2761_v46 }
  0x91   : > { %v340_v5 = vadd.f32 %v339_v15, %v338_v51  ;;  %v312_v42 = vrot.slane %v311_v62, 1  ;;  %v3644_v16 = vmul.f32 0.03125, %v261_v6  ;;  %v2889_v23 = vcombine.high %v713_v22, %v717_v39  ;;  %v705_v10 = vld [vmem:[%s3295_s30 + $0x680] sm:$0xff] }
  0x92   : > { %v350_v47 = vmul.f32 %v3614_v48, %v3614_v48  ;;  %v346_v52 = vmul.f32 0.03125, %v322_v2  ;;  %v276_v29 = vrot.slane %v275_v32, 2  ;;  %v303_v37 = vmul.f32 %v3589_v44, %v3589_v44  ;;  %v569_v2 = vld [vmem:[%s3295_s30 + $0x240] sm:$0xff] }
  0x93   : > { %v348_v0 = vmul.f32 0.03125, %v340_v5  ;;  %v323_v53 = vadd.f32 %v295_v8, %v291_v7  ;;  %v313_v24 = vadd.f32 %v312_v42, %v311_v62  ;;  %v349_v50 = vmul.f32 %v3644_v16, %v3644_v16  ;;  %2110 = vmatprep.subr.bf16.mxu1 %v2889_v23  ;;  %v573_v15 = vld [vmem:[%s3295_s30 + $0x260] sm:$0xff] }
  0x94   : > { %v354_v35 = vsub.f32 %v346_v52, %v350_v47  ;;  %v2760_v49 = vcombine.low %v585_v4, %v589_v1  ;;  %v2888_v9 = vcombine.low %v713_v22, %v717_v39  ;;  %v277_v11 = vadd.f32 %v276_v29, %v275_v32  ;;  %v701_v4 = vld [vmem:[%s3295_s30 + $0x660] sm:$0xff] }
  0x95   : > { %v356_v20 = vsub.f32 %v348_v0, %v352_v28  ;;  %v324_v51 = vadd.f32 %v323_v53, %v299_v36  ;;  %v2753_v14 = vcombine.high %v577_v40, %v581_v45  ;;  %v345_v33 = vmul.f32 0.03125, %v313_v24  ;;  %v561_v5 = vld [vmem:[%s3295_s30 + $0x200] sm:$0xff]  ;;  %v3685_v24 = vld [vmem:[%s3295_s30 + $0x5e8] sm:$0xff] }
  0x96   : > { %v374_v60 = vadd.f32 1e-05, %v354_v35  ;;  %v2881_v63 = vcombine.high %v705_v10, %v709_v59  ;;  %v278_v61 = vrot.slane %v277_v11, 1  ;;  %2058 = vmatpush2.bf16.msra.mxu0 %v2760_v49  ;;  %v2752_v21 = vcombine.low %v577_v40, %v581_v45  ;;  %2111 = vmatpush2.bf16.msra.mxu1 %v2888_v9  ;;  %v565_v6 = vld [vmem:[%s3295_s30 + $0x220] sm:$0xff]  ;;  %v3666_v40 = vld [vmem:[#allocation2] sm:$0xf] }
  0x97   : > { %v376_v56 = vadd.f32 1e-05, %v356_v20  ;;  %v325_v57 = vadd.f32 %v324_v51, %v303_v37  ;;  %v353_v1 = vsub.f32 %v345_v33, %v349_v50  ;;  %2059 = vmatprep.subr.bf16.mxu0 %v2753_v14  ;;  %v2880_v7 = vcombine.low %v705_v10, %v709_v59  ;;  %v689_v28 = vld [vmem:[%s3295_s30 + $0x600] sm:$0xff]  ;;  %v3671_v37 = vld [vmem:[%s3295_s30 + $0x1c8] sm:$0xff]  ;;  %v3687_v9 = vld [vmem:[#allocation4] sm:$0xf] }
  0x98   : > { %2998 = vrsqrt.f32 %v374_v60  ;;  %v2745_v8 = vcombine.high %v569_v2, %v573_v15  ;;  %v3659_v22 = vshrl.u32 %v399_v25, 7  ;;  %2112 = vmatprep.subr.bf16.mxu1 %v2881_v63  ;;  %v2873_v52 = vcombine.high %v697_v54, %v701_v4  ;;  %v693_v32 = vld [vmem:[%s3295_s30 + $0x620] sm:$0xff]  ;;  %v3679_v60 = vld [vmem:[%s3295_s30 + $0x1e8] sm:$0xff] }
  0x99   : > { %3000 = vrsqrt.f32 %v376_v56  ;;  %v326_v47 = vrot.slane %v325_v57, 4  ;;  %v373_v39 = vadd.f32 1e-05, %v353_v1  ;;  %v279_v62 = vadd.f32 %v278_v61, %v277_v11  ;;  %v3682_v20 = vld [vmem:[%s3295_s30 + $0x5c8] sm:$0xff] }
  0x9a   : > { %2060 = vmatpush2.bf16.msra.mxu0 %v2752_v21  ;;  %v2744_v36 = vcombine.low %v569_v2, %v573_v15  ;;  %2113 = vmatpush2.bf16.msra.mxu1 %v2880_v7  ;;  %v2872_v25 = vcombine.low %v697_v54, %v701_v4  ;;  %v2737_v0 = vcombine.high %v561_v5, %v565_v6  ;;  %v405_v42 = vsub.s32 1, %v3659_v22 }
  0x9b   : > { %v327_v46 = vadd.f32 %v326_v47, %v325_v57  ;;  %3002 = vrsqrt.f32 %v373_v39  ;;  %2061 = vmatprep.subr.bf16.mxu0 %v2745_v8  ;;  %2114 = vmatprep.subr.bf16.mxu1 %v2873_v52  ;;  %v2865_v23 = vcombine.high %v689_v28, %v693_v32  ;;  %v3668_v29 = vmul.f32 0.03125, %v279_v62 }
  0x9c   : > { %v358_v53 = vsub.f32 %v3416_v12, %v3614_v48  ;;  %v362_v10 = vsub.f32 %v3421_v13, %v3614_v48  ;;  %v413_v59 = vsub.s32 3, %v3659_v22  ;;  %v2736_v50 = vcombine.low %v561_v5, %v565_v6 }
  0x9d   : > { %v328_v35 = vrot.slane %v327_v46, 2  ;;  %v2864_v49 = vcombine.low %v689_v28, %v693_v32  ;;  %v3690_v12 = vrot.slane %v3666_v40, %v405_v42  ;;  %v360_v13 = vsub.f32 %v3458_v26, %v3626_v19 }
  0x9e   : > { %2062 = vmatpush2.bf16.msra.mxu0 %v2744_v36  ;;  %2115 = vmatpush2.bf16.msra.mxu1 %v2872_v25  ;;  %v364_v51 = vsub.f32 %v3463_v27, %v3626_v19  ;;  %v351_v33 = vmul.f32 %v3668_v29, %v3668_v29  ;;  %v2731_v63 = vcombine.high %v3671_v37, %v3679_v60  ;;  %v401_v4 = vsub.s32 0, %v3659_v22 }
  0x9f   : > { %v329_v45 = vadd.f32 %v328_v35, %v327_v46  ;;  %2063 = vmatprep.subr.bf16.mxu0 %v2737_v0  ;;  %2116 = vmatprep.subr.bf16.mxu1 %v2865_v23  ;;  %v2859_v2 = vcombine.high %v3682_v20, %v3685_v24  ;;  %v3707_v61 = vrot.slane %v3687_v9, %v405_v42  ;;  %v409_v35 = vsub.s32 2, %v3659_v22 }
  0xa0   : > { %v3710_v27 = vrot.slane %v3666_v40, %v413_v59  ;;  %v3713_v54 = vrot.slane %v3687_v9, %v413_v59  ;;  %v357_v39 = vsub.f32 %v3485_v34, %v3644_v16  ;;  %v361_v52 = vsub.f32 %v3494_v38, %v3644_v16 }
  0xa1   : > { %v330_v11 = vrot.slane %v329_v45, 1  ;;  %v402_v36 = vrot.slane %v3666_v40, %v401_v4 }
  0xa2   : > { %2064 = vmatpush2.bf16.msra.mxu0 %v2736_v50  ;;  %2117 = vmatpush2.bf16.msra.mxu1 %v2864_v49  ;;  %v546_v49 = vld [vmem:[%s3295_s30 + $0x188] sm:$0xff] }
  0xa3   : > { %v331_v56 = vadd.f32 %v330_v11, %v329_v45  ;;  %2139 = vmatprep.subr.bf16.mxu0 %v2731_v63  ;;  %2192 = vmatprep.subr.bf16.mxu1 %v2859_v2  ;;  %v550_v11 = vld [vmem:[%s3295_s30 + $0x1a8] sm:$0xff] }
  0xa5   : > { %v3696_v14 = vpop.eup %2998  ;;  %v347_v1 = vmul.f32 0.03125, %v331_v56  ;;  %v3739_v56 = vrot.slane %v3666_v40, %v409_v35  ;;  %v372_v40 = vsub.f32 %v3476_v31, %v3626_v19  ;;  %v359_v31 = vsub.f32 %v3548_v3, %v3668_v29 }
  0xa6   : > { %v382_v15 = vmul.f32 %v3696_v14, %v358_v53  ;;  %v386_v26 = vmul.f32 %v3696_v14, %v362_v10  ;;  %v3001_v57 = vpop.eup %3000  ;;  %v440_v53 = vrot.slane %v3687_v9, %v401_v4  ;;  %v370_v4 = vsub.f32 %v3438_v18, %v3614_v48 }
  0xa7   : > { %v384_v7 = vmul.f32 %v3001_v57, %v360_v13  ;;  %v388_v8 = vmul.f32 %v3001_v57, %v364_v51  ;;  %v355_v5 = vsub.f32 %v347_v1, %v351_v33  ;;  %v2730_v33 = vcombine.low %v3671_v37, %v3679_v60 }
  0xa8   : > { %v420_v21 = vmul.f32 %v3690_v12, %v382_v15  ;;  %v424_v47 = vmul.f32 %v3690_v12, %v386_v26  ;;  %v3003_v32 = vpop.eup %3002  ;;  %v2723_v15 = vcombine.high %v546_v49, %v550_v11  ;;  %v366_v26 = vsub.f32 %v3433_v17, %v3614_v48 }
  0xa9   : > { %v422_v46 = vmul.f32 %v3710_v27, %v384_v7  ;;  %v426_v28 = vmul.f32 %v3710_v27, %v388_v8  ;;  %v375_v34 = vadd.f32 1e-05, %v355_v5  ;;  %v381_v23 = vmul.f32 %v3003_v32, %v357_v39  ;;  %v538_v39 = vld [vmem:[%s3295_s30 + $0x148] sm:$0xff] }
  0xaa   : > { %v458_v6 = vadd.f32 %v3707_v61, %v420_v21  ;;  %v462_v62 = vadd.f32 %v3707_v61, %v424_v47  ;;  %v385_v45 = vmul.f32 %v3003_v32, %v361_v52  ;;  %v368_v1 = vsub.f32 %v3471_v30, %v3626_v19  ;;  %v542_v52 = vld [vmem:[%s3295_s30 + $0x168] sm:$0xff] }
  0xab   : > { %v460_v0 = vadd.f32 %v3713_v54, %v422_v46  ;;  %v464_v42 = vadd.f32 %v3713_v54, %v426_v28  ;;  %3004 = vrsqrt.f32 %v375_v34  ;;  %v419_v13 = vmul.f32 %v402_v36, %v381_v23 }
  0xac   : > { %v474_v38 = vmax.f32 %v458_v6, 0.0  ;;  %v478_v25 = vmax.f32 %v462_v62, 0.0  ;;  %v423_v51 = vmul.f32 %v402_v36, %v385_v45  ;;  %v365_v37 = vsub.f32 %v3505_v43, %v3644_v16 }
  0xad   : > { %v476_v59 = vmax.f32 %v460_v0, 0.0  ;;  %v480_v50 = vmax.f32 %v464_v42, 0.0  ;;  %v457_v63 = vadd.f32 %v440_v53, %v419_v13  ;;  %v390_v17 = vmul.f32 %v3696_v14, %v366_v26  ;;  %v522_v13 = vld [vmem:[%s3295_s30 + $0xc8] sm:$0xff] }
  0xae   : > { %v3731_v10 = vpack.c.bf16 %v478_v25, %v474_v38  ;;  %v461_v2 = vadd.f32 %v440_v53, %v423_v51  ;;  %v369_v47 = vsub.f32 %v3512_v55, %v3644_v16  ;;  %v394_v18 = vmul.f32 %v3696_v14, %v370_v4  ;;  %v530_v38 = vld [vmem:[%s3295_s30 + $0x108] sm:$0xff] }
  0xaf   : > { %v3736_v22 = vpack.c.bf16 %v480_v50, %v476_v59  ;;  %v473_v60 = vmax.f32 %v457_v63, 0.0  ;;  %v392_v48 = vmul.f32 %v3001_v57, %v368_v1  ;;  %v396_v7 = vmul.f32 %v3001_v57, %v372_v40  ;;  %v674_v1 = vld [vmem:[%s3295_s30 + $0x588] sm:$0xff] }
  0xb0   : > { %2065 = vmatprep.mubr.bf16.mxu0 %v3731_v10  ;;  %v477_v21 = vmax.f32 %v461_v2, 0.0  ;;  %v389_v8 = vmul.f32 %v3003_v32, %v365_v37  ;;  %v428_v19 = vmul.f32 %v3690_v12, %v390_v17  ;;  %v393_v43 = vmul.f32 %v3003_v32, %v369_v47  ;;  %v678_v40 = vld [vmem:[%s3295_s30 + $0x5a8] sm:$0xff] }
  0xb1   : > { %2118 = vmatprep.mubr.bf16.mxu1 %v3736_v22  ;;  %v432_v5 = vmul.f32 %v3690_v12, %v394_v18  ;;  %v430_v6 = vmul.f32 %v3710_v27, %v392_v48  ;;  %v434_v55 = vmul.f32 %v3710_v27, %v396_v7  ;;  %v363_v14 = vsub.f32 %v3553_v41, %v3668_v29  ;;  %v534_v41 = vld [vmem:[%s3295_s30 + $0x128] sm:$0xff] }
  0xb2   : > { %v3758_v30 = vpack.c.bf16 %v477_v21, %v473_v60  ;;  %v427_v16 = vmul.f32 %v402_v36, %v389_v8  ;;  %v466_v3 = vadd.f32 %v3707_v61, %v428_v19  ;;  %v431_v57 = vmul.f32 %v402_v36, %v393_v43  ;;  %v514_v48 = vld [vmem:[%s3295_s30 + $0x88] sm:$0xff] }
  0xb3   : > { %v367_v62 = vsub.f32 %v3577_v58, %v3668_v29  ;;  %v2722_v12 = vcombine.low %v546_v49, %v550_v11  ;;  %v470_v46 = vadd.f32 %v3707_v61, %v432_v5  ;;  %v371_v27 = vsub.f32 %v3589_v44, %v3668_v29  ;;  %v518_v7 = vld [vmem:[%s3295_s30 + $0xa8] sm:$0xff] }
  0xb4   : > { %2066 = vmatmul.mubr.bf16.vlgmr.msra.gmra.mxu0 %v3758_v30  ;;  %v465_v28 = vadd.f32 %v440_v53, %v427_v16  ;;  %v448_v32 = vrot.slane %v3687_v9, %v409_v35  ;;  %v2715_v34 = vcombine.high %v538_v39, %v542_v52  ;;  %v482_v25 = vmax.f32 %v466_v3, 0.0  ;;  %v666_v43 = vld [vmem:[%s3295_s30 + $0x548] sm:$0xff] }
  0xb5   : > { %2140 = vmatpush1.bf16.msra.mxu0 %v2730_v33  ;;  %v469_v0 = vadd.f32 %v440_v53, %v431_v57  ;;  %v486_v42 = vmax.f32 %v470_v46, 0.0  ;;  %v468_v58 = vadd.f32 %v3713_v54, %v430_v6  ;;  %v472_v61 = vadd.f32 %v3713_v54, %v434_v55  ;;  %v526_v54 = vld [vmem:[%s3295_s30 + $0xe8] sm:$0xff] }
  0xb6   : > { %2141 = vmatprep.subr.bf16.mxu0 %v2723_v15  ;;  %v481_v23 = vmax.f32 %v465_v28, 0.0  ;;  %v2714_v9 = vcombine.low %v538_v39, %v542_v52  ;;  %v2707_v35 = vcombine.high %v530_v38, %v534_v41  ;;  %v2706_v37 = vcombine.low %v530_v38, %v534_v41  ;;  %v670_v39 = vld [vmem:[%s3295_s30 + $0x568] sm:$0xff] }
  0xb7   : > { %v485_v44 = vmax.f32 %v469_v0, 0.0  ;;  %v3782_v50 = vpack.c.bf16 %v486_v42, %v482_v25  ;;  %v484_v63 = vmax.f32 %v468_v58, 0.0  ;;  %v488_v2 = vmax.f32 %v472_v61, 0.0  ;;  %v506_v55 = vld [vmem:[%s3295_s30 + $0x48] sm:$0xff] }
  0xb8   : > { %v3005_v36 = vpop.eup %3004  ;;  %v2699_v60 = vcombine.high %v522_v13, %v526_v54  ;;  %v2851_v19 = vcombine.high %v674_v1, %v678_v40  ;;  %v2698_v52 = vcombine.low %v522_v13, %v526_v54  ;;  %v2691_v5 = vcombine.high %v514_v48, %v518_v7  ;;  %v510_v16 = vld [vmem:[%s3295_s30 + $0x68] sm:$0xff] }
  0xb9   : > { %v383_v45 = vmul.f32 %v3005_v36, %v359_v31  ;;  %v387_v59 = vmul.f32 %v3005_v36, %v363_v14  ;;  %v391_v29 = vmul.f32 %v3005_v36, %v367_v62  ;;  %2142 = vmatpush1.bf16.msra.mxu0 %v2722_v12  ;;  %v395_v53 = vmul.f32 %v3005_v36, %v371_v27  ;;  %v658_v3 = vld [vmem:[%s3295_s30 + $0x508] sm:$0xff] }
  0xba   : > { %2143 = vmatprep.subr.bf16.mxu0 %v2715_v34  ;;  %v3788_v51 = vpack.c.bf16 %v485_v44, %v481_v23  ;;  %2075 = vmatprep.mubr.bf16.mxu0 %v3782_v50  ;;  %v3801_v8 = vpack.c.bf16 %v488_v2, %v484_v63  ;;  %v2850_v6 = vcombine.low %v674_v1, %v678_v40  ;;  %v662_v57 = vld [vmem:[%s3295_s30 + $0x528] sm:$0xff] }
  0xbb   : > { %v421_v49 = vmul.f32 %v3739_v56, %v383_v45  ;;  %v425_v11 = vmul.f32 %v3739_v56, %v387_v59  ;;  %v429_v33 = vmul.f32 %v3739_v56, %v391_v29  ;;  %v433_v15 = vmul.f32 %v3739_v56, %v395_v53  ;;  %v498_v27 = vld [vmem:[%s3295_s30 + $0x8] sm:$0xff] }
  0xbc   : > { %2076 = vmatmul.mubr.bf16.gmra.mxu0 %v3788_v51  ;;  %v2858_v56 = vcombine.low %v3682_v20, %v3685_v24  ;;  %v2843_v14 = vcombine.high %v666_v43, %v670_v39  ;;  %v2690_v62 = vcombine.low %v514_v48, %v518_v7  ;;  %v2683_v12 = vcombine.high %v506_v55, %v510_v16  ;;  %v650_v38 = vld [vmem:[%s3295_s30 + $0x4c8] sm:$0xff] }
  0xbd   : > { %v459_v26 = vadd.f32 %v448_v32, %v421_v49  ;;  %v463_v4 = vadd.f32 %v448_v32, %v425_v11  ;;  %2144 = vmatpush1.bf16.msra.mxu0 %v2714_v9  ;;  %v467_v47 = vadd.f32 %v448_v32, %v429_v33  ;;  %v471_v18 = vadd.f32 %v448_v32, %v433_v15  ;;  %v502_v32 = vld [vmem:[%s3295_s30 + $0x28] sm:$0xff] }
  0xbe   : > { %2145 = vmatprep.subr.bf16.mxu0 %v2707_v35  ;;  %2171 = vmatprep.mubr.bf16.mxu0 %v3731_v10  ;;  %v2842_v28 = vcombine.low %v666_v43, %v670_v39  ;;  %v2835_v34 = vcombine.high %v658_v3, %v662_v57  ;;  %v654_v41 = vld [vmem:[%s3295_s30 + $0x4e8] sm:$0xff]  ;;  %v2682_v25 = vcombine.low %v506_v55, %v510_v16 }
  0xbf   : > { %v475_v21 = vmax.f32 %v459_v26, 0.0  ;;  %v479_v17 = vmax.f32 %v463_v4, 0.0  ;;  %v483_v20 = vmax.f32 %v467_v47, 0.0  ;;  %v487_v24 = vmax.f32 %v471_v18, 0.0  ;;  %v618_v42 = vld [vmem:[%s3295_s30 + $0x3c8] sm:$0xff] }
  0xc0   : > { %v2675_v0 = vcombine.high %v498_v27, %v502_v32  ;;  %v2834_v36 = vcombine.low %v658_v3, %v662_v57  ;;  %v622_v58 = vld [vmem:[%s3295_s30 + $0x3e8] sm:$0xff]  ;;  %v2827_v61 = vcombine.high %v650_v38, %v654_v41  ;;  %v2674_v59 = vcombine.low %v498_v27, %v502_v32 }
  0xc1   : > { %v3803_v31 = vpack.c.bf16 %v479_v17, %v475_v21  ;;  %2146 = vmatpush1.bf16.msra.mxu0 %v2706_v37  ;;  %v3813_v46 = vpack.c.bf16 %v487_v24, %v483_v20  ;;  %v642_v23 = vld [vmem:[%s3295_s30 + $0x488] sm:$0xff]  ;;  %v2795_v44 = vcombine.high %v618_v42, %v622_v58  ;;  %v2826_v29 = vcombine.low %v650_v38, %v654_v41 }
  0xc2   : > { %2147 = vmatprep.subr.bf16.mxu0 %v2699_v60  ;;  %v646_v45 = vld [vmem:[%s3295_s30 + $0x4a8] sm:$0xff]  ;;  %v2794_v13 = vcombine.low %v618_v42, %v622_v58 }
  0xc3   : > { %2119 = vmatmul.mubr.bf16.vlgmr.msra.gmra.mxu1 %v3803_v31  ;;  %v610_v9 = vld [vmem:[%s3295_s30 + $0x388] sm:$0xff]  ;;  %v2819_v53 = vcombine.high %v642_v23, %v646_v45  ;;  %v2818_v33 = vcombine.low %v642_v23, %v646_v45 }
  0xc4   : > { %2193 = vmatpush1.bf16.msra.mxu1 %v2858_v56  ;;  %2128 = vmatprep.mubr.bf16.mxu1 %v3801_v8  ;;  %v614_v35 = vld [vmem:[%s3295_s30 + $0x3a8] sm:$0xff] }
  0xc5   : > { %2194 = vmatprep.subr.bf16.mxu1 %v2851_v19  ;;  %2148 = vmatpush1.bf16.msra.mxu0 %v2698_v52  ;;  %v634_v49 = vld [vmem:[%s3295_s30 + $0x448] sm:$0xff]  ;;  %v2787_v54 = vcombine.high %v610_v9, %v614_v35  ;;  %v2786_v1 = vcombine.low %v610_v9, %v614_v35  ;;  %v555_v9 = vld [vmem:[%s3295_s30 + $0x1d0] sm:$0xff] }
  0xc6   : > { %2149 = vmatprep.subr.bf16.mxu0 %v2691_v5  ;;  %v638_v11 = vld [vmem:[%s3295_s30 + $0x468] sm:$0xff]  ;;  %v559_v35 = vld [vmem:[%s3295_s30 + $0x1f0] sm:$0xff] }
  0xc7   : > { %v602_v63 = vld [vmem:[%s3295_s30 + $0x348] sm:$0xff]  ;;  %v2811_v15 = vcombine.high %v634_v49, %v638_v11  ;;  %v2810_v37 = vcombine.low %v634_v49, %v638_v11 }
  0xc8   : > { %2195 = vmatpush1.bf16.msra.mxu1 %v2850_v6  ;;  %v606_v2 = vld [vmem:[%s3295_s30 + $0x368] sm:$0xff] }
  0xc9   : > { %2196 = vmatprep.subr.bf16.mxu1 %v2843_v14  ;;  %2150 = vmatpush1.bf16.msra.mxu0 %v2690_v62  ;;  %v626_v26 = vld [vmem:[%s3295_s30 + $0x408] sm:$0xff]  ;;  %v2779_v40 = vcombine.high %v602_v63, %v606_v2  ;;  %v2778_v56 = vcombine.low %v602_v63, %v606_v2  ;;  %v547_v63 = vld [vmem:[%s3295_s30 + $0x190] sm:$0xff] }
  0xca   : > { %2151 = vmatprep.subr.bf16.mxu0 %v2683_v12  ;;  %v630_v4 = vld [vmem:[%s3295_s30 + $0x428] sm:$0xff]  ;;  %v551_v2 = vld [vmem:[%s3295_s30 + $0x1b0] sm:$0xff] }
  0xcb   : > { %2129 = vmatmul.mubr.bf16.gmra.mxu1 %v3813_v46  ;;  %v594_v60 = vld [vmem:[%s3295_s30 + $0x308] sm:$0xff]  ;;  %v2803_v17 = vcombine.high %v626_v26, %v630_v4  ;;  %v2802_v7 = vcombine.low %v626_v26, %v630_v4 }
  0xcc   : > { %2197 = vmatpush1.bf16.msra.mxu1 %v2842_v28  ;;  %2224 = vmatprep.mubr.bf16.mxu1 %v3736_v22  ;;  %v598_v21 = vld [vmem:[%s3295_s30 + $0x328] sm:$0xff] }
  0xcd   : > { %2198 = vmatprep.subr.bf16.mxu1 %v2835_v34  ;;  %2152 = vmatpush1.bf16.msra.mxu0 %v2682_v25  ;;  %v746_v47 = vld [vmem:[%s3295_s30 + $0x7c8] sm:$0xff]  ;;  %v2771_v48 = vcombine.high %v594_v60, %v598_v21  ;;  %v2770_v20 = vcombine.low %v594_v60, %v598_v21  ;;  %v539_v60 = vld [vmem:[%s3295_s30 + $0x150] sm:$0xff] }
  0xce   : > { %2153 = vmatprep.subr.bf16.mxu0 %v2675_v0  ;;  %v750_v18 = vld [vmem:[%s3295_s30 + $0x7e8] sm:$0xff]  ;;  %v543_v21 = vld [vmem:[%s3295_s30 + $0x170] sm:$0xff] }
  0xcf   : > { %v586_v19 = vld [vmem:[%s3295_s30 + $0x2c8] sm:$0xff]  ;;  %v2923_v39 = vcombine.high %v746_v47, %v750_v18  ;;  %v2922_v6 = vcombine.low %v746_v47, %v750_v18 }
  0xd0   : > { %2199 = vmatpush1.bf16.msra.mxu1 %v2834_v36  ;;  %v590_v43 = vld [vmem:[%s3295_s30 + $0x2e8] sm:$0xff] }
  0xd1   : > { %2200 = vmatprep.subr.bf16.mxu1 %v2827_v61  ;;  %2154 = vmatpush1.bf16.msra.mxu0 %v2674_v59  ;;  %v738_v52 = vld [vmem:[%s3295_s30 + $0x788] sm:$0xff]  ;;  %v2763_v24 = vcombine.high %v586_v19, %v590_v43  ;;  %v2762_v62 = vcombine.low %v586_v19, %v590_v43  ;;  %v531_v19 = vld [vmem:[%s3295_s30 + $0x110] sm:$0xff] }
  0xd2   : > { %2155 = vmatprep.subr.bf16.mxu0 %v2795_v44  ;;  %v742_v5 = vld [vmem:[%s3295_s30 + $0x7a8] sm:$0xff]  ;;  %v535_v43 = vld [vmem:[%s3295_s30 + $0x130] sm:$0xff] }
  0xd3   : > { %v578_v55 = vld [vmem:[%s3295_s30 + $0x288] sm:$0xff]  ;;  %v2915_v14 = vcombine.high %v738_v52, %v742_v5  ;;  %v2914_v28 = vcombine.low %v738_v52, %v742_v5  ;;  %v683_v52 = vld [vmem:[%s3295_s30 + $0x5d0] sm:$0xff] }
  0xd4   : > { %2201 = vmatpush1.bf16.msra.mxu1 %v2826_v29  ;;  %v582_v16 = vld [vmem:[%s3295_s30 + $0x2a8] sm:$0xff]  ;;  %v687_v5 = vld [vmem:[%s3295_s30 + $0x5f0] sm:$0xff] }
  0xd5   : > { %2202 = vmatprep.subr.bf16.mxu1 %v2819_v53  ;;  %2156 = vmatpush2.bf16.msra.mxu0 %v2794_v13  ;;  %v730_v3 = vld [vmem:[%s3295_s30 + $0x748] sm:$0xff]  ;;  %v2755_v12 = vcombine.high %v578_v55, %v582_v16  ;;  %v2754_v25 = vcombine.low %v578_v55, %v582_v16  ;;  %v523_v55 = vld [vmem:[%s3295_s30 + $0xd0] sm:$0xff] }
  0xd6   : > { %2157 = vmatprep.subr.bf16.mxu0 %v2787_v54  ;;  %v734_v57 = vld [vmem:[%s3295_s30 + $0x768] sm:$0xff]  ;;  %v2733_v54 = vcombine.high %v555_v9, %v559_v35  ;;  %v527_v16 = vld [vmem:[%s3295_s30 + $0xf0] sm:$0xff] }
  0xd7   : > { %v570_v27 = vld [vmem:[%s3295_s30 + $0x248] sm:$0xff]  ;;  %v2907_v34 = vcombine.high %v730_v3, %v734_v57  ;;  %v2906_v36 = vcombine.low %v730_v3, %v734_v57  ;;  %v675_v3 = vld [vmem:[%s3295_s30 + $0x590] sm:$0xff] }
  0xd8   : > { %2203 = vmatpush1.bf16.msra.mxu1 %v2818_v33  ;;  %v574_v32 = vld [vmem:[%s3295_s30 + $0x268] sm:$0xff]  ;;  %v679_v57 = vld [vmem:[%s3295_s30 + $0x5b0] sm:$0xff] }
  0xd9   : > { %2204 = vmatprep.subr.bf16.mxu1 %v2811_v15  ;;  %2158 = vmatpush2.bf16.msra.mxu0 %v2786_v1  ;;  %v722_v38 = vld [vmem:[%s3295_s30 + $0x708] sm:$0xff]  ;;  %v2747_v0 = vcombine.high %v570_v27, %v574_v32  ;;  %v2746_v59 = vcombine.low %v570_v27, %v574_v32  ;;  %v2732_v1 = vcombine.low %v555_v9, %v559_v35  ;;  %v515_v27 = vld [vmem:[%s3295_s30 + $0x90] sm:$0xff] }
  0xda   : > { %2159 = vmatprep.subr.bf16.mxu0 %v2779_v40  ;;  %v726_v41 = vld [vmem:[%s3295_s30 + $0x728] sm:$0xff]  ;;  %v2725_v40 = vcombine.high %v547_v63, %v551_v2  ;;  %v519_v32 = vld [vmem:[%s3295_s30 + $0xb0] sm:$0xff] }
  0xdb   : > { %v562_v42 = vld [vmem:[%s3295_s30 + $0x208] sm:$0xff]  ;;  %v2899_v61 = vcombine.high %v722_v38, %v726_v41  ;;  %v2898_v29 = vcombine.low %v722_v38, %v726_v41  ;;  %v667_v38 = vld [vmem:[%s3295_s30 + $0x550] sm:$0xff] }
  0xdc   : > { %2205 = vmatpush1.bf16.msra.mxu1 %v2810_v37  ;;  %v566_v58 = vld [vmem:[%s3295_s30 + $0x228] sm:$0xff]  ;;  %v671_v41 = vld [vmem:[%s3295_s30 + $0x570] sm:$0xff] }
  0xdd   : > { %2206 = vmatprep.subr.bf16.mxu1 %v2803_v17  ;;  %2160 = vmatpush2.bf16.msra.mxu0 %v2778_v56  ;;  %v714_v23 = vld [vmem:[%s3295_s30 + $0x6c8] sm:$0xff]  ;;  %v2739_v44 = vcombine.high %v562_v42, %v566_v58  ;;  %v2738_v13 = vcombine.low %v562_v42, %v566_v58  ;;  %v2724_v56 = vcombine.low %v547_v63, %v551_v2  ;;  %v507_v42 = vld [vmem:[%s3295_s30 + $0x50] sm:$0xff] }
  0xde   : > { %2161 = vmatprep.subr.bf16.mxu0 %v2771_v48  ;;  %v718_v45 = vld [vmem:[%s3295_s30 + $0x6e8] sm:$0xff]  ;;  %v2717_v48 = vcombine.high %v539_v60, %v543_v21  ;;  %v511_v58 = vld [vmem:[%s3295_s30 + $0x70] sm:$0xff] }
  0xdf   : > { %v2891_v53 = vcombine.high %v714_v23, %v718_v45  ;;  %v706_v49 = vld [vmem:[%s3295_s30 + $0x688] sm:$0xff]  ;;  %v2890_v33 = vcombine.low %v714_v23, %v718_v45  ;;  %v659_v23 = vld [vmem:[%s3295_s30 + $0x510] sm:$0xff] }
  0xe0   : > { %2207 = vmatpush1.bf16.msra.mxu1 %v2802_v7  ;;  %v710_v11 = vld [vmem:[%s3295_s30 + $0x6a8] sm:$0xff]  ;;  %v663_v45 = vld [vmem:[%s3295_s30 + $0x530] sm:$0xff] }
  0xe1   : > { %2208 = vmatprep.subr.bf16.mxu1 %v2923_v39  ;;  %2162 = vmatpush2.bf16.msra.mxu0 %v2770_v20  ;;  %v2883_v15 = vcombine.high %v706_v49, %v710_v11  ;;  %v698_v26 = vld [vmem:[%s3295_s30 + $0x648] sm:$0xff]  ;;  %v2882_v37 = vcombine.low %v706_v49, %v710_v11  ;;  %v2716_v20 = vcombine.low %v539_v60, %v543_v21  ;;  %v499_v9 = vld [vmem:[%s3295_s30 + $0x10] sm:$0xff] }
  0xe2   : > { %2163 = vmatprep.subr.bf16.mxu0 %v2763_v24  ;;  %v702_v4 = vld [vmem:[%s3295_s30 + $0x668] sm:$0xff]  ;;  %v2709_v24 = vcombine.high %v531_v19, %v535_v43  ;;  %v503_v35 = vld [vmem:[%s3295_s30 + $0x30] sm:$0xff] }
  0xe3   : > { %v2875_v17 = vcombine.high %v698_v26, %v702_v4  ;;  %v690_v47 = vld [vmem:[%s3295_s30 + $0x608] sm:$0xff]  ;;  %v2874_v7 = vcombine.low %v698_v26, %v702_v4  ;;  %v651_v49 = vld [vmem:[%s3295_s30 + $0x4d0] sm:$0xff] }
  0xe4   : > { %2209 = vmatpush2.bf16.msra.mxu1 %v2922_v6  ;;  %v694_v18 = vld [vmem:[%s3295_s30 + $0x628] sm:$0xff]  ;;  %v655_v11 = vld [vmem:[%s3295_s30 + $0x4f0] sm:$0xff] }
  0xe5   : > { %2210 = vmatprep.subr.bf16.mxu1 %v2915_v14  ;;  %2164 = vmatpush2.bf16.msra.mxu0 %v2762_v62  ;;  %v2867_v39 = vcombine.high %v690_v47, %v694_v18  ;;  %v2866_v6 = vcombine.low %v690_v47, %v694_v18  ;;  %v2861_v14 = vcombine.high %v683_v52, %v687_v5  ;;  %v619_v63 = vld [vmem:[%s3295_s30 + $0x3d0] sm:$0xff] }
  0xe6   : > { %2165 = vmatprep.subr.bf16.mxu0 %v2755_v12  ;;  %v2708_v62 = vcombine.low %v531_v19, %v535_v43  ;;  %v2701_v12 = vcombine.high %v523_v55, %v527_v16  ;;  %v623_v2 = vld [vmem:[%s3295_s30 + $0x3f0] sm:$0xff] }
  0xe7   : > { %v643_v26 = vld [vmem:[%s3295_s30 + $0x490] sm:$0xff] }
  0xe8   : > { %2211 = vmatpush2.bf16.msra.mxu1 %v2914_v28  ;;  %v2860_v28 = vcombine.low %v683_v52, %v687_v5  ;;  %v647_v4 = vld [vmem:[%s3295_s30 + $0x4b0] sm:$0xff] }
  0xe9   : > { %2212 = vmatprep.subr.bf16.mxu1 %v2907_v34  ;;  %2166 = vmatpush2.bf16.msra.mxu0 %v2754_v25  ;;  %v2853_v34 = vcombine.high %v675_v3, %v679_v57  ;;  %v2700_v25 = vcombine.low %v523_v55, %v527_v16  ;;  %v611_v60 = vld [vmem:[%s3295_s30 + $0x390] sm:$0xff] }
  0xea   : > { %2167 = vmatprep.subr.bf16.mxu0 %v2747_v0  ;;  %v2693_v0 = vcombine.high %v515_v27, %v519_v32  ;;  %v615_v21 = vld [vmem:[%s3295_s30 + $0x3b0] sm:$0xff] }
  0xeb   : > { %v635_v47 = vld [vmem:[%s3295_s30 + $0x450] sm:$0xff] }
  0xec   : > { %2213 = vmatpush2.bf16.msra.mxu1 %v2906_v36  ;;  %v2852_v36 = vcombine.low %v675_v3, %v679_v57  ;;  %v639_v18 = vld [vmem:[%s3295_s30 + $0x470] sm:$0xff] }
  0xed   : > { %2214 = vmatprep.subr.bf16.mxu1 %v2899_v61  ;;  %2168 = vmatpush2.bf16.msra.mxu0 %v2746_v59  ;;  %v2845_v61 = vcombine.high %v667_v38, %v671_v41  ;;  %v2692_v59 = vcombine.low %v515_v27, %v519_v32  ;;  %v603_v19 = vld [vmem:[%s3295_s30 + $0x350] sm:$0xff] }
  0xee   : > { %2169 = vmatprep.subr.bf16.mxu0 %v2739_v44  ;;  %v2685_v44 = vcombine.high %v507_v42, %v511_v58  ;;  %v607_v43 = vld [vmem:[%s3295_s30 + $0x370] sm:$0xff] }
  0xef   : > { %v627_v52 = vld [vmem:[%s3295_s30 + $0x410] sm:$0xff] }
  0xf0   : > { %2215 = vmatpush2.bf16.msra.mxu1 %v2898_v29  ;;  %v2844_v29 = vcombine.low %v667_v38, %v671_v41  ;;  %v631_v5 = vld [vmem:[%s3295_s30 + $0x430] sm:$0xff] }
  0xf1   : > { %2216 = vmatprep.subr.bf16.mxu1 %v2891_v53  ;;  %2170 = vmatpush2.bf16.msra.mxu0 %v2738_v13  ;;  %v2837_v53 = vcombine.high %v659_v23, %v663_v45  ;;  %v2684_v13 = vcombine.low %v507_v42, %v511_v58  ;;  %v595_v55 = vld [vmem:[%s3295_s30 + $0x310] sm:$0xff] }
  0xf2   : > { %2245 = vmatprep.subr.bf16.mxu0 %v2733_v54  ;;  %v2677_v54 = vcombine.high %v499_v9, %v503_v35  ;;  %v599_v16 = vld [vmem:[%s3295_s30 + $0x330] sm:$0xff] }
  0xf3   : > { %v747_v3 = vld [vmem:[%s3295_s30 + $0x7d0] sm:$0xff] }
  0xf4   : > { %2217 = vmatpush2.bf16.msra.mxu1 %v2890_v33  ;;  %2172 = vmatmul.mubr.bf16.vlgmr.msra.gmra.mxu0 %v3758_v30  ;;  %v2836_v33 = vcombine.low %v659_v23, %v663_v45  ;;  %v751_v57 = vld [vmem:[%s3295_s30 + $0x7f0] sm:$0xff] }
  0xf5   : > { %2218 = vmatprep.subr.bf16.mxu1 %v2883_v15  ;;  %2246 = vmatpush1.bf16.msra.mxu0 %v2732_v1  ;;  %v2829_v15 = vcombine.high %v651_v49, %v655_v11  ;;  %v2676_v1 = vcombine.low %v499_v9, %v503_v35  ;;  %v587_v27 = vld [vmem:[%s3295_s30 + $0x2d0] sm:$0xff] }
  0xf6   : > { %2181 = vmatprep.mubr.bf16.mxu0 %v3782_v50  ;;  %2247 = vmatprep.subr.bf16.mxu0 %v2725_v40  ;;  %v2797_v40 = vcombine.high %v619_v63, %v623_v2  ;;  %v591_v32 = vld [vmem:[%s3295_s30 + $0x2f0] sm:$0xff] }
  0xf7   : > { %v739_v38 = vld [vmem:[%s3295_s30 + $0x790] sm:$0xff] }
  0xf8   : > { %2219 = vmatpush2.bf16.msra.mxu1 %v2882_v37  ;;  %v2828_v37 = vcombine.low %v651_v49, %v655_v11  ;;  %v743_v41 = vld [vmem:[%s3295_s30 + $0x7b0] sm:$0xff] }
  0xf9   : > { %2220 = vmatprep.subr.bf16.mxu1 %v2875_v17  ;;  %2248 = vmatpush1.bf16.msra.mxu0 %v2724_v56  ;;  %v2821_v17 = vcombine.high %v643_v26, %v647_v4  ;;  %v2796_v56 = vcombine.low %v619_v63, %v623_v2  ;;  %v579_v42 = vld [vmem:[%s3295_s30 + $0x290] sm:$0xff] }
  0xfa   : > { %2249 = vmatprep.subr.bf16.mxu0 %v2717_v48  ;;  %v2789_v48 = vcombine.high %v611_v60, %v615_v21  ;;  %v583_v58 = vld [vmem:[%s3295_s30 + $0x2b0] sm:$0xff] }
  0xfb   : > { %v731_v23 = vld [vmem:[%s3295_s30 + $0x750] sm:$0xff] }
  0xfc   : > { %2221 = vmatpush2.bf16.msra.mxu1 %v2874_v7  ;;  %2182 = vmatmul.mubr.bf16.gmra.mxu0 %v3788_v51  ;;  %v2820_v7 = vcombine.low %v643_v26, %v647_v4  ;;  %v735_v45 = vld [vmem:[%s3295_s30 + $0x770] sm:$0xff] }
  0xfd   : > { %2222 = vmatprep.subr.bf16.mxu1 %v2867_v39  ;;  %2250 = vmatpush1.bf16.msra.mxu0 %v2716_v20  ;;  %v2813_v39 = vcombine.high %v635_v47, %v639_v18  ;;  %v2788_v20 = vcombine.low %v611_v60, %v615_v21  ;;  %v571_v9 = vld [vmem:[%s3295_s30 + $0x250] sm:$0xff]  ;;  %v556_v60 = vld [vmem:[%s3295_s30 + $0x1d8] sm:$0xff] }
  0xfe   : > { %2277 = vmatprep.mubr.bf16.mxu0 %v3731_v10  ;;  %2251 = vmatprep.subr.bf16.mxu0 %v2709_v24  ;;  %v2781_v24 = vcombine.high %v603_v19, %v607_v43  ;;  %v575_v35 = vld [vmem:[%s3295_s30 + $0x270] sm:$0xff]  ;;  %v560_v21 = vld [vmem:[%s3295_s30 + $0x1f8] sm:$0xff] }
  0xff   : > { %v723_v49 = vld [vmem:[%s3295_s30 + $0x710] sm:$0xff] }
 0x100   : > { %2223 = vmatpush2.bf16.msra.mxu1 %v2866_v6  ;;  %v2812_v6 = vcombine.low %v635_v47, %v639_v18  ;;  %v727_v11 = vld [vmem:[%s3295_s30 + $0x730] sm:$0xff] }
 0x101   : > { %2298 = vmatprep.subr.bf16.mxu1 %v2861_v14  ;;  %2252 = vmatpush1.bf16.msra.mxu0 %v2708_v62  ;;  %v2805_v14 = vcombine.high %v627_v52, %v631_v5  ;;  %v2780_v62 = vcombine.low %v603_v19, %v607_v43  ;;  %v563_v63 = vld [vmem:[%s3295_s30 + $0x210] sm:$0xff]  ;;  %v548_v19 = vld [vmem:[%s3295_s30 + $0x198] sm:$0xff] }
 0x102   : > { %2253 = vmatprep.subr.bf16.mxu0 %v2701_v12  ;;  %v2773_v12 = vcombine.high %v595_v55, %v599_v16  ;;  %v567_v2 = vld [vmem:[%s3295_s30 + $0x230] sm:$0xff]  ;;  %v552_v43 = vld [vmem:[%s3295_s30 + $0x1b8] sm:$0xff] }
 0x103   : > { %2225 = vmatmul.mubr.bf16.vlgmr.msra.gmra.mxu1 %v3803_v31  ;;  %v715_v26 = vld [vmem:[%s3295_s30 + $0x6d0] sm:$0xff] }
 0x104   : > { %2299 = vmatpush1.bf16.msra.mxu1 %v2860_v28  ;;  %2234 = vmatprep.mubr.bf16.mxu1 %v3801_v8  ;;  %v2804_v28 = vcombine.low %v627_v52, %v631_v5  ;;  %v719_v4 = vld [vmem:[%s3295_s30 + $0x6f0] sm:$0xff] }
 0x105   : > { %2300 = vmatprep.subr.bf16.mxu1 %v2853_v34  ;;  %2254 = vmatpush1.bf16.msra.mxu0 %v2700_v25  ;;  %v2925_v34 = vcombine.high %v747_v3, %v751_v57  ;;  %v2772_v25 = vcombine.low %v595_v55, %v599_v16  ;;  %v707_v47 = vld [vmem:[%s3295_s30 + $0x690] sm:$0xff]  ;;  %v540_v55 = vld [vmem:[%s3295_s30 + $0x158] sm:$0xff] }
 0x106   : > { %2255 = vmatprep.subr.bf16.mxu0 %v2693_v0  ;;  %v2765_v0 = vcombine.high %v587_v27, %v591_v32  ;;  %v711_v18 = vld [vmem:[%s3295_s30 + $0x6b0] sm:$0xff]  ;;  %v544_v16 = vld [vmem:[%s3295_s30 + $0x178] sm:$0xff] }
 0x107   : > { %v699_v52 = vld [vmem:[%s3295_s30 + $0x650] sm:$0xff] }
 0x108   : > { %2301 = vmatpush1.bf16.msra.mxu1 %v2852_v36  ;;  %v2924_v36 = vcombine.low %v747_v3, %v751_v57  ;;  %v703_v5 = vld [vmem:[%s3295_s30 + $0x670] sm:$0xff] }
 0x109   : > { %2302 = vmatprep.subr.bf16.mxu1 %v2845_v61  ;;  %2256 = vmatpush1.bf16.msra.mxu0 %v2692_v59  ;;  %v2917_v61 = vcombine.high %v739_v38, %v743_v41  ;;  %v2764_v59 = vcombine.low %v587_v27, %v591_v32  ;;  %v691_v3 = vld [vmem:[%s3295_s30 + $0x610] sm:$0xff]  ;;  %v532_v27 = vld [vmem:[%s3295_s30 + $0x118] sm:$0xff] }
 0x10a   : > { %2257 = vmatprep.subr.bf16.mxu0 %v2685_v44  ;;  %v2757_v44 = vcombine.high %v579_v42, %v583_v58  ;;  %v695_v57 = vld [vmem:[%s3295_s30 + $0x630] sm:$0xff]  ;;  %v536_v32 = vld [vmem:[%s3295_s30 + $0x138] sm:$0xff] }
 0x10b   : > { %2235 = vmatmul.mubr.bf16.gmra.mxu1 %v3813_v46 }
 0x10c   : > { %2303 = vmatpush1.bf16.msra.mxu1 %v2844_v29  ;;  %2330 = vmatprep.mubr.bf16.mxu1 %v3736_v22  ;;  %v2916_v29 = vcombine.low %v739_v38, %v743_v41  ;;  %v684_v38 = vld [vmem:[%s3295_s30 + $0x5d8] sm:$0xff] }
 0x10d   : > { %2304 = vmatprep.subr.bf16.mxu1 %v2837_v53  ;;  %2258 = vmatpush1.bf16.msra.mxu0 %v2684_v13  ;;  %v2909_v53 = vcombine.high %v731_v23, %v735_v45  ;;  %v2756_v13 = vcombine.low %v579_v42, %v583_v58  ;;  %v688_v41 = vld [vmem:[%s3295_s30 + $0x5f8] sm:$0xff] }
 0x10e   : > { %2259 = vmatprep.subr.bf16.mxu0 %v2677_v54  ;;  %v2749_v54 = vcombine.high %v571_v9, %v575_v35  ;;  %v524_v42 = vld [vmem:[%s3295_s30 + $0xd8] sm:$0xff] }
 0x10f   : > { %v528_v58 = vld [vmem:[%s3295_s30 + $0xf8] sm:$0xff] }
 0x110   : > { %2305 = vmatpush1.bf16.msra.mxu1 %v2836_v33  ;;  %v2908_v33 = vcombine.low %v731_v23, %v735_v45  ;;  %v676_v23 = vld [vmem:[%s3295_s30 + $0x598] sm:$0xff] }
 0x111   : > { %2306 = vmatprep.subr.bf16.mxu1 %v2829_v15  ;;  %2260 = vmatpush1.bf16.msra.mxu0 %v2676_v1  ;;  %v2901_v15 = vcombine.high %v723_v49, %v727_v11  ;;  %v2748_v1 = vcombine.low %v571_v9, %v575_v35  ;;  %v680_v45 = vld [vmem:[%s3295_s30 + $0x5b8] sm:$0xff] }
 0x112   : > { %2261 = vmatprep.subr.bf16.mxu0 %v2797_v40  ;;  %v2741_v40 = vcombine.high %v563_v63, %v567_v2  ;;  %v516_v9 = vld [vmem:[%s3295_s30 + $0x98] sm:$0xff] }
 0x113   : > { %v520_v35 = vld [vmem:[%s3295_s30 + $0xb8] sm:$0xff] }
 0x114   : > { %2307 = vmatpush1.bf16.msra.mxu1 %v2828_v37  ;;  %v2900_v37 = vcombine.low %v723_v49, %v727_v11  ;;  %v668_v49 = vld [vmem:[%s3295_s30 + $0x558] sm:$0xff] }
 0x115   : > { %2308 = vmatprep.subr.bf16.mxu1 %v2821_v17  ;;  %2262 = vmatpush2.bf16.msra.mxu0 %v2796_v56  ;;  %v2893_v17 = vcombine.high %v715_v26, %v719_v4  ;;  %v2740_v56 = vcombine.low %v563_v63, %v567_v2  ;;  %v672_v11 = vld [vmem:[%s3295_s30 + $0x578] sm:$0xff] }
 0x116   : > { %2263 = vmatprep.subr.bf16.mxu0 %v2789_v48  ;;  %v2735_v48 = vcombine.high %v556_v60, %v560_v21  ;;  %v512_v63 = vld [vmem:[%s3295_s30 + $0x78] sm:$0xff]  ;;  %v2847_v2 = vcombine.high %v668_v49, %v672_v11 }
 0x118   : > { %2309 = vmatpush1.bf16.msra.mxu1 %v2820_v7  ;;  %v2892_v7 = vcombine.low %v715_v26, %v719_v4  ;;  %v664_v26 = vld [vmem:[%s3295_s30 + $0x538] sm:$0xff]  ;;  %v2694_v4 = vcombine.low %v516_v9, %v520_v35 }
 0x119   : > { %2310 = vmatprep.subr.bf16.mxu1 %v2813_v39  ;;  %2264 = vmatpush2.bf16.msra.mxu0 %v2788_v20  ;;  %v2885_v39 = vcombine.high %v707_v47, %v711_v18  ;;  %v2734_v20 = vcombine.low %v556_v60, %v560_v21  ;;  %v504_v60 = vld [vmem:[%s3295_s30 + $0x38] sm:$0xff] }
 0x11a   : > { %2265 = vmatprep.subr.bf16.mxu0 %v2781_v24  ;;  %v2727_v24 = vcombine.high %v548_v19, %v552_v43 }
 0x11c   : > { %2311 = vmatpush1.bf16.msra.mxu1 %v2812_v6  ;;  %v2884_v6 = vcombine.low %v707_v47, %v711_v18  ;;  %v656_v47 = vld [vmem:[%s3295_s30 + $0x4f8] sm:$0xff] }
 0x11d   : > { %2312 = vmatprep.subr.bf16.mxu1 %v2805_v14  ;;  %2266 = vmatpush2.bf16.msra.mxu0 %v2780_v62  ;;  %v2877_v14 = vcombine.high %v699_v52, %v703_v5  ;;  %v2726_v62 = vcombine.low %v548_v19, %v552_v43  ;;  %v624_v19 = vld [vmem:[%s3295_s30 + $0x3f8] sm:$0xff] }
 0x11e   : > { %2267 = vmatprep.subr.bf16.mxu0 %v2773_v12  ;;  %v2719_v12 = vcombine.high %v540_v55, %v544_v16 }
 0x120   : > { %2313 = vmatpush1.bf16.msra.mxu1 %v2804_v28  ;;  %v2876_v28 = vcombine.low %v699_v52, %v703_v5  ;;  %v648_v52 = vld [vmem:[%s3295_s30 + $0x4b8] sm:$0xff] }
 0x121   : > { %2314 = vmatprep.subr.bf16.mxu1 %v2925_v34  ;;  %2268 = vmatpush2.bf16.msra.mxu0 %v2772_v25  ;;  %v2869_v34 = vcombine.high %v691_v3, %v695_v57  ;;  %v2718_v25 = vcombine.low %v540_v55, %v544_v16  ;;  %v616_v55 = vld [vmem:[%s3295_s30 + $0x3b8] sm:$0xff] }
 0x122   : > { %2269 = vmatprep.subr.bf16.mxu0 %v2765_v0  ;;  %v2711_v0 = vcombine.high %v532_v27, %v536_v32 }
 0x124   : > { %2315 = vmatpush2.bf16.msra.mxu1 %v2924_v36  ;;  %v2868_v36 = vcombine.low %v691_v3, %v695_v57 }
 0x125   : > { %2316 = vmatprep.subr.bf16.mxu1 %v2917_v61  ;;  %2270 = vmatpush2.bf16.msra.mxu0 %v2764_v59  ;;  %v2863_v61 = vcombine.high %v684_v38, %v688_v41  ;;  %v2710_v59 = vcombine.low %v532_v27, %v536_v32  ;;  %v628_v32 = vld [vmem:[%s3295_s30 + $0x418] sm:$0xff] }
 0x126   : > { %2271 = vmatprep.subr.bf16.mxu0 %v2757_v44  ;;  %v2703_v44 = vcombine.high %v524_v42, %v528_v58 }
 0x128   : > { %2317 = vmatpush2.bf16.msra.mxu1 %v2916_v29  ;;  %v2862_v29 = vcombine.low %v684_v38, %v688_v41 }
 0x129   : > { %2318 = vmatprep.subr.bf16.mxu1 %v2909_v53  ;;  %2272 = vmatpush2.bf16.msra.mxu0 %v2756_v13  ;;  %v2855_v53 = vcombine.high %v676_v23, %v680_v45  ;;  %v2702_v13 = vcombine.low %v524_v42, %v528_v58  ;;  %v748_v58 = vld [vmem:[%s3295_s30 + $0x7d8] sm:$0xff] }
 0x12a   : > { %2273 = vmatprep.subr.bf16.mxu0 %v2749_v54  ;;  %v2854_v54 = vcombine.low %v676_v23, %v680_v45 }
 0x12c   : > { %2319 = vmatpush2.bf16.msra.mxu1 %v2908_v33  ;;  %v508_v33 = vld [vmem:[%s3295_s30 + $0x58] sm:$0xff] }
 0x12d   : > { %2320 = vmatprep.subr.bf16.mxu1 %v2901_v15  ;;  %2274 = vmatpush2.bf16.msra.mxu0 %v2748_v1  ;;  %v660_v15 = vld [vmem:[%s3295_s30 + $0x518] sm:$0xff]  ;;  %v2687_v1 = vcombine.high %v508_v33, %v512_v63  ;;  %v2686_v18 = vcombine.low %v508_v33, %v512_v63 }
 0x12e   : > { %2275 = vmatprep.subr.bf16.mxu0 %v2741_v40  ;;  %v2846_v40 = vcombine.low %v668_v49, %v672_v11  ;;  %v2839_v21 = vcombine.high %v660_v15, %v664_v26  ;;  %v732_v63 = vld [vmem:[%s3295_s30 + $0x758] sm:$0xff] }
 0x130   : > { %2321 = vmatpush2.bf16.msra.mxu1 %v2900_v37  ;;  %v500_v37 = vld [vmem:[%s3295_s30 + $0x18] sm:$0xff] }
 0x131   : > { %2322 = vmatprep.subr.bf16.mxu1 %v2893_v17  ;;  %2276 = vmatpush2.bf16.msra.mxu0 %v2740_v56  ;;  %v652_v17 = vld [vmem:[%s3295_s30 + $0x4d8] sm:$0xff]  ;;  %v2679_v56 = vcombine.high %v500_v37, %v504_v60  ;;  %v2678_v5 = vcombine.low %v500_v37, %v504_v60 }
 0x132   : > { %2351 = vmatprep.subr.bf16.mxu0 %v2735_v48  ;;  %v2838_v48 = vcombine.low %v660_v15, %v664_v26  ;;  %v2831_v43 = vcombine.high %v652_v17, %v656_v47  ;;  %v724_v60 = vld [vmem:[%s3295_s30 + $0x718] sm:$0xff] }
 0x134   : > { %2323 = vmatpush2.bf16.msra.mxu1 %v2892_v7  ;;  %2278 = vmatmul.mubr.bf16.vlgmr.msra.gmra.mxu0 %v3758_v30  ;;  %v620_v7 = vld [vmem:[%s3295_s30 + $0x3d8] sm:$0xff] }
 0x135   : > { %2324 = vmatprep.subr.bf16.mxu1 %v2885_v39  ;;  %2352 = vmatpush1.bf16.msra.mxu0 %v2734_v20  ;;  %v644_v39 = vld [vmem:[%s3295_s30 + $0x498] sm:$0xff]  ;;  %v2799_v20 = vcombine.high %v620_v7, %v624_v19  ;;  %v2798_v3 = vcombine.low %v620_v7, %v624_v19 }
 0x136   : > { %2287 = vmatprep.mubr.bf16.mxu0 %v3782_v50  ;;  %2353 = vmatprep.subr.bf16.mxu0 %v2727_v24  ;;  %v2830_v24 = vcombine.low %v652_v17, %v656_v47  ;;  %v2823_v16 = vcombine.high %v644_v39, %v648_v52  ;;  %v716_v19 = vld [vmem:[%s3295_s30 + $0x6d8] sm:$0xff] }
 0x138   : > { %2325 = vmatpush2.bf16.msra.mxu1 %v2884_v6  ;;  %v612_v6 = vld [vmem:[%s3295_s30 + $0x398] sm:$0xff] }
 0x139   : > { %2326 = vmatprep.subr.bf16.mxu1 %v2877_v14  ;;  %2354 = vmatpush1.bf16.msra.mxu0 %v2726_v62  ;;  %v640_v14 = vld [vmem:[%s3295_s30 + $0x478] sm:$0xff]  ;;  %v2791_v57 = vcombine.high %v612_v6, %v616_v55  ;;  %v2822_v62 = vcombine.low %v644_v39, %v648_v52  ;;  %v2790_v38 = vcombine.low %v612_v6, %v616_v55 }
 0x13a   : > { %2355 = vmatprep.subr.bf16.mxu0 %v2719_v12  ;;  %v604_v12 = vld [vmem:[%s3295_s30 + $0x358] sm:$0xff] }
 0x13b   : > { %v712_v6 = vld [vmem:[%s3295_s30 + $0x6b8] sm:$0xff] }
 0x13c   : > { %2327 = vmatpush2.bf16.msra.mxu1 %v2876_v28  ;;  %2288 = vmatmul.mubr.bf16.gmra.mxu0 %v3788_v51  ;;  %v608_v28 = vld [vmem:[%s3295_s30 + $0x378] sm:$0xff] }
 0x13d   : > { %2328 = vmatprep.subr.bf16.mxu1 %v2869_v34  ;;  %2356 = vmatpush1.bf16.msra.mxu0 %v2718_v25  ;;  %v632_v34 = vld [vmem:[%s3295_s30 + $0x438] sm:$0xff]  ;;  %v2783_v41 = vcombine.high %v604_v12, %v608_v28  ;;  %v2782_v23 = vcombine.low %v604_v12, %v608_v28 }
 0x13e   : > { %2383 = vmatprep.mubr.bf16.mxu0 %v3731_v10  ;;  %2357 = vmatprep.subr.bf16.mxu0 %v2711_v0  ;;  %v2695_v10 = vcombine.high %v516_v9, %v520_v35  ;;  %v596_v0 = vld [vmem:[%s3295_s30 + $0x318] sm:$0xff]  ;;  %v2807_v42 = vcombine.high %v628_v32, %v632_v34 }
 0x13f   : > { %v740_v35 = vld [vmem:[%s3295_s30 + $0x798] sm:$0xff] }
 0x140   : > { %2329 = vmatpush2.bf16.msra.mxu1 %v2868_v36  ;;  %v600_v36 = vld [vmem:[%s3295_s30 + $0x338] sm:$0xff] }
 0x141   : > { %2404 = vmatprep.subr.bf16.mxu1 %v2863_v61  ;;  %2358 = vmatpush1.bf16.msra.mxu0 %v2710_v59  ;;  %v752_v61 = vld [vmem:[%s3295_s30 + $0x7f8] sm:$0xff]  ;;  %v2775_v45 = vcombine.high %v596_v0, %v600_v36  ;;  %v2806_v59 = vcombine.low %v628_v32, %v632_v34  ;;  %v2774_v49 = vcombine.low %v596_v0, %v600_v36 }
 0x142   : > { %2359 = vmatprep.subr.bf16.mxu0 %v2703_v44  ;;  %v588_v44 = vld [vmem:[%s3295_s30 + $0x2d8] sm:$0xff]  ;;  %v2927_v9 = vcombine.high %v748_v58, %v752_v61 }
 0x143   : > { %2331 = vmatmul.mubr.bf16.vlgmr.msra.gmra.mxu1 %v3803_v31  ;;  %v692_v28 = vld [vmem:[%s3295_s30 + $0x618] sm:$0xff] }
 0x144   : > { %2405 = vmatpush1.bf16.msra.mxu1 %v2862_v29  ;;  %2340 = vmatprep.mubr.bf16.mxu1 %v3801_v8  ;;  %v592_v29 = vld [vmem:[%s3295_s30 + $0x2f8] sm:$0xff] }
 0x145   : > { %2406 = vmatprep.subr.bf16.mxu1 %v2855_v53  ;;  %2360 = vmatpush1.bf16.msra.mxu0 %v2702_v13  ;;  %v744_v53 = vld [vmem:[%s3295_s30 + $0x7b8] sm:$0xff]  ;;  %v2767_v11 = vcombine.high %v588_v44, %v592_v29  ;;  %v2926_v13 = vcombine.low %v748_v58, %v752_v61  ;;  %v2766_v15 = vcombine.low %v588_v44, %v592_v29 }
 0x146   : > { %2361 = vmatprep.subr.bf16.mxu0 %v2695_v10  ;;  %v580_v10 = vld [vmem:[%s3295_s30 + $0x298] sm:$0xff]  ;;  %v2919_v33 = vcombine.high %v740_v35, %v744_v53 }
 0x148   : > { %2407 = vmatpush1.bf16.msra.mxu1 %v2854_v54  ;;  %v584_v54 = vld [vmem:[%s3295_s30 + $0x2b8] sm:$0xff] }
 0x149   : > { %2408 = vmatprep.subr.bf16.mxu1 %v2847_v2  ;;  %2362 = vmatpush1.bf16.msra.mxu0 %v2694_v4  ;;  %v736_v2 = vld [vmem:[%s3295_s30 + $0x778] sm:$0xff]  ;;  %v2759_v26 = vcombine.high %v580_v10, %v584_v54  ;;  %v2918_v4 = vcombine.low %v740_v35, %v744_v53  ;;  %v2758_v17 = vcombine.low %v580_v10, %v584_v54 }
 0x14a   : > { %2363 = vmatprep.subr.bf16.mxu0 %v2687_v1  ;;  %v572_v1 = vld [vmem:[%s3295_s30 + $0x258] sm:$0xff]  ;;  %v2911_v37 = vcombine.high %v732_v63, %v736_v2 }
 0x14b   : > { %2341 = vmatmul.mubr.bf16.gmra.mxu1 %v3813_v46 }
 0x14c   : > { %2409 = vmatpush1.bf16.msra.mxu1 %v2846_v40  ;;  %2436 = vmatprep.mubr.bf16.mxu1 %v3736_v22  ;;  %v636_v22 = vld [vmem:[%s3295_s30 + $0x458] sm:$0xff] }
 0x14d   : > { %2410 = vmatprep.subr.bf16.mxu1 %v2839_v21  ;;  %2364 = vmatpush1.bf16.msra.mxu0 %v2686_v18  ;;  %v2815_v27 = vcombine.high %v636_v22, %v640_v14  ;;  %v2814_v25 = vcombine.low %v636_v22, %v640_v14  ;;  %v576_v40 = vld [vmem:[%s3295_s30 + $0x278] sm:$0xff]  ;;  %v2910_v18 = vcombine.low %v732_v63, %v736_v2 }
 0x14e   : > { %2365 = vmatprep.subr.bf16.mxu0 %v2679_v56  ;;  %v728_v21 = vld [vmem:[%s3295_s30 + $0x738] sm:$0xff]  ;;  %v2751_v47 = vcombine.high %v572_v1, %v576_v40  ;;  %v2750_v39 = vcombine.low %v572_v1, %v576_v40 }
 0x14f   : > { %v564_v56 = vld [vmem:[%s3295_s30 + $0x218] sm:$0xff]  ;;  %v2903_v7 = vcombine.high %v724_v60, %v728_v21 }
 0x150   : > { %2411 = vmatpush1.bf16.msra.mxu1 %v2838_v48  ;;  %v568_v48 = vld [vmem:[%s3295_s30 + $0x238] sm:$0xff] }
 0x151   : > { %2412 = vmatprep.subr.bf16.mxu1 %v2831_v43  ;;  %2366 = vmatpush1.bf16.msra.mxu0 %v2678_v5  ;;  %v720_v43 = vld [vmem:[%s3295_s30 + $0x6f8] sm:$0xff]  ;;  %v2743_v52 = vcombine.high %v564_v56, %v568_v48  ;;  %v2902_v5 = vcombine.low %v724_v60, %v728_v21  ;;  %v2742_v55 = vcombine.low %v564_v56, %v568_v48 }
 0x152   : > { %2367 = vmatprep.subr.bf16.mxu0 %v2799_v20  ;;  %v2895_v20 = vcombine.high %v716_v19, %v720_v43  ;;  %v700_v14 = vld [vmem:[%s3295_s30 + $0x658] sm:$0xff] }
 0x154   : > { %2413 = vmatpush1.bf16.msra.mxu1 %v2830_v24  ;;  %v708_v24 = vld [vmem:[%s3295_s30 + $0x698] sm:$0xff] }
 0x155   : > { %2414 = vmatprep.subr.bf16.mxu1 %v2823_v16  ;;  %2368 = vmatpush2.bf16.msra.mxu0 %v2798_v3  ;;  %v2894_v16 = vcombine.low %v716_v19, %v720_v43  ;;  %v2887_v22 = vcombine.high %v708_v24, %v712_v6  ;;  %v704_v3 = vld [vmem:[%s3295_s30 + $0x678] sm:$0xff] }
 0x156   : > { %2369 = vmatprep.subr.bf16.mxu0 %v2791_v57  ;;  %v2886_v57 = vcombine.low %v708_v24, %v712_v6  ;;  %v2878_v32 = vcombine.low %v700_v14, %v704_v3 }
 0x158   : > { %2415 = vmatpush1.bf16.msra.mxu1 %v2822_v62  ;;  %v2879_v62 = vcombine.high %v700_v14, %v704_v3 }
 0x159   : > { %2416 = vmatprep.subr.bf16.mxu1 %v2815_v27  ;;  %2370 = vmatpush2.bf16.msra.mxu0 %v2790_v38  ;;  %v696_v27 = vld [vmem:[%s3295_s30 + $0x638] sm:$0xff]  ;;  %s4010_s30 = scalar_lea.vmem [#allocation7], %s2671_s28 }
 0x15a   : > { %2371 = vmatprep.subr.bf16.mxu0 %v2783_v41  ;;  %v2871_v34 = vcombine.high %v692_v28, %v696_v27  ;;  %v2870_v41 = vcombine.low %v692_v28, %v696_v27 }
 0x15c   : > { %2417 = vmatpush1.bf16.msra.mxu1 %v2814_v25 }
 0x15d   : > { %2418 = vmatprep.subr.bf16.mxu1 %v2807_v42  ;;  %2372 = vmatpush2.bf16.msra.mxu0 %v2782_v23 }
 0x15e   : > { %2373 = vmatprep.subr.bf16.mxu0 %v2775_v45 }
 0x160   : > { %2419 = vmatpush1.bf16.msra.mxu1 %v2806_v59 }
 0x161   : > { %2420 = vmatprep.subr.bf16.mxu1 %v2927_v9  ;;  %2374 = vmatpush2.bf16.msra.mxu0 %v2774_v49 }
 0x162   : > { %2375 = vmatprep.subr.bf16.mxu0 %v2767_v11 }
 0x164   : > { %2421 = vmatpush2.bf16.msra.mxu1 %v2926_v13 }
 0x165   : > { %2422 = vmatprep.subr.bf16.mxu1 %v2919_v33  ;;  %2376 = vmatpush2.bf16.msra.mxu0 %v2766_v15 }
 0x166   : > { %2377 = vmatprep.subr.bf16.mxu0 %v2759_v26 }
 0x168   : > { %2423 = vmatpush2.bf16.msra.mxu1 %v2918_v4 }
 0x169   : > { %2424 = vmatprep.subr.bf16.mxu1 %v2911_v37  ;;  %2378 = vmatpush2.bf16.msra.mxu0 %v2758_v17 }
 0x16a   : > { %2379 = vmatprep.subr.bf16.mxu0 %v2751_v47 }
 0x16c   : > { %2425 = vmatpush2.bf16.msra.mxu1 %v2910_v18 }
 0x16d   : > { %2426 = vmatprep.subr.bf16.mxu1 %v2903_v7  ;;  %2380 = vmatpush2.bf16.msra.mxu0 %v2750_v39 }
 0x16e   : > { %2381 = vmatprep.subr.bf16.mxu0 %v2743_v52 }
 0x170   : > { %2427 = vmatpush2.bf16.msra.mxu1 %v2902_v5 }
 0x171   : > { %2428 = vmatprep.subr.bf16.mxu1 %v2895_v20  ;;  %2382 = vmatpush2.bf16.msra.mxu0 %v2742_v55 }
 0x174   : > { %2429 = vmatpush2.bf16.msra.mxu1 %v2894_v16  ;;  %v2067_v12 = vpop.f32.mrf.mxu0  ;;  %2384 = vmatmul.mubr.bf16.vlgmr.msra.gmra.mxu0 %v3758_v30 }
 0x175   : > { %2430 = vmatprep.subr.bf16.mxu1 %v2887_v22  ;;  %2393 = vmatprep.mubr.bf16.mxu0 %v3782_v50 }
 0x176   : > { %v2069_v38 = vpop.f32.mrf.mxu0 }
 0x178   : > { %2431 = vmatpush2.bf16.msra.mxu1 %v2886_v57  ;;  %v2071_v25 = vpop.f32.mrf.mxu0 }
 0x179   : > { %2432 = vmatprep.subr.bf16.mxu1 %v2879_v62 }
 0x17a   : > { %v2073_v0 = vpop.f32.mrf.mxu0 }
 0x17c   : > { %2433 = vmatpush2.bf16.msra.mxu1 %v2878_v32  ;;  %2394 = vmatmul.mubr.bf16.gmra.mxu0 %v3788_v51  ;;  %v2077_v36 = vpop.f32.mrf.mxu0 }
 0x17d   : > { %2434 = vmatprep.subr.bf16.mxu1 %v2871_v34 }
 0x17e   : > { %v2079_v61 = vpop.f32.mrf.mxu0 }
 0x180   : > { %2435 = vmatpush2.bf16.msra.mxu1 %v2870_v41  ;;  %v2081_v59 = vpop.f32.mrf.mxu0 }
 0x182   : > { %v2083_v53 = vpop.f32.mrf.mxu0 }
 0x183   : > { %v2120_v30 = vpop.f32.mrf.mxu1  ;;  %2437 = vmatmul.mubr.bf16.vlgmr.msra.gmra.mxu1 %v3803_v31 }
 0x184   : > { %v2121_v50 = vadd.f32 %v2120_v30, %v2067_v12  ;;  %2446 = vmatprep.mubr.bf16.mxu1 %v3801_v8 }
 0x185   : > { %v2122_v42 = vpop.f32.mrf.mxu1 }
 0x186   : > { %2457 = vst [vmem:[%s4010_s30] sm:$0xff] %v2121_v50  ;;  %v2123_v51 = vadd.f32 %v2122_v42, %v2069_v38 }
 0x187   : > { %v2124_v58 = vpop.f32.mrf.mxu1 }
 0x188   : > { %2458 = vst [vmem:[%s4010_s30 + $0x8] sm:$0xff] %v2123_v51  ;;  %v2125_v23 = vadd.f32 %v2124_v58, %v2071_v25 }
 0x189   : > { %v2126_v31 = vpop.f32.mrf.mxu1 }
 0x18a   : > { %2465 = vst [vmem:[%s4010_s30 + $0x40] sm:$0xff] %v2125_v23  ;;  %v2127_v45 = vadd.f32 %v2126_v31, %v2073_v0 }
 0x18b   : > { %2447 = vmatmul.mubr.bf16.gmra.mxu1 %v3813_v46  ;;  %v2130_v8 = vpop.f32.mrf.mxu1 }
 0x18c   : > { %2466 = vst [vmem:[%s4010_s30 + $0x48] sm:$0xff] %v2127_v45  ;;  %v2131_v44 = vadd.f32 %v2130_v8, %v2077_v36 }
 0x18d   : > { %v2132_v29 = vpop.f32.mrf.mxu1 }
 0x18e   : > { %2473 = vst [vmem:[%s4010_s30 + $0x80] sm:$0xff] %v2131_v44  ;;  %v2133_v9 = vadd.f32 %v2132_v29, %v2079_v61 }
 0x18f   : > { %v2134_v35 = vpop.f32.mrf.mxu1 }
 0x190   : > { %2474 = vst [vmem:[%s4010_s30 + $0x88] sm:$0xff] %v2133_v9  ;;  %v2135_v49 = vadd.f32 %v2134_v35, %v2081_v59 }
 0x191   : > { %v2136_v11 = vpop.f32.mrf.mxu1 }
 0x192   : > { %2481 = vst [vmem:[%s4010_s30 + $0xc0] sm:$0xff] %v2135_v49  ;;  %v2137_v13 = vadd.f32 %v2136_v11, %v2083_v53 }
 0x194   : > { %2482 = vst [vmem:[%s4010_s30 + $0xc8] sm:$0xff] %v2137_v13 }
 0x1b4   : > { %v2173_v10 = vpop.f32.mrf.mxu0 }
 0x1b6   : > { %v2175_v46 = vpop.f32.mrf.mxu0 }
 0x1b8   : > { %v2177_v54 = vpop.f32.mrf.mxu0 }
 0x1ba   : > { %v2179_v33 = vpop.f32.mrf.mxu0 }
 0x1bc   : > { %v2183_v2 = vpop.f32.mrf.mxu0 }
 0x1be   : > { %v2185_v40 = vpop.f32.mrf.mxu0 }
 0x1c0   : > { %v2187_v47 = vpop.f32.mrf.mxu0 }
 0x1c2   : > { %v2189_v19 = vpop.f32.mrf.mxu0 }
 0x1c3   : > { %v2226_v63 = vpop.f32.mrf.mxu1 }
 0x1c4   : > { %v2227_v15 = vadd.f32 %v2226_v63, %v2173_v10 }
 0x1c5   : > { %v2228_v26 = vpop.f32.mrf.mxu1 }
 0x1c6   : > { %2459 = vst [vmem:[%s4010_s30 + $0x10] sm:$0xff] %v2227_v15  ;;  %v2229_v4 = vadd.f32 %v2228_v26, %v2175_v46 }
 0x1c7   : > { %v2230_v1 = vpop.f32.mrf.mxu1 }
 0x1c8   : > { %2460 = vst [vmem:[%s4010_s30 + $0x18] sm:$0xff] %v2229_v4  ;;  %v2231_v37 = vadd.f32 %v2230_v1, %v2177_v54  ;;  %v2511_v4 = vld [vmem:[%s4010_s30] sm:$0xff] (%p4152_p9)  ;;  %v2513_v1 = vld [vmem:[%s4010_s30 + $0x8] sm:$0xff] (%p4152_p9) }
 0x1c9   : > { %v2232_v60 = vpop.f32.mrf.mxu1  ;;  %2512 = vst [vmem:[%s4054_s5] sm:$0xff] (%p4152_p9), %v2511_v4  ;;  %2514 = vst [vmem:[%s4054_s5 + $0x8] sm:$0xff] (%p4152_p9), %v2513_v1 }
 0x1ca   : > { %2467 = vst [vmem:[%s4010_s30 + $0x50] sm:$0xff] %v2231_v37  ;;  %v2233_v21 = vadd.f32 %v2232_v60, %v2179_v33 }
 0x1cb   : > { %v2236_v17 = vpop.f32.mrf.mxu1 }
 0x1cc   : > { %2468 = vst [vmem:[%s4010_s30 + $0x58] sm:$0xff] %v2233_v21  ;;  %v2237_v18 = vadd.f32 %v2236_v17, %v2183_v2 }
 0x1cd   : > { %v2238_v56 = vpop.f32.mrf.mxu1 }
 0x1ce   : > { %2475 = vst [vmem:[%s4010_s30 + $0x90] sm:$0xff] %v2237_v18  ;;  %v2239_v48 = vadd.f32 %v2238_v56, %v2185_v40  ;;  %v2515_v40 = vld [vmem:[%s4010_s30 + $0x10] sm:$0xff] (%p4152_p9)  ;;  %v2527_v18 = vld [vmem:[%s4010_s30 + $0x40] sm:$0xff] (%p4152_p9)  ;;  %v2529_v56 = vld [vmem:[%s4010_s30 + $0x48] sm:$0xff] (%p4152_p9) }
 0x1cf   : > { %v2240_v7 = vpop.f32.mrf.mxu1  ;;  %v2517_v37 = vld [vmem:[%s4010_s30 + $0x18] sm:$0xff] (%p4152_p9)  ;;  %2516 = vst [vmem:[%s4054_s5 + $0x10] sm:$0xff] (%p4152_p9), %v2515_v40  ;;  %2528 = vst [vmem:[%s4054_s5 + $0x100] sm:$0xff] (%p4152_p9), %v2527_v18 }
 0x1d0   : > { %2476 = vst [vmem:[%s4010_s30 + $0x98] sm:$0xff] %v2239_v48  ;;  %v2241_v43 = vadd.f32 %v2240_v7, %v2187_v47  ;;  %2518 = vst [vmem:[%s4054_s5 + $0x18] sm:$0xff] (%p4152_p9), %v2517_v37 }
 0x1d1   : > { %v2242_v39 = vpop.f32.mrf.mxu1  ;;  %v2531_v48 = vld [vmem:[%s4010_s30 + $0x50] sm:$0xff] (%p4152_p9)  ;;  %2530 = vst [vmem:[%s4054_s5 + $0x108] sm:$0xff] (%p4152_p9), %v2529_v56 }
 0x1d2   : > { %2483 = vst [vmem:[%s4010_s30 + $0xd0] sm:$0xff] %v2241_v43  ;;  %v2243_v52 = vadd.f32 %v2242_v39, %v2189_v19  ;;  %2532 = vst [vmem:[%s4054_s5 + $0x110] sm:$0xff] (%p4152_p9), %v2531_v48 }
 0x1d3   : > { %v2533_v7 = vld [vmem:[%s4010_s30 + $0x58] sm:$0xff] (%p4152_p9) }
 0x1d4   : > { %2484 = vst [vmem:[%s4010_s30 + $0xd8] sm:$0xff] %v2243_v52  ;;  %2534 = vst [vmem:[%s4054_s5 + $0x118] sm:$0xff] (%p4152_p9), %v2533_v7 }
 0x1f4   : > { %v2279_v5 = vpop.f32.mrf.mxu0 }
 0x1f6   : > { %v2281_v20 = vpop.f32.mrf.mxu0 }
 0x1f8   : > { %v2283_v24 = vpop.f32.mrf.mxu0 }
 0x1fa   : > { %v2285_v6 = vpop.f32.mrf.mxu0 }
 0x1fc   : > { %v2289_v16 = vpop.f32.mrf.mxu0 }
 0x1fe   : > { %v2291_v62 = vpop.f32.mrf.mxu0 }
 0x200   : > { %v2293_v34 = vpop.f32.mrf.mxu0 }
 0x202   : > { %v2295_v30 = vpop.f32.mrf.mxu0 }
 0x203   : > { %v2332_v55 = vpop.f32.mrf.mxu1 }
 0x204   : > { %v2333_v22 = vadd.f32 %v2332_v55, %v2279_v5  ;;  %v2543_v5 = vld [vmem:[%s4010_s30 + $0x80] sm:$0xff] (%p4152_p9) }
 0x205   : > { %v2334_v14 = vpop.f32.mrf.mxu1  ;;  %2544 = vst [vmem:[%s4054_s5 + $0x200] sm:$0xff] (%p4152_p9), %v2543_v5 }
 0x206   : > { %2461 = vst [vmem:[%s4010_s30 + $0x20] sm:$0xff] %v2333_v22  ;;  %v2335_v3 = vadd.f32 %v2334_v14, %v2281_v20  ;;  %v2545_v20 = vld [vmem:[%s4010_s30 + $0x88] sm:$0xff] (%p4152_p9) }
 0x207   : > { %v2336_v57 = vpop.f32.mrf.mxu1  ;;  %2546 = vst [vmem:[%s4054_s5 + $0x208] sm:$0xff] (%p4152_p9), %v2545_v20 }
 0x208   : > { %2462 = vst [vmem:[%s4010_s30 + $0x28] sm:$0xff] %v2335_v3  ;;  %v2337_v12 = vadd.f32 %v2336_v57, %v2283_v24  ;;  %v2547_v24 = vld [vmem:[%s4010_s30 + $0x90] sm:$0xff] (%p4152_p9)  ;;  %v2559_v3 = vld [vmem:[%s4010_s30 + $0xc0] sm:$0xff] (%p4152_p9)  ;;  %v2561_v57 = vld [vmem:[%s4010_s30 + $0xc8] sm:$0xff] (%p4152_p9) }
 0x209   : > { %v2338_v28 = vpop.f32.mrf.mxu1  ;;  %2548 = vst [vmem:[%s4054_s5 + $0x210] sm:$0xff] (%p4152_p9), %v2547_v24  ;;  %2560 = vst [vmem:[%s4054_s5 + $0x300] sm:$0xff] (%p4152_p9), %v2559_v3 }
 0x20a   : > { %2469 = vst [vmem:[%s4010_s30 + $0x60] sm:$0xff] %v2337_v12  ;;  %v2339_v27 = vadd.f32 %v2338_v28, %v2285_v6  ;;  %v2549_v6 = vld [vmem:[%s4010_s30 + $0x98] sm:$0xff] (%p4152_p9)  ;;  %2562 = vst [vmem:[%s4054_s5 + $0x308] sm:$0xff] (%p4152_p9), %v2561_v57 }
 0x20b   : > { %v2342_v32 = vpop.f32.mrf.mxu1  ;;  %2550 = vst [vmem:[%s4054_s5 + $0x218] sm:$0xff] (%p4152_p9), %v2549_v6  ;;  %v2565_v12 = vld [vmem:[%s4010_s30 + $0xd8] sm:$0xff] (%p4152_p9) }
 0x20c   : > { %2470 = vst [vmem:[%s4010_s30 + $0x68] sm:$0xff] %v2339_v27  ;;  %v2343_v38 = vadd.f32 %v2342_v32, %v2289_v16  ;;  %2566 = vst [vmem:[%s4054_s5 + $0x318] sm:$0xff] (%p4152_p9), %v2565_v12 }
 0x20d   : > { %v2344_v41 = vpop.f32.mrf.mxu1  ;;  %v2519_v60 = vld [vmem:[%s4010_s30 + $0x20] sm:$0xff] (%p4152_p9) }
 0x20e   : > { %2477 = vst [vmem:[%s4010_s30 + $0xa0] sm:$0xff] %v2343_v38  ;;  %v2345_v25 = vadd.f32 %v2344_v41, %v2291_v62  ;;  %2520 = vst [vmem:[%s4054_s5 + $0x20] sm:$0xff] (%p4152_p9), %v2519_v60  ;;  %v2563_v62 = vld [vmem:[%s4010_s30 + $0xd0] sm:$0xff] (%p4152_p9) }
 0x20f   : > { %v2346_v0 = vpop.f32.mrf.mxu1  ;;  %v2521_v21 = vld [vmem:[%s4010_s30 + $0x28] sm:$0xff] (%p4152_p9)  ;;  %2564 = vst [vmem:[%s4054_s5 + $0x310] sm:$0xff] (%p4152_p9), %v2563_v62 }
 0x210   : > { %2478 = vst [vmem:[%s4010_s30 + $0xa8] sm:$0xff] %v2345_v25  ;;  %v2347_v36 = vadd.f32 %v2346_v0, %v2293_v34  ;;  %2522 = vst [vmem:[%s4054_s5 + $0x28] sm:$0xff] (%p4152_p9), %v2521_v21 }
 0x211   : > { %v2348_v50 = vpop.f32.mrf.mxu1  ;;  %v2535_v19 = vld [vmem:[%s4010_s30 + $0x60] sm:$0xff] (%p4152_p9) }
 0x212   : > { %2485 = vst [vmem:[%s4010_s30 + $0xe0] sm:$0xff] %v2347_v36  ;;  %v2349_v42 = vadd.f32 %v2348_v50, %v2295_v30  ;;  %2536 = vst [vmem:[%s4054_s5 + $0x120] sm:$0xff] (%p4152_p9), %v2535_v19 }
 0x213   : > { %v2537_v43 = vld [vmem:[%s4010_s30 + $0x68] sm:$0xff] (%p4152_p9) }
 0x214   : > { %2486 = vst [vmem:[%s4010_s30 + $0xe8] sm:$0xff] %v2349_v42  ;;  %2538 = vst [vmem:[%s4054_s5 + $0x128] sm:$0xff] (%p4152_p9), %v2537_v43 }
 0x215   : > { %v2551_v55 = vld [vmem:[%s4010_s30 + $0xa0] sm:$0xff] (%p4152_p9) }
 0x216   : > { %2552 = vst [vmem:[%s4054_s5 + $0x220] sm:$0xff] (%p4152_p9), %v2551_v55 }
 0x217   : > { %v2553_v16 = vld [vmem:[%s4010_s30 + $0xa8] sm:$0xff] (%p4152_p9) }
 0x218   : > { %2554 = vst [vmem:[%s4054_s5 + $0x228] sm:$0xff] (%p4152_p9), %v2553_v16 }
 0x219   : > { %v2567_v28 = vld [vmem:[%s4010_s30 + $0xe0] sm:$0xff] (%p4152_p9) }
 0x21a   : > { %2568 = vst [vmem:[%s4054_s5 + $0x320] sm:$0xff] (%p4152_p9), %v2567_v28 }
 0x21b   : > { %v2569_v27 = vld [vmem:[%s4010_s30 + $0xe8] sm:$0xff] (%p4152_p9) }
 0x21c   : > { %2570 = vst [vmem:[%s4054_s5 + $0x328] sm:$0xff] (%p4152_p9), %v2569_v27 }
 0x234   : > { %v2385_v51 = vpop.f32.mrf.mxu0 }
 0x236   : > { %v2387_v58 = vpop.f32.mrf.mxu0 }
 0x238   : > { %v2389_v61 = vpop.f32.mrf.mxu0 }
 0x23a   : > { %v2391_v23 = vpop.f32.mrf.mxu0 }
 0x23c   : > { %v2395_v45 = vpop.f32.mrf.mxu0 }
 0x23e   : > { %v2397_v9 = vpop.f32.mrf.mxu0 }
 0x240   : > { %v2399_v13 = vpop.f32.mrf.mxu0 }
 0x242   : > { %v2401_v63 = vpop.f32.mrf.mxu0 }
 0x243   : > { %v2438_v31 = vpop.f32.mrf.mxu1 }
 0x244   : > { %v2439_v8 = vadd.f32 %v2438_v31, %v2385_v51 }
 0x245   : > { %v2440_v59 = vpop.f32.mrf.mxu1 }
 0x246   : > { %2463 = vst [vmem:[%s4010_s30 + $0x30] sm:$0xff] %v2439_v8  ;;  %v2441_v44 = vadd.f32 %v2440_v59, %v2387_v58 }
 0x247   : > { %v2442_v29 = vpop.f32.mrf.mxu1 }
 0x248   : > { %2464 = vst [vmem:[%s4010_s30 + $0x38] sm:$0xff] %v2441_v44  ;;  %v2443_v35 = vadd.f32 %v2442_v29, %v2389_v61 }
 0x249   : > { %v2444_v53 = vpop.f32.mrf.mxu1 }
 0x24a   : > { %2471 = vst [vmem:[%s4010_s30 + $0x70] sm:$0xff] %v2443_v35  ;;  %v2445_v49 = vadd.f32 %v2444_v53, %v2391_v23 }
 0x24b   : > { %v2448_v11 = vpop.f32.mrf.mxu1 }
 0x24c   : > { %2472 = vst [vmem:[%s4010_s30 + $0x78] sm:$0xff] %v2445_v49  ;;  %v2449_v10 = vadd.f32 %v2448_v11, %v2395_v45 }
 0x24d   : > { %v2450_v46 = vpop.f32.mrf.mxu1  ;;  %v2523_v17 = vld [vmem:[%s4010_s30 + $0x30] sm:$0xff] (%p4152_p9) }
 0x24e   : > { %2479 = vst [vmem:[%s4010_s30 + $0xb0] sm:$0xff] %v2449_v10  ;;  %v2451_v54 = vadd.f32 %v2450_v46, %v2397_v9  ;;  %2524 = vst [vmem:[%s4054_s5 + $0x30] sm:$0xff] (%p4152_p9), %v2523_v17 }
 0x24f   : > { %v2452_v33 = vpop.f32.mrf.mxu1  ;;  %v2525_v47 = vld [vmem:[%s4010_s30 + $0x38] sm:$0xff] (%p4152_p9) }
 0x250   : > { %2480 = vst [vmem:[%s4010_s30 + $0xb8] sm:$0xff] %v2451_v54  ;;  %v2453_v2 = vadd.f32 %v2452_v33, %v2399_v13  ;;  %2495 = sbr.rel (!%p4152_p9) target bundleno = 605 (0x25d), region = 52  ;;  %2526 = vst [vmem:[%s4054_s5 + $0x38] sm:$0xff] (%p4152_p9), %v2525_v47 }
 0x251   : > { %v2454_v15 = vpop.f32.mrf.mxu1  ;;  %v2539_v39 = vld [vmem:[%s4010_s30 + $0x70] sm:$0xff] (%p4152_p9) }
 0x252   : > { %2487 = vst [vmem:[%s4010_s30 + $0xf0] sm:$0xff] %v2453_v2  ;;  %v2455_v26 = vadd.f32 %v2454_v15, %v2401_v63  ;;  %2540 = vst [vmem:[%s4054_s5 + $0x130] sm:$0xff] (%p4152_p9), %v2539_v39 }
 0x253   : > { %v2541_v52 = vld [vmem:[%s4010_s30 + $0x78] sm:$0xff] (%p4152_p9) }
 0x254   : > { %2488 = vst [vmem:[%s4010_s30 + $0xf8] sm:$0xff] %v2455_v26  ;;  %2542 = vst [vmem:[%s4054_s5 + $0x138] sm:$0xff] (%p4152_p9), %v2541_v52 }
 0x255   : > { %v2555_v22 = vld [vmem:[%s4010_s30 + $0xb0] sm:$0xff] }
 0x256   : > { %2556 = vst [vmem:[%s4054_s5 + $0x230] sm:$0xff] %v2555_v22 }
 0x257   : > { %v2557_v14 = vld [vmem:[%s4010_s30 + $0xb8] sm:$0xff] }
 0x258   : > { %2558 = vst [vmem:[%s4054_s5 + $0x238] sm:$0xff] %v2557_v14 }
 0x259   : > { %v2571_v32 = vld [vmem:[%s4010_s30 + $0xf0] sm:$0xff] }
 0x25a   : > { %2572 = vst [vmem:[%s4054_s5 + $0x330] sm:$0xff] %v2571_v32 }
 0x25b   : > { %v2573_v34 = vld [vmem:[%s4010_s30 + $0xf8] sm:$0xff] }
 0x25c   : > { %2574 = vst [vmem:[%s4054_s5 + $0x338] sm:$0xff] %v2573_v34 }
 0x25d PF: > { %p13_p12 = scmp.ge.s32.totalorder %s3183_s20, 6   ;;  %s4153_s15 = smov %s3120_s16 }
 0x25e   : > { %s4154_s16 = smov %s3124_s17  ;;  %s4155_s17 = smov %s3193_s23 }
 0x25f   : > { %s4156_s18 = smov %s3183_s20  ;;  %15 = sbr.rel (!%p13_p12) target bundleno = 3 (0x3), region = 106 }
 0x264   :  { %2590 = vsyncpa [#allocation3], 1 }
 0x265   :  { %2592 = vsyncpa [#allocation3 + $0x1], 1 }
 0x266   :  { %2593 = vsyncpa [#allocation5], 1 }

// kernel: generator_forward.6
= control target key start
LH: loop header
LB: loop body
LE: loop exit
PB: predicated region body
PF: predicated region fallthrough
CT: control target
= control target key end

     0   :  { %s2563_s15 = smov 0   ;;  %s2565_s16 = smov 0   ;;  %s3884_s0 = inlined_call_operand.vmem [shape: f32[98,256], index: 0, kind: input, shape index: {}]   ;;  %s3885_s1 = inlined_call_operand.vmem [shape: f32[1,256], index: 1, kind: input, shape index: {}]   ;;  %s3886_s2 = inlined_call_operand.vmem [shape: f32[1,256], index: 2, kind: input, shape index: {}]   ;;  %s3887_s3 = inlined_call_operand.vmem [shape: bf16[256,2048], index: 3, kind: input, shape index: {}]   ;;  %s3888_s4 = inlined_call_operand.vmem [shape: f32[98,2048], index: 4, kind: output, shape index: {}]  }
   0x1   :  { %s2567_s17 = smov 0  }
   0x2 LB: > { %s2342_s18 = sadd.s32 4294967295, %s2536_s17   ;;  %s2580_s19 = sadd.s32 1, %s2536_s17   ;;  %s2536_s17 = sphi %s2567_s17, %s3892_s17   ;;  %s2532_s16 = sphi %s2565_s16, %s3891_s16   ;;  %s2528_s15 = sphi %s2563_s15, %s3890_s15  }
   0x3   : > { %s81_s20 = ssub.s32 %s2536_s17, %s2580_s19  ;;  %s84_s21 = sadd.s32 1, %s2532_s16 }
   0x4   : > { %p82_p0 = scmp.eq.s32.totalorder %s81_s20, 0  ;;  %p91_p1 = scmp.ne.s32.totalorder %s2532_s16, %s2528_s15 }
   0x5   : > { %p92_p2 = scmp.eq.s32.totalorder %s2536_s17, 0  ;;  %p121_p3 = scmp.eq.s32.totalorder %s2342_s18, 1 }
   0x6   : > { %s2591_s22 = scalar_select %p82_p0, %s2532_s16, %s84_s21  }
   0x7   : > { %p93_p4 = por %p92_p2, %p91_p1  ;;  %p2593_p5 = por %p121_p3, %p91_p1 }
   0x8   : > { %p2345_p6 = scmp.ge.s32.totalorder %s2536_s17, 2 }
   0xa   : > { %152 = sbr.rel (%p2345_p6) target bundleno = 83 (0x53), region = 28 }
   0xf   : > { %155 = sbr.rel (!%p93_p4) target bundleno = 83 (0x53), region = 32  ;;  %s157_s24 = sand.u32 (%p93_p4), 1, %s2532_s16  }
  0x10   : > { %s2483_s25 = sshll.u32 (%p93_p4), %s2536_s17, 5  ;;  %s2346_s26 = sshll.u32 (%p93_p4), %s157_s24, 10 }
  0x11   : > { %s2603_s29 = scalar_lea.vmem (%p93_p4), %s3887_s3, %s2483_s25  ;;  %s2608_s30 = scalar_lea.vmem (%p93_p4), [#allocation2], %s2346_s26 }
  0x12   : > { %v175_v0 = vld [vmem:[%s2603_s29] sm:$0xff] (%p93_p4)  ;;  %v177_v1 = vld [vmem:[%s2603_s29 + $0x8] sm:$0xff] (%p93_p4)  ;;  %v179_v2 = vld [vmem:[%s2603_s29 + $0x10] sm:$0xff] (%p93_p4) }
  0x13   : > { %176 = vst [vmem:[%s2608_s30] sm:$0xff] (%p93_p4), %v175_v0  ;;  %178 = vst [vmem:[%s2608_s30 + $0x8] sm:$0xff] (%p93_p4), %v177_v1  ;;  %v181_v3 = vld [vmem:[%s2603_s29 + $0x18] sm:$0xff] (%p93_p4)  ;;  %v183_v4 = vld [vmem:[%s2603_s29 + $0x40] sm:$0xff] (%p93_p4) }
  0x14   : > { %180 = vst [vmem:[%s2608_s30 + $0x10] sm:$0xff] %v179_v2  ;;  %v185_v5 = vld [vmem:[%s2603_s29 + $0x48] sm:$0xff]  ;;  %182 = vst [vmem:[%s2608_s30 + $0x18] sm:$0xff] %v181_v3  ;;  %v187_v6 = vld [vmem:[%s2603_s29 + $0x50] sm:$0xff] }
  0x15   : > { %184 = vst [vmem:[%s2608_s30 + $0x20] sm:$0xff] %v183_v4  ;;  %186 = vst [vmem:[%s2608_s30 + $0x28] sm:$0xff] %v185_v5  ;;  %v189_v7 = vld [vmem:[%s2603_s29 + $0x58] sm:$0xff]  ;;  %v191_v8 = vld [vmem:[%s2603_s29 + $0x80] sm:$0xff] }
  0x16   : > { %188 = vst [vmem:[%s2608_s30 + $0x30] sm:$0xff] %v187_v6  ;;  %190 = vst [vmem:[%s2608_s30 + $0x38] sm:$0xff] %v189_v7  ;;  %v193_v9 = vld [vmem:[%s2603_s29 + $0x88] sm:$0xff]  ;;  %v195_v10 = vld [vmem:[%s2603_s29 + $0x90] sm:$0xff] }
  0x17   : > { %192 = vst [vmem:[%s2608_s30 + $0x40] sm:$0xff] %v191_v8  ;;  %v197_v11 = vld [vmem:[%s2603_s29 + $0x98] sm:$0xff]  ;;  %194 = vst [vmem:[%s2608_s30 + $0x48] sm:$0xff] %v193_v9  ;;  %v199_v12 = vld [vmem:[%s2603_s29 + $0xc0] sm:$0xff] }
  0x18   : > { %196 = vst [vmem:[%s2608_s30 + $0x50] sm:$0xff] %v195_v10  ;;  %198 = vst [vmem:[%s2608_s30 + $0x58] sm:$0xff] %v197_v11  ;;  %v201_v13 = vld [vmem:[%s2603_s29 + $0xc8] sm:$0xff]  ;;  %v203_v14 = vld [vmem:[%s2603_s29 + $0xd0] sm:$0xff] }
  0x19   : > { %200 = vst [vmem:[%s2608_s30 + $0x60] sm:$0xff] %v199_v12  ;;  %202 = vst [vmem:[%s2608_s30 + $0x68] sm:$0xff] %v201_v13  ;;  %v205_v15 = vld [vmem:[%s2603_s29 + $0xd8] sm:$0xff]  ;;  %v207_v16 = vld [vmem:[%s2603_s29 + $0x100] sm:$0xff] }
  0x1a   : > { %204 = vst [vmem:[%s2608_s30 + $0x70] sm:$0xff] %v203_v14  ;;  %v209_v17 = vld [vmem:[%s2603_s29 + $0x108] sm:$0xff]  ;;  %206 = vst [vmem:[%s2608_s30 + $0x78] sm:$0xff] %v205_v15  ;;  %v211_v18 = vld [vmem:[%s2603_s29 + $0x110] sm:$0xff] }
  0x1b   : > { %208 = vst [vmem:[%s2608_s30 + $0x80] sm:$0xff] %v207_v16  ;;  %210 = vst [vmem:[%s2608_s30 + $0x88] sm:$0xff] %v209_v17  ;;  %v213_v19 = vld [vmem:[%s2603_s29 + $0x118] sm:$0xff]  ;;  %v215_v20 = vld [vmem:[%s2603_s29 + $0x140] sm:$0xff] }
  0x1c   : > { %212 = vst [vmem:[%s2608_s30 + $0x90] sm:$0xff] %v211_v18  ;;  %214 = vst [vmem:[%s2608_s30 + $0x98] sm:$0xff] %v213_v19  ;;  %v217_v21 = vld [vmem:[%s2603_s29 + $0x148] sm:$0xff]  ;;  %v219_v22 = vld [vmem:[%s2603_s29 + $0x150] sm:$0xff] }
  0x1d   : > { %216 = vst [vmem:[%s2608_s30 + $0xa0] sm:$0xff] %v215_v20  ;;  %v221_v23 = vld [vmem:[%s2603_s29 + $0x158] sm:$0xff]  ;;  %218 = vst [vmem:[%s2608_s30 + $0xa8] sm:$0xff] %v217_v21  ;;  %v223_v24 = vld [vmem:[%s2603_s29 + $0x180] sm:$0xff] }
  0x1e   : > { %220 = vst [vmem:[%s2608_s30 + $0xb0] sm:$0xff] %v219_v22  ;;  %222 = vst [vmem:[%s2608_s30 + $0xb8] sm:$0xff] %v221_v23  ;;  %v225_v25 = vld [vmem:[%s2603_s29 + $0x188] sm:$0xff]  ;;  %v227_v26 = vld [vmem:[%s2603_s29 + $0x190] sm:$0xff] }
  0x1f   : > { %224 = vst [vmem:[%s2608_s30 + $0xc0] sm:$0xff] %v223_v24  ;;  %226 = vst [vmem:[%s2608_s30 + $0xc8] sm:$0xff] %v225_v25  ;;  %v229_v27 = vld [vmem:[%s2603_s29 + $0x198] sm:$0xff]  ;;  %v231_v28 = vld [vmem:[%s2603_s29 + $0x1c0] sm:$0xff] }
  0x20   : > { %228 = vst [vmem:[%s2608_s30 + $0xd0] sm:$0xff] %v227_v26  ;;  %v233_v29 = vld [vmem:[%s2603_s29 + $0x1c8] sm:$0xff]  ;;  %230 = vst [vmem:[%s2608_s30 + $0xd8] sm:$0xff] %v229_v27  ;;  %v235_v30 = vld [vmem:[%s2603_s29 + $0x1d0] sm:$0xff] }
  0x21   : > { %232 = vst [vmem:[%s2608_s30 + $0xe0] sm:$0xff] %v231_v28  ;;  %234 = vst [vmem:[%s2608_s30 + $0xe8] sm:$0xff] %v233_v29  ;;  %v237_v31 = vld [vmem:[%s2603_s29 + $0x1d8] sm:$0xff]  ;;  %v239_v32 = vld [vmem:[%s2603_s29 + $0x200] sm:$0xff] }
  0x22   : > { %236 = vst [vmem:[%s2608_s30 + $0xf0] sm:$0xff] %v235_v30  ;;  %238 = vst [vmem:[%s2608_s30 + $0xf8] sm:$0xff] %v237_v31  ;;  %v241_v33 = vld [vmem:[%s2603_s29 + $0x208] sm:$0xff]  ;;  %v243_v34 = vld [vmem:[%s2603_s29 + $0x210] sm:$0xff] }
  0x23   : > { %240 = vst [vmem:[%s2608_s30 + $0x100] sm:$0xff] %v239_v32  ;;  %v245_v35 = vld [vmem:[%s2603_s29 + $0x218] sm:$0xff]  ;;  %242 = vst [vmem:[%s2608_s30 + $0x108] sm:$0xff] %v241_v33  ;;  %v247_v36 = vld [vmem:[%s2603_s29 + $0x240] sm:$0xff] }
  0x24   : > { %244 = vst [vmem:[%s2608_s30 + $0x110] sm:$0xff] %v243_v34  ;;  %246 = vst [vmem:[%s2608_s30 + $0x118] sm:$0xff] %v245_v35  ;;  %v249_v37 = vld [vmem:[%s2603_s29 + $0x248] sm:$0xff]  ;;  %v251_v38 = vld [vmem:[%s2603_s29 + $0x250] sm:$0xff] }
  0x25   : > { %248 = vst [vmem:[%s2608_s30 + $0x120] sm:$0xff] %v247_v36  ;;  %250 = vst [vmem:[%s2608_s30 + $0x128] sm:$0xff] %v249_v37  ;;  %v253_v39 = vld [vmem:[%s2603_s29 + $0x258] sm:$0xff]  ;;  %v255_v40 = vld [vmem:[%s2603_s29 + $0x280] sm:$0xff] }
  0x26   : > { %252 = vst [vmem:[%s2608_s30 + $0x130] sm:$0xff] %v251_v38  ;;  %v257_v41 = vld [vmem:[%s2603_s29 + $0x288] sm:$0xff]  ;;  %254 = vst [vmem:[%s2608_s30 + $0x138] sm:$0xff] %v253_v39  ;;  %v259_v42 = vld [vmem:[%s2603_s29 + $0x290] sm:$0xff] }
  0x27   : > { %256 = vst [vmem:[%s2608_s30 + $0x140] sm:$0xff] %v255_v40  ;;  %258 = vst [vmem:[%s2608_s30 + $0x148] sm:$0xff] %v257_v41  ;;  %v261_v43 = vld [vmem:[%s2603_s29 + $0x298] sm:$0xff]  ;;  %v263_v44 = vld [vmem:[%s2603_s29 + $0x2c0] sm:$0xff] }
  0x28   : > { %260 = vst [vmem:[%s2608_s30 + $0x150] sm:$0xff] %v259_v42  ;;  %262 = vst [vmem:[%s2608_s30 + $0x158] sm:$0xff] %v261_v43  ;;  %v265_v45 = vld [vmem:[%s2603_s29 + $0x2c8] sm:$0xff]  ;;  %v267_v46 = vld [vmem:[%s2603_s29 + $0x2d0] sm:$0xff] }
  0x29   : > { %264 = vst [vmem:[%s2608_s30 + $0x160] sm:$0xff] %v263_v44  ;;  %v269_v47 = vld [vmem:[%s2603_s29 + $0x2d8] sm:$0xff]  ;;  %266 = vst [vmem:[%s2608_s30 + $0x168] sm:$0xff] %v265_v45  ;;  %v271_v48 = vld [vmem:[%s2603_s29 + $0x300] sm:$0xff] }
  0x2a   : > { %268 = vst [vmem:[%s2608_s30 + $0x170] sm:$0xff] %v267_v46  ;;  %270 = vst [vmem:[%s2608_s30 + $0x178] sm:$0xff] %v269_v47  ;;  %v273_v49 = vld [vmem:[%s2603_s29 + $0x308] sm:$0xff]  ;;  %v275_v50 = vld [vmem:[%s2603_s29 + $0x310] sm:$0xff] }
  0x2b   : > { %272 = vst [vmem:[%s2608_s30 + $0x180] sm:$0xff] %v271_v48  ;;  %274 = vst [vmem:[%s2608_s30 + $0x188] sm:$0xff] %v273_v49  ;;  %v277_v51 = vld [vmem:[%s2603_s29 + $0x318] sm:$0xff]  ;;  %v279_v52 = vld [vmem:[%s2603_s29 + $0x340] sm:$0xff] }
  0x2c   : > { %276 = vst [vmem:[%s2608_s30 + $0x190] sm:$0xff] %v275_v50  ;;  %v281_v53 = vld [vmem:[%s2603_s29 + $0x348] sm:$0xff]  ;;  %278 = vst [vmem:[%s2608_s30 + $0x198] sm:$0xff] %v277_v51  ;;  %v283_v54 = vld [vmem:[%s2603_s29 + $0x350] sm:$0xff] }
  0x2d   : > { %280 = vst [vmem:[%s2608_s30 + $0x1a0] sm:$0xff] %v279_v52  ;;  %282 = vst [vmem:[%s2608_s30 + $0x1a8] sm:$0xff] %v281_v53  ;;  %v285_v55 = vld [vmem:[%s2603_s29 + $0x358] sm:$0xff]  ;;  %v287_v56 = vld [vmem:[%s2603_s29 + $0x380] sm:$0xff] }
  0x2e   : > { %284 = vst [vmem:[%s2608_s30 + $0x1b0] sm:$0xff] %v283_v54  ;;  %286 = vst [vmem:[%s2608_s30 + $0x1b8] sm:$0xff] %v285_v55  ;;  %v289_v57 = vld [vmem:[%s2603_s29 + $0x388] sm:$0xff]  ;;  %v291_v58 = vld [vmem:[%s2603_s29 + $0x390] sm:$0xff] }
  0x2f   : > { %288 = vst [vmem:[%s2608_s30 + $0x1c0] sm:$0xff] %v287_v56  ;;  %v293_v59 = vld [vmem:[%s2603_s29 + $0x398] sm:$0xff]  ;;  %290 = vst [vmem:[%s2608_s30 + $0x1c8] sm:$0xff] %v289_v57  ;;  %v295_v60 = vld [vmem:[%s2603_s29 + $0x3c0] sm:$0xff] }
  0x30   : > { %292 = vst [vmem:[%s2608_s30 + $0x1d0] sm:$0xff] %v291_v58  ;;  %294 = vst [vmem:[%s2608_s30 + $0x1d8] sm:$0xff] %v293_v59  ;;  %v297_v61 = vld [vmem:[%s2603_s29 + $0x3c8] sm:$0xff]  ;;  %v299_v62 = vld [vmem:[%s2603_s29 + $0x3d0] sm:$0xff] }
  0x31   : > { %296 = vst [vmem:[%s2608_s30 + $0x1e0] sm:$0xff] %v295_v60  ;;  %298 = vst [vmem:[%s2608_s30 + $0x1e8] sm:$0xff] %v297_v61  ;;  %v301_v63 = vld [vmem:[%s2603_s29 + $0x3d8] sm:$0xff]  ;;  %v303_v0 = vld [vmem:[%s2603_s29 + $0x400] sm:$0xff] }
  0x32   : > { %300 = vst [vmem:[%s2608_s30 + $0x1f0] sm:$0xff] %v299_v62  ;;  %v305_v1 = vld [vmem:[%s2603_s29 + $0x408] sm:$0xff]  ;;  %302 = vst [vmem:[%s2608_s30 + $0x1f8] sm:$0xff] %v301_v63  ;;  %v307_v2 = vld [vmem:[%s2603_s29 + $0x410] sm:$0xff] }
  0x33   : > { %304 = vst [vmem:[%s2608_s30 + $0x200] sm:$0xff] %v303_v0  ;;  %306 = vst [vmem:[%s2608_s30 + $0x208] sm:$0xff] %v305_v1  ;;  %v309_v3 = vld [vmem:[%s2603_s29 + $0x418] sm:$0xff]  ;;  %v311_v4 = vld [vmem:[%s2603_s29 + $0x440] sm:$0xff] }
  0x34   : > { %308 = vst [vmem:[%s2608_s30 + $0x210] sm:$0xff] %v307_v2  ;;  %310 = vst [vmem:[%s2608_s30 + $0x218] sm:$0xff] %v309_v3  ;;  %v313_v5 = vld [vmem:[%s2603_s29 + $0x448] sm:$0xff]  ;;  %v315_v6 = vld [vmem:[%s2603_s29 + $0x450] sm:$0xff] }
  0x35   : > { %312 = vst [vmem:[%s2608_s30 + $0x220] sm:$0xff] %v311_v4  ;;  %v317_v7 = vld [vmem:[%s2603_s29 + $0x458] sm:$0xff]  ;;  %314 = vst [vmem:[%s2608_s30 + $0x228] sm:$0xff] %v313_v5  ;;  %v319_v8 = vld [vmem:[%s2603_s29 + $0x480] sm:$0xff] }
  0x36   : > { %316 = vst [vmem:[%s2608_s30 + $0x230] sm:$0xff] %v315_v6  ;;  %318 = vst [vmem:[%s2608_s30 + $0x238] sm:$0xff] %v317_v7  ;;  %v321_v9 = vld [vmem:[%s2603_s29 + $0x488] sm:$0xff]  ;;  %v323_v10 = vld [vmem:[%s2603_s29 + $0x490] sm:$0xff] }
  0x37   : > { %320 = vst [vmem:[%s2608_s30 + $0x240] sm:$0xff] %v319_v8  ;;  %322 = vst [vmem:[%s2608_s30 + $0x248] sm:$0xff] %v321_v9  ;;  %v325_v11 = vld [vmem:[%s2603_s29 + $0x498] sm:$0xff]  ;;  %v327_v12 = vld [vmem:[%s2603_s29 + $0x4c0] sm:$0xff] }
  0x38   : > { %324 = vst [vmem:[%s2608_s30 + $0x250] sm:$0xff] %v323_v10  ;;  %v329_v13 = vld [vmem:[%s2603_s29 + $0x4c8] sm:$0xff]  ;;  %326 = vst [vmem:[%s2608_s30 + $0x258] sm:$0xff] %v325_v11  ;;  %v331_v14 = vld [vmem:[%s2603_s29 + $0x4d0] sm:$0xff] }
  0x39   : > { %328 = vst [vmem:[%s2608_s30 + $0x260] sm:$0xff] %v327_v12  ;;  %330 = vst [vmem:[%s2608_s30 + $0x268] sm:$0xff] %v329_v13  ;;  %v333_v15 = vld [vmem:[%s2603_s29 + $0x4d8] sm:$0xff]  ;;  %v335_v16 = vld [vmem:[%s2603_s29 + $0x500] sm:$0xff] }
  0x3a   : > { %332 = vst [vmem:[%s2608_s30 + $0x270] sm:$0xff] %v331_v14  ;;  %334 = vst [vmem:[%s2608_s30 + $0x278] sm:$0xff] %v333_v15  ;;  %v337_v17 = vld [vmem:[%s2603_s29 + $0x508] sm:$0xff]  ;;  %v339_v18 = vld [vmem:[%s2603_s29 + $0x510] sm:$0xff] }
  0x3b   : > { %336 = vst [vmem:[%s2608_s30 + $0x280] sm:$0xff] %v335_v16  ;;  %v341_v19 = vld [vmem:[%s2603_s29 + $0x518] sm:$0xff]  ;;  %338 = vst [vmem:[%s2608_s30 + $0x288] sm:$0xff] %v337_v17  ;;  %v343_v20 = vld [vmem:[%s2603_s29 + $0x540] sm:$0xff] }
  0x3c   : > { %340 = vst [vmem:[%s2608_s30 + $0x290] sm:$0xff] %v339_v18  ;;  %342 = vst [vmem:[%s2608_s30 + $0x298] sm:$0xff] %v341_v19  ;;  %v345_v21 = vld [vmem:[%s2603_s29 + $0x548] sm:$0xff]  ;;  %v347_v22 = vld [vmem:[%s2603_s29 + $0x550] sm:$0xff] }
  0x3d   : > { %344 = vst [vmem:[%s2608_s30 + $0x2a0] sm:$0xff] %v343_v20  ;;  %346 = vst [vmem:[%s2608_s30 + $0x2a8] sm:$0xff] %v345_v21  ;;  %v349_v23 = vld [vmem:[%s2603_s29 + $0x558] sm:$0xff]  ;;  %v351_v24 = vld [vmem:[%s2603_s29 + $0x580] sm:$0xff] }
  0x3e   : > { %348 = vst [vmem:[%s2608_s30 + $0x2b0] sm:$0xff] %v347_v22  ;;  %v353_v25 = vld [vmem:[%s2603_s29 + $0x588] sm:$0xff]  ;;  %350 = vst [vmem:[%s2608_s30 + $0x2b8] sm:$0xff] %v349_v23  ;;  %v355_v26 = vld [vmem:[%s2603_s29 + $0x590] sm:$0xff] }
  0x3f   : > { %352 = vst [vmem:[%s2608_s30 + $0x2c0] sm:$0xff] %v351_v24  ;;  %354 = vst [vmem:[%s2608_s30 + $0x2c8] sm:$0xff] %v353_v25  ;;  %v357_v27 = vld [vmem:[%s2603_s29 + $0x598] sm:$0xff]  ;;  %v359_v28 = vld [vmem:[%s2603_s29 + $0x5c0] sm:$0xff] }
  0x40   : > { %356 = vst [vmem:[%s2608_s30 + $0x2d0] sm:$0xff] %v355_v26  ;;  %358 = vst [vmem:[%s2608_s30 + $0x2d8] sm:$0xff] %v357_v27  ;;  %v361_v29 = vld [vmem:[%s2603_s29 + $0x5c8] sm:$0xff]  ;;  %v363_v30 = vld [vmem:[%s2603_s29 + $0x5d0] sm:$0xff] }
  0x41   : > { %360 = vst [vmem:[%s2608_s30 + $0x2e0] sm:$0xff] %v359_v28  ;;  %v365_v31 = vld [vmem:[%s2603_s29 + $0x5d8] sm:$0xff]  ;;  %362 = vst [vmem:[%s2608_s30 + $0x2e8] sm:$0xff] %v361_v29  ;;  %v367_v32 = vld [vmem:[%s2603_s29 + $0x600] sm:$0xff] }
  0x42   : > { %364 = vst [vmem:[%s2608_s30 + $0x2f0] sm:$0xff] %v363_v30  ;;  %366 = vst [vmem:[%s2608_s30 + $0x2f8] sm:$0xff] %v365_v31  ;;  %v369_v33 = vld [vmem:[%s2603_s29 + $0x608] sm:$0xff]  ;;  %v371_v34 = vld [vmem:[%s2603_s29 + $0x610] sm:$0xff] }
  0x43   : > { %368 = vst [vmem:[%s2608_s30 + $0x300] sm:$0xff] %v367_v32  ;;  %370 = vst [vmem:[%s2608_s30 + $0x308] sm:$0xff] %v369_v33  ;;  %v373_v35 = vld [vmem:[%s2603_s29 + $0x618] sm:$0xff]  ;;  %v375_v36 = vld [vmem:[%s2603_s29 + $0x640] sm:$0xff] }
  0x44   : > { %372 = vst [vmem:[%s2608_s30 + $0x310] sm:$0xff] %v371_v34  ;;  %v377_v37 = vld [vmem:[%s2603_s29 + $0x648] sm:$0xff]  ;;  %374 = vst [vmem:[%s2608_s30 + $0x318] sm:$0xff] %v373_v35  ;;  %v379_v38 = vld [vmem:[%s2603_s29 + $0x650] sm:$0xff] }
  0x45   : > { %376 = vst [vmem:[%s2608_s30 + $0x320] sm:$0xff] %v375_v36  ;;  %378 = vst [vmem:[%s2608_s30 + $0x328] sm:$0xff] %v377_v37  ;;  %v381_v39 = vld [vmem:[%s2603_s29 + $0x658] sm:$0xff]  ;;  %v383_v40 = vld [vmem:[%s2603_s29 + $0x680] sm:$0xff] }
  0x46   : > { %380 = vst [vmem:[%s2608_s30 + $0x330] sm:$0xff] %v379_v38  ;;  %382 = vst [vmem:[%s2608_s30 + $0x338] sm:$0xff] %v381_v39  ;;  %v385_v41 = vld [vmem:[%s2603_s29 + $0x688] sm:$0xff]  ;;  %v387_v42 = vld [vmem:[%s2603_s29 + $0x690] sm:$0xff] }
  0x47   : > { %384 = vst [vmem:[%s2608_s30 + $0x340] sm:$0xff] %v383_v40  ;;  %v389_v43 = vld [vmem:[%s2603_s29 + $0x698] sm:$0xff]  ;;  %386 = vst [vmem:[%s2608_s30 + $0x348] sm:$0xff] %v385_v41  ;;  %v391_v44 = vld [vmem:[%s2603_s29 + $0x6c0] sm:$0xff] }
  0x48   : > { %388 = vst [vmem:[%s2608_s30 + $0x350] sm:$0xff] %v387_v42  ;;  %390 = vst [vmem:[%s2608_s30 + $0x358] sm:$0xff] %v389_v43  ;;  %v393_v45 = vld [vmem:[%s2603_s29 + $0x6c8] sm:$0xff]  ;;  %v395_v46 = vld [vmem:[%s2603_s29 + $0x6d0] sm:$0xff] }
  0x49   : > { %392 = vst [vmem:[%s2608_s30 + $0x360] sm:$0xff] %v391_v44  ;;  %394 = vst [vmem:[%s2608_s30 + $0x368] sm:$0xff] %v393_v45  ;;  %v397_v47 = vld [vmem:[%s2603_s29 + $0x6d8] sm:$0xff]  ;;  %v399_v48 = vld [vmem:[%s2603_s29 + $0x700] sm:$0xff] }
  0x4a   : > { %396 = vst [vmem:[%s2608_s30 + $0x370] sm:$0xff] %v395_v46  ;;  %v401_v49 = vld [vmem:[%s2603_s29 + $0x708] sm:$0xff]  ;;  %398 = vst [vmem:[%s2608_s30 + $0x378] sm:$0xff] %v397_v47  ;;  %v403_v50 = vld [vmem:[%s2603_s29 + $0x710] sm:$0xff] }
  0x4b   : > { %400 = vst [vmem:[%s2608_s30 + $0x380] sm:$0xff] %v399_v48  ;;  %402 = vst [vmem:[%s2608_s30 + $0x388] sm:$0xff] %v401_v49  ;;  %v405_v51 = vld [vmem:[%s2603_s29 + $0x718] sm:$0xff]  ;;  %v407_v52 = vld [vmem:[%s2603_s29 + $0x740] sm:$0xff] }
  0x4c   : > { %404 = vst [vmem:[%s2608_s30 + $0x390] sm:$0xff] %v403_v50  ;;  %406 = vst [vmem:[%s2608_s30 + $0x398] sm:$0xff] %v405_v51  ;;  %v409_v53 = vld [vmem:[%s2603_s29 + $0x748] sm:$0xff]  ;;  %v411_v54 = vld [vmem:[%s2603_s29 + $0x750] sm:$0xff] }
  0x4d   : > { %408 = vst [vmem:[%s2608_s30 + $0x3a0] sm:$0xff] %v407_v52  ;;  %v413_v55 = vld [vmem:[%s2603_s29 + $0x758] sm:$0xff]  ;;  %410 = vst [vmem:[%s2608_s30 + $0x3a8] sm:$0xff] %v409_v53  ;;  %v415_v56 = vld [vmem:[%s2603_s29 + $0x780] sm:$0xff] }
  0x4e   : > { %412 = vst [vmem:[%s2608_s30 + $0x3b0] sm:$0xff] %v411_v54  ;;  %414 = vst [vmem:[%s2608_s30 + $0x3b8] sm:$0xff] %v413_v55  ;;  %v417_v57 = vld [vmem:[%s2603_s29 + $0x788] sm:$0xff]  ;;  %v419_v58 = vld [vmem:[%s2603_s29 + $0x790] sm:$0xff] }
  0x4f   : > { %416 = vst [vmem:[%s2608_s30 + $0x3c0] sm:$0xff] %v415_v56  ;;  %418 = vst [vmem:[%s2608_s30 + $0x3c8] sm:$0xff] %v417_v57  ;;  %v421_v59 = vld [vmem:[%s2603_s29 + $0x798] sm:$0xff]  ;;  %v423_v60 = vld [vmem:[%s2603_s29 + $0x7c0] sm:$0xff] }
  0x50   : > { %420 = vst [vmem:[%s2608_s30 + $0x3d0] sm:$0xff] %v419_v58  ;;  %v425_v61 = vld [vmem:[%s2603_s29 + $0x7c8] sm:$0xff]  ;;  %422 = vst [vmem:[%s2608_s30 + $0x3d8] sm:$0xff] %v421_v59  ;;  %v427_v62 = vld [vmem:[%s2603_s29 + $0x7d0] sm:$0xff] }
  0x51   : > { %424 = vst [vmem:[%s2608_s30 + $0x3e0] sm:$0xff] %v423_v60  ;;  %426 = vst [vmem:[%s2608_s30 + $0x3e8] sm:$0xff] %v425_v61  ;;  %v429_v63 = vld [vmem:[%s2603_s29 + $0x7d8] sm:$0xff] }
  0x52   : > { %428 = vst [vmem:[%s2608_s30 + $0x3f0] sm:$0xff] %v427_v62  ;;  %430 = vst [vmem:[%s2608_s30 + $0x3f8] sm:$0xff] %v429_v63 }
  0x53 PF: > { %p2349_p7 = scmp.ge.s32.totalorder %s2536_s17, 1  ;;  %p435_p8 = scmp.lt.s32.totalorder %s2536_s17, 3 }
  0x55   : > { %p436_p9 = pnand %p2349_p7, %p435_p8 }
  0x56   : > { %s442_s5 = sand.u32 (!%p436_p9), 1, %s2528_s15  }
  0x57   : > { %439 = sbr.rel (%p436_p9) target bundleno = 519 (0x207), region = 55  ;;  %s2350_s12 = sshll.u32 (!%p436_p9), %s442_s5, 10 }
  0x58   : > { %s2896_s20 = scalar_lea.vmem (!%p436_p9), [#allocation2], %s2350_s12 }
  0x5c   : > { %v2869_v0 = vld [vmem:[%s3884_s0 + $0x8] sm:$0xff]  ;;  %v2874_v1 = vld [vmem:[%s3884_s0 + $0x18] sm:$0xff]  ;;  %v833_v8 = vld [vmem:[%s2896_s20 + $0x1c0] sm:$0xff]  ;;  %vm505_vm0 = vcmask 1041408   ;;  %s2484_s15 = sshll.u32 (%p2593_p5), %s2342_s18, 6 }
  0x5d   : > { %v2879_v2 = vld [vmem:[%s3884_s0 + $0x28] sm:$0xff]  ;;  %v514_v3 = vadd.f32 %v2874_v1, %v2869_v0  ;;  %v534_v4 = vmul.f32 %v2869_v0, %v2869_v0  ;;  %v536_v5 = vmul.f32 %v2874_v1, %v2874_v1  ;;  %v2892_v6 = vld [vmem:[%s3884_s0 + $0x38] sm:$0xff]  ;;  %v837_v9 = vld [vmem:[%s2896_s20 + $0x1e0] sm:$0xff]  ;;  %s3667_s23 = scalar_lea.vmem (%p2593_p5), %s3888_s4, %s2484_s15 }
  0x5e   : > { %v538_v7 = vmul.f32 %v2879_v2, %v2879_v2  ;;  %v834_v10 = vld [vmem:[%s2896_s20 + $0x1c8] sm:$0xff]  ;;  %v2408_v12 = vcombine.high %v833_v8, %v837_v9  ;;  %v2407_v14 = vcombine.low %v833_v8, %v837_v9  ;;  %v825_v15 = vld [vmem:[%s2896_s20 + $0x180] sm:$0xff]  ;;  %v540_v29 = vmul.f32 %v2892_v6, %v2892_v6  ;;  %v2924_v38 = vld [vmem:[%s3884_s0 + $0x58] sm:$0xff] }
  0x5f   : > { %v515_v11 = vadd.f32 %v514_v3, %v2879_v2  ;;  %v838_v13 = vld [vmem:[%s2896_s20 + $0x1e8] sm:$0xff]  ;;  %v829_v16 = vld [vmem:[%s2896_s20 + $0x1a0] sm:$0xff]  ;;  %v578_v17 = vadd.f32 %v536_v5, %v534_v4  ;;  %v2944_v54 = vld [vmem:[%s3884_s0 + $0x78] sm:$0xff]  ;;  %v544_v56 = vmul.f32 %v2924_v38, %v2924_v38 }
  0x60   : > { %v2410_v18 = vcombine.high %v834_v10, %v838_v13  ;;  %v2409_v19 = vcombine.low %v834_v10, %v838_v13  ;;  %v2400_v20 = vcombine.high %v825_v15, %v829_v16  ;;  %v826_v21 = vld [vmem:[%s2896_s20 + $0x188] sm:$0xff]  ;;  %v817_v23 = vld [vmem:[%s2896_s20 + $0x140] sm:$0xff]  ;;  %1545 = vmatprep.subr.bf16.mxu0 %v2408_v12  ;;  %v2399_v31 = vcombine.low %v825_v15, %v829_v16 }
  0x61   : > { %v830_v22 = vld [vmem:[%s2896_s20 + $0x1a8] sm:$0xff]  ;;  %v821_v25 = vld [vmem:[%s2896_s20 + $0x160] sm:$0xff]  ;;  %v516_v28 = vadd.f32 %v515_v11, %v2892_v6  ;;  %v579_v30 = vadd.f32 %v578_v17, %v538_v7  ;;  %1546 = vmatpush1.bf16.msra.mxu0 %v2407_v14  ;;  %v548_v9 = vmul.f32 %v2944_v54, %v2944_v54 }
  0x62   : > { %v2402_v24 = vcombine.high %v826_v21, %v830_v22  ;;  %v818_v26 = vld [vmem:[%s2896_s20 + $0x148] sm:$0xff]  ;;  %1646 = vmatprep.subr.bf16.mxu1 %v2410_v18  ;;  %1547 = vmatprep.subr.bf16.mxu0 %v2400_v20  ;;  %v2401_v33 = vcombine.low %v826_v21, %v830_v22  ;;  %v2392_v34 = vcombine.high %v817_v23, %v821_v25  ;;  %v809_v36 = vld [vmem:[%s2896_s20 + $0x100] sm:$0xff] }
  0x63   : > { %v822_v27 = vld [vmem:[%s2896_s20 + $0x168] sm:$0xff]  ;;  %1647 = vmatpush1.bf16.msra.mxu1 %v2409_v19  ;;  %v813_v37 = vld [vmem:[%s2896_s20 + $0x120] sm:$0xff]  ;;  %v580_v43 = vadd.f32 %v579_v30, %v540_v29  ;;  %v2391_v44 = vcombine.low %v817_v23, %v821_v25 }
  0x64   : > { %v2917_v32 = vld [vmem:[%s3884_s0 + $0x48] sm:$0xff]  ;;  %1648 = vmatprep.subr.bf16.mxu1 %v2402_v24  ;;  %v2394_v35 = vcombine.high %v818_v26, %v822_v27  ;;  %v2393_v46 = vcombine.low %v818_v26, %v822_v27  ;;  %v2384_v47 = vcombine.high %v809_v36, %v813_v37  ;;  %v801_v50 = vld [vmem:[%s2896_s20 + $0xc0] sm:$0xff]  ;;  %v2383_v58 = vcombine.low %v809_v36, %v813_v37 }
  0x65   : > { %v810_v39 = vld [vmem:[%s2896_s20 + $0x108] sm:$0xff]  ;;  %v517_v41 = vadd.f32 %v516_v28, %v2917_v32  ;;  %v542_v42 = vmul.f32 %v2917_v32, %v2917_v32  ;;  %1548 = vmatpush1.bf16.msra.mxu0 %v2399_v31  ;;  %v805_v51 = vld [vmem:[%s2896_s20 + $0xe0] sm:$0xff]  ;;  %v2979_v28 = vld [vmem:[%s3884_s0 + $0x98] sm:$0xff] }
  0x66   : > { %v814_v40 = vld [vmem:[%s2896_s20 + $0x128] sm:$0xff]  ;;  %1549 = vmatprep.subr.bf16.mxu0 %v2392_v34  ;;  %v2376_v60 = vcombine.high %v801_v50, %v805_v51  ;;  %v793_v3 = vld [vmem:[%s2896_s20 + $0x80] sm:$0xff]  ;;  %v2375_v11 = vcombine.low %v801_v50, %v805_v51  ;;  %v2992_v34 = vld [vmem:[%s3884_s0 + $0xb8] sm:$0xff]  ;;  %v552_v37 = vmul.f32 %v2979_v28, %v2979_v28 }
  0x67   : > { %v2934_v45 = vld [vmem:[%s3884_s0 + $0x68] sm:$0xff]  ;;  %1649 = vmatpush1.bf16.msra.mxu1 %v2401_v33  ;;  %v518_v48 = vadd.f32 %v517_v41, %v2924_v38  ;;  %v2386_v49 = vcombine.high %v810_v39, %v814_v40  ;;  %v581_v57 = vadd.f32 %v580_v43, %v542_v42  ;;  %v2385_v59 = vcombine.low %v810_v39, %v814_v40  ;;  %v797_v4 = vld [vmem:[%s2896_s20 + $0xa0] sm:$0xff]  ;;  %v3015_v43 = vld [vmem:[%s3884_s0 + $0x10] sm:$0xff] }
  0x68   : > { %1650 = vmatprep.subr.bf16.mxu1 %v2394_v35  ;;  %v802_v52 = vld [vmem:[%s2896_s20 + $0xc8] sm:$0xff]  ;;  %v546_v62 = vmul.f32 %v2934_v45, %v2934_v45  ;;  %v2368_v14 = vcombine.high %v793_v3, %v797_v4  ;;  %v785_v17 = vld [vmem:[%s2896_s20 + $0x40] sm:$0xff]  ;;  %v2367_v23 = vcombine.low %v793_v3, %v797_v4 }
  0x69   : > { %v806_v53 = vld [vmem:[%s2896_s20 + $0xe8] sm:$0xff]  ;;  %v519_v55 = vadd.f32 %v518_v48, %v2934_v45  ;;  %1550 = vmatpush1.bf16.msra.mxu0 %v2391_v44  ;;  %v582_v10 = vadd.f32 %v581_v57, %v544_v56  ;;  %v789_v18 = vld [vmem:[%s2896_s20 + $0x60] sm:$0xff] }
  0x6a   : > { %1551 = vmatprep.subr.bf16.mxu0 %v2384_v47  ;;  %v2952_v61 = vld [vmem:[%s3884_s0 + $0x88] sm:$0xff]  ;;  %v2378_v63 = vcombine.high %v802_v52, %v806_v53  ;;  %v2377_v13 = vcombine.low %v802_v52, %v806_v53  ;;  %v2971_v24 = vld [vmem:[%s2896_s20] sm:$0xff]  ;;  %v2360_v26 = vcombine.high %v785_v17, %v789_v18  ;;  %v2359_v44 = vcombine.low %v785_v17, %v789_v18 }
  0x6b   : > { %1651 = vmatpush1.bf16.msra.mxu1 %v2393_v46  ;;  %v520_v5 = vadd.f32 %v519_v55, %v2944_v54  ;;  %v794_v7 = vld [vmem:[%s2896_s20 + $0x88] sm:$0xff]  ;;  %v550_v12 = vmul.f32 %v2952_v61, %v2952_v61  ;;  %v583_v15 = vadd.f32 %v582_v10, %v546_v62  ;;  %v2974_v27 = vld [vmem:[%s2896_s20 + $0x20] sm:$0xff]  ;;  %v556_v47 = vmul.f32 %v2992_v34, %v2992_v34 }
  0x6c   : > { %1652 = vmatprep.subr.bf16.mxu1 %v2386_v49  ;;  %v798_v8 = vld [vmem:[%s2896_s20 + $0xa8] sm:$0xff]  ;;  %v3010_v42 = vld [vmem:[%s3884_s0] sm:$0xff]  ;;  %v2352_v51 = vcombine.high %v2971_v24, %v2974_v27 }
  0x6d   : > { %1552 = vmatpush1.bf16.msra.mxu0 %v2383_v58  ;;  %v2370_v16 = vcombine.high %v794_v7, %v798_v8  ;;  %v521_v19 = vadd.f32 %v520_v5, %v2952_v61  ;;  %v786_v20 = vld [vmem:[%s2896_s20 + $0x48] sm:$0xff]  ;;  %v584_v22 = vadd.f32 %v583_v15, %v548_v9  ;;  %v2369_v25 = vcombine.low %v794_v7, %v798_v8  ;;  %v3023_v49 = vld [vmem:[%s3884_s0 + $0x20] sm:$0xff] }
  0x6e   : > { %1553 = vmatprep.subr.bf16.mxu0 %v2376_v60  ;;  %v790_v21 = vld [vmem:[%s2896_s20 + $0x68] sm:$0xff]  ;;  %v494_v53 = vadd.f32 %v3015_v43, %v3010_v42  ;;  %v897_v56 = vld [vmem:[%s2896_s20 + $0x3c0] sm:$0xff]  ;;  %v3038_v60 = vld [vmem:[%s3884_s0 + $0x30] sm:$0xff]  ;;  %v533_v5 = vmul.f32 %v3010_v42, %v3010_v42  ;;  %v535_v7 = vmul.f32 %v3015_v43, %v3015_v43  ;;  %v2351_v8 = vcombine.low %v2971_v24, %v2974_v27 }
  0x6f   : > { %1653 = vmatpush1.bf16.msra.mxu1 %v2385_v59  ;;  %v2984_v29 = vld [vmem:[%s3884_s0 + $0xa8] sm:$0xff]  ;;  %v585_v30 = vadd.f32 %v584_v22, %v550_v12  ;;  %v2362_v31 = vcombine.high %v786_v20, %v790_v21  ;;  %v522_v36 = vadd.f32 %v521_v19, %v2979_v28  ;;  %v2361_v50 = vcombine.low %v786_v20, %v790_v21  ;;  %v901_v57 = vld [vmem:[%s2896_s20 + $0x3e0] sm:$0xff]  ;;  %v3066_v21 = vld [vmem:[%s3884_s0 + $0x50] sm:$0xff] }
  0x70   : > { %1654 = vmatprep.subr.bf16.mxu1 %v2378_v63  ;;  %v2987_v33 = vld [vmem:[%s2896_s20 + $0x8] sm:$0xff]  ;;  %v554_v40 = vmul.f32 %v2984_v29, %v2984_v29  ;;  %v495_v4 = vadd.f32 %v494_v53, %v3023_v49  ;;  %v3054_v12 = vld [vmem:[%s3884_s0 + $0x40] sm:$0xff]  ;;  %v537_v17 = vmul.f32 %v3023_v49, %v3023_v49  ;;  %v2471_v22 = vcombine.low %v897_v56, %v901_v57 }
  0x71   : > { %1554 = vmatpush1.bf16.msra.mxu0 %v2375_v11  ;;  %v2997_v35 = vld [vmem:[%s3884_s0 + $0xc8] sm:$0x3]  ;;  %v523_v46 = vadd.f32 %v522_v36, %v2984_v29  ;;  %v586_v48 = vadd.f32 %v585_v30, %v552_v37  ;;  %v893_v15 = vld [vmem:[%s2896_s20 + $0x3a0] sm:$0xff]  ;;  %v559_v27 = vadd.f32 %v535_v7, %v533_v5 }
  0x72   : > { %1555 = vmatprep.subr.bf16.mxu0 %v2368_v14  ;;  %v782_v39 = vld [vmem:[%s2896_s20 + $0x28] sm:$0xff]  ;;  %v558_v41 = vmul.f32 %v2997_v35, %v2997_v35  ;;  %v525_v52 = vsel %vm505_vm0, %v2997_v35, 0.0  ;;  %v3057_v14 = vld [vmem:[%s2896_s20 + $0x380] sm:$0xff] }
  0x73   : > { %1655 = vmatpush1.bf16.msra.mxu1 %v2377_v13  ;;  %v2354_v55 = vcombine.high %v2987_v33, %v782_v39  ;;  %v524_v58 = vadd.f32 %v523_v46, %v2992_v34  ;;  %v587_v59 = vadd.f32 %v586_v48, %v554_v40  ;;  %v898_v62 = vld [vmem:[%s2896_s20 + $0x3c8] sm:$0xff]  ;;  %v2353_v9 = vcombine.low %v2987_v33, %v782_v39  ;;  %v3077_v37 = vld [vmem:[%s3884_s0 + $0x60] sm:$0xff] }
  0x74   : > { %1656 = vmatprep.subr.bf16.mxu1 %v2370_v16  ;;  %v902_v63 = vld [vmem:[%s2896_s20 + $0x3e8] sm:$0xff]  ;;  %v589_v3 = vsel %vm505_vm0, %v558_v41, 0.0  ;;  %v2472_v13 = vcombine.high %v897_v56, %v901_v57  ;;  %v496_v16 = vadd.f32 %v495_v4, %v3038_v60  ;;  %v3080_v39 = vld [vmem:[%s2896_s20 + $0x340] sm:$0xff]  ;;  %v560_v46 = vadd.f32 %v559_v27, %v537_v17 }
  0x75   : > { %1556 = vmatpush1.bf16.msra.mxu0 %v2367_v23  ;;  %v526_v10 = vadd.f32 %v525_v52, %v524_v58  ;;  %v588_v11 = vadd.f32 %v587_v59, %v556_v47  ;;  %v2474_v18 = vcombine.high %v898_v62, %v902_v63  ;;  %v890_v23 = vld [vmem:[%s2896_s20 + $0x388] sm:$0xff]  ;;  %v2473_v30 = vcombine.low %v898_v62, %v902_v63  ;;  %v3083_v40 = vld [vmem:[%s2896_s20 + $0x360] sm:$0xff] }
  0x76   : > { %1557 = vmatprep.subr.bf16.mxu0 %v2360_v26  ;;  %v894_v24 = vld [vmem:[%s2896_s20 + $0x3a8] sm:$0xff]  ;;  %v539_v26 = vmul.f32 %v3038_v60, %v3038_v60  ;;  %v2463_v52 = vcombine.low %v3057_v14, %v893_v15  ;;  %v543_v57 = vmul.f32 %v3066_v21, %v3066_v21  ;;  %v2456_v62 = vcombine.high %v3080_v39, %v3083_v40  ;;  %v3104_v4 = vld [vmem:[%s3884_s0 + $0x80] sm:$0xff] }
  0x77   : > { %1657 = vmatpush1.bf16.msra.mxu1 %v2369_v25  ;;  %v527_v19 = vrot.slane %v526_v10, 4  ;;  %v590_v20 = vadd.f32 %v589_v3, %v588_v11  ;;  %v497_v25 = vadd.f32 %v496_v16, %v3054_v12  ;;  %v2466_v47 = vcombine.high %v890_v23, %v894_v24  ;;  %v882_v53 = vld [vmem:[%s2896_s20 + $0x348] sm:$0xff]  ;;  %v3107_v5 = vld [vmem:[%s2896_s20 + $0x300] sm:$0xff] }
  0x78   : > { %1658 = vmatprep.subr.bf16.mxu1 %v2362_v31  ;;  %v2464_v31 = vcombine.high %v3057_v14, %v893_v15  ;;  %v561_v58 = vadd.f32 %v560_v46, %v539_v26  ;;  %v2465_v59 = vcombine.low %v890_v23, %v894_v24  ;;  %v877_v7 = vld [vmem:[%s2896_s20 + $0x320] sm:$0xff]  ;;  %v3116_v15 = vld [vmem:[%s3884_s0 + $0x90] sm:$0xff]  ;;  %v2455_v16 = vcombine.low %v3080_v39, %v3083_v40  ;;  %v874_v17 = vld [vmem:[%s2896_s20 + $0x308] sm:$0xff] }
  0x79   : > { %1558 = vmatpush1.bf16.msra.mxu0 %v2359_v44  ;;  %v528_v33 = vadd.f32 %v527_v19, %v526_v10  ;;  %v591_v36 = vrot.slane %v590_v20, 4  ;;  %v498_v41 = vadd.f32 %v497_v25, %v3066_v21  ;;  %v541_v44 = vmul.f32 %v3054_v12, %v3054_v12  ;;  %v3129_v27 = vld [vmem:[%s3884_s0 + $0xa0] sm:$0xff] }
  0x7a   : > { %1559 = vmatprep.subr.bf16.mxu0 %v2352_v51  ;;  %v3091_v51 = vld [vmem:[%s3884_s0 + $0x70] sm:$0xff]  ;;  %v2448_v24 = vcombine.high %v3107_v5, %v877_v7  ;;  %v549_v39 = vmul.f32 %v3104_v4, %v3104_v4 }
  0x7b   : > { %1659 = vmatpush1.bf16.msra.mxu1 %v2361_v50  ;;  %v529_v48 = vrot.slane %v528_v33, 2  ;;  %v592_v50 = vadd.f32 %v591_v36, %v590_v20  ;;  %v499_v56 = vadd.f32 %v498_v41, %v3077_v37  ;;  %v562_v10 = vadd.f32 %v561_v58, %v541_v44 }
  0x7c   : > { %1660 = vmatprep.subr.bf16.mxu1 %v2354_v55  ;;  %v886_v55 = vld [vmem:[%s2896_s20 + $0x368] sm:$0xff]  ;;  %v547_v20 = vmul.f32 %v3091_v51, %v3091_v51  ;;  %v2447_v44 = vcombine.low %v3107_v5, %v877_v7  ;;  %v553_v5 = vmul.f32 %v3129_v27, %v3129_v27 }
  0x7d   : > { %1560 = vmatpush1.bf16.msra.mxu0 %v2351_v8  ;;  %v530_v63 = vadd.f32 %v529_v48, %v528_v33  ;;  %v593_v3 = vrot.slane %v592_v50, 2  ;;  %v500_v8 = vadd.f32 %v499_v56, %v3091_v51  ;;  %v2458_v11 = vcombine.high %v882_v53, %v886_v55  ;;  %v3136_v33 = vld [vmem:[%s3884_s0 + $0xc0] sm:$0x3]  ;;  %v3147_v48 = vld [vmem:[%s3884_s0 + $0xb0] sm:$0xff] }
  0x7e   : > { %1561 = vmatprep.subr.bf16.mxu0 %v2472_v13  ;;  %v2457_v23 = vcombine.low %v882_v53, %v886_v55  ;;  %v870_v53 = vld [vmem:[%s2896_s20 + $0x2e8] sm:$0xff]  ;;  %v551_v56 = vmul.f32 %v3116_v15, %v3116_v15 }
  0x7f   : > { %1661 = vmatpush1.bf16.msra.mxu1 %v2353_v9  ;;  %v545_v9 = vmul.f32 %v3077_v37, %v3077_v37  ;;  %v531_v13 = vrot.slane %v530_v63, 1  ;;  %v594_v14 = vadd.f32 %v593_v3, %v592_v50  ;;  %v501_v19 = vadd.f32 %v500_v8, %v3104_v4 }
  0x80   : > { %1662 = vmatprep.subr.bf16.mxu1 %v2474_v18  ;;  %v878_v18 = vld [vmem:[%s2896_s20 + $0x328] sm:$0xff] }
  0x81   : > { %1562 = vmatpush2.bf16.msra.mxu0 %v2471_v22  ;;  %v563_v22 = vadd.f32 %v562_v10, %v543_v57  ;;  %v532_v25 = vadd.f32 %v531_v13, %v530_v63  ;;  %v595_v26 = vrot.slane %v594_v14, 1  ;;  %v502_v36 = vadd.f32 %v501_v19, %v3116_v15  ;;  %v861_v10 = vld [vmem:[%s2896_s20 + $0x2a0] sm:$0xff] }
  0x82   : > { %1563 = vmatprep.subr.bf16.mxu0 %v2464_v31  ;;  %v869_v31 = vld [vmem:[%s2896_s20 + $0x2e0] sm:$0xff]  ;;  %v2450_v41 = vcombine.high %v874_v17, %v878_v18  ;;  %v2449_v50 = vcombine.low %v874_v17, %v878_v18  ;;  %v506_v63 = vsel %vm505_vm0, %v3136_v33, 0.0  ;;  %v557_v13 = vmul.f32 %v3136_v33, %v3136_v33 }
  0x83   : > { %1663 = vmatpush2.bf16.msra.mxu1 %v2473_v30  ;;  %v865_v30 = vld [vmem:[%s2896_s20 + $0x2c0] sm:$0xff]  ;;  %v564_v40 = vadd.f32 %v563_v22, %v545_v9  ;;  %v596_v46 = vadd.f32 %v595_v26, %v594_v14  ;;  %v503_v55 = vadd.f32 %v502_v36, %v3129_v27  ;;  %v858_v14 = vld [vmem:[%s2896_s20 + $0x288] sm:$0xff]  ;;  %v555_v18 = vmul.f32 %v3147_v48, %v3147_v48 }
  0x84   : > { %1664 = vmatprep.subr.bf16.mxu1 %v2466_v47  ;;  %v3142_v47 = vmul.f32 0.010204081, %v532_v25  ;;  %v2440_v58 = vcombine.high %v865_v30, %v869_v31  ;;  %v857_v9 = vld [vmem:[%s2896_s20 + $0x280] sm:$0xff] }
  0x85   : > { %1564 = vmatpush2.bf16.msra.mxu0 %v2463_v52  ;;  %v866_v52 = vld [vmem:[%s2896_s20 + $0x2c8] sm:$0xff]  ;;  %v565_v57 = vadd.f32 %v564_v40, %v547_v20  ;;  %v504_v3 = vadd.f32 %v503_v55, %v3147_v48  ;;  %v2439_v20 = vcombine.low %v865_v30, %v869_v31  ;;  %v853_v40 = vld [vmem:[%s2896_s20 + $0x260] sm:$0xff] }
  0x86   : > { %1565 = vmatprep.subr.bf16.mxu0 %v2456_v62  ;;  %v602_v62 = vmul.f32 %v3142_v47, %v3142_v47  ;;  %v2442_v8 = vcombine.high %v866_v52, %v870_v53  ;;  %v854_v30 = vld [vmem:[%s2896_s20 + $0x268] sm:$0xff] }
  0x87   : > { %1665 = vmatpush2.bf16.msra.mxu1 %v2465_v59  ;;  %v600_v59 = vmul.f32 0.010204081, %v596_v46  ;;  %v566_v7 = vadd.f32 %v565_v57, %v549_v39  ;;  %v507_v17 = vadd.f32 %v506_v63, %v504_v3  ;;  %v849_v39 = vld [vmem:[%s2896_s20 + $0x240] sm:$0xff]  ;;  %v850_v46 = vld [vmem:[%s2896_s20 + $0x248] sm:$0xff]  ;;  %v622_v3 = vsub.f32 %v2952_v61, %v3142_v47 }
  0x88   : > { %1666 = vmatprep.subr.bf16.mxu1 %v2458_v11  ;;  %v845_v57 = vld [vmem:[%s2896_s20 + $0x220] sm:$0xff] }
  0x89   : > { %1566 = vmatpush2.bf16.msra.mxu0 %v2455_v16  ;;  %v604_v11 = vsub.f32 %v600_v59, %v602_v62  ;;  %v862_v16 = vld [vmem:[%s2896_s20 + $0x2a8] sm:$0xff]  ;;  %v567_v19 = vadd.f32 %v566_v7, %v551_v56  ;;  %v508_v25 = vrot.slane %v507_v17, 4  ;;  %v841_v56 = vld [vmem:[%s2896_s20 + $0x200] sm:$0xff]  ;;  %v2426_v62 = vcombine.high %v850_v46, %v854_v30 }
  0x8a   : > { %1567 = vmatprep.subr.bf16.mxu0 %v2448_v24  ;;  %v2432_v24 = vcombine.high %v857_v9, %v861_v10  ;;  %v2434_v36 = vcombine.high %v858_v14, %v862_v16  ;;  %v842_v7 = vld [vmem:[%s2896_s20 + $0x208] sm:$0xff] }
  0x8b   : > { %1667 = vmatpush2.bf16.msra.mxu1 %v2457_v23  ;;  %v632_v22 = vadd.f32 1e-05, %v604_v11  ;;  %v2441_v23 = vcombine.low %v866_v52, %v870_v53  ;;  %v568_v26 = vadd.f32 %v567_v19, %v553_v5  ;;  %v509_v31 = vadd.f32 %v508_v25, %v507_v17 }
  0x8c   : > { %1668 = vmatprep.subr.bf16.mxu1 %v2450_v41  ;;  %v663_v41 = vlaneseq  ;;  %v2433_v52 = vcombine.low %v858_v14, %v862_v16  ;;  %v2424_v53 = vcombine.high %v849_v39, %v853_v40  ;;  %v624_v5 = vsub.f32 %v2979_v28, %v3142_v47 }
  0x8d   : > { %1568 = vmatpush2.bf16.msra.mxu0 %v2447_v44  ;;  %2510 = vrsqrt.f32 %v632_v22  ;;  %v570_v44 = vsel %vm505_vm0, %v557_v13, 0.0  ;;  %v569_v55 = vadd.f32 %v568_v26, %v555_v18  ;;  %v2423_v11 = vcombine.low %v849_v39, %v853_v40 }
  0x8e   : > { %1569 = vmatprep.subr.bf16.mxu0 %v2440_v58  ;;  %v510_v58 = vrot.slane %v509_v31, 2  ;;  %v3176_v63 = vshrl.u32 %v663_v41, 7  ;;  %v2425_v13 = vcombine.low %v850_v46, %v854_v30  ;;  %v2416_v14 = vcombine.high %v841_v56, %v845_v57  ;;  %v3203_v41 = vld [vmem:[%s2896_s20 + $0x1d8] sm:$0xff]  ;;  %v3213_v30 = vld [vmem:[%s3886_s2] sm:$0x3] }
  0x8f   : > { %1669 = vmatpush2.bf16.msra.mxu1 %v2449_v50  ;;  %v2431_v50 = vcombine.low %v857_v9, %v861_v10  ;;  %v571_v59 = vadd.f32 %v570_v44, %v569_v55  ;;  %v626_v18 = vsub.f32 %v2984_v29, %v3142_v47  ;;  %v628_v19 = vsub.f32 %v2992_v34, %v3142_v47  ;;  %v3206_v44 = vld [vmem:[%s2896_s20 + $0x1f8] sm:$0xff] }
  0x90   : > { %1670 = vmatprep.subr.bf16.mxu1 %v2442_v8  ;;  %v846_v8 = vld [vmem:[%s2896_s20 + $0x228] sm:$0xff]  ;;  %v511_v9 = vadd.f32 %v510_v58, %v509_v31  ;;  %v669_v22 = vsub.s32 1, %v3176_v63  ;;  %v2415_v25 = vcombine.low %v841_v56, %v845_v57  ;;  %v606_v26 = vsub.f32 %v2869_v0, %v3142_v47 }
  0x91   : > { %1570 = vmatpush2.bf16.msra.mxu0 %v2439_v20  ;;  %v572_v10 = vrot.slane %v571_v59, 4  ;;  %v2418_v20 = vcombine.high %v842_v7, %v846_v8  ;;  %v608_v46 = vsub.f32 %v2874_v1, %v3142_v47  ;;  %v610_v0 = vsub.f32 %v2879_v2, %v3142_v47 }
  0x92   : > { %1571 = vmatprep.subr.bf16.mxu0 %v2432_v24  ;;  %v512_v16 = vrot.slane %v511_v9, 1  ;;  %v3193_v24 = vld [vmem:[%s2896_s20 + $0x1f0] sm:$0xff]  ;;  %v612_v31 = vsub.f32 %v2892_v6, %v3142_v47  ;;  %v630_v55 = vsub.f32 %v2997_v35, %v3142_v47  ;;  %v2414_v2 = vcombine.high %v3203_v41, %v3206_v44 }
  0x93   : > { %1671 = vmatpush2.bf16.msra.mxu1 %v2441_v23  ;;  %v573_v17 = vadd.f32 %v572_v10, %v571_v59  ;;  %v3190_v23 = vld [vmem:[%s2896_s20 + $0x1d0] sm:$0xff]  ;;  %v3233_v57 = vrot.slane %v3213_v30, %v669_v22  ;;  %v614_v59 = vsub.f32 %v2917_v32, %v3142_v47  ;;  %v618_v32 = vsub.f32 %v2934_v45, %v3142_v47 }
  0x94   : > { %1672 = vmatprep.subr.bf16.mxu1 %v2434_v36  ;;  %v3200_v36 = vld [vmem:[%s3885_s1] sm:$0x3]  ;;  %v513_v39 = vadd.f32 %v512_v16, %v511_v9  ;;  %v2412_v1 = vcombine.high %v3190_v23, %v3193_v24 }
  0x95   : > { %1572 = vmatpush2.bf16.msra.mxu0 %v2431_v50  ;;  %v574_v40 = vrot.slane %v573_v17, 2  ;;  %v2417_v50 = vcombine.low %v842_v7, %v846_v8  ;;  %v3226_v56 = vrot.slane %v3200_v36, %v669_v22 }
  0x96   : > { %1573 = vmatprep.subr.bf16.mxu0 %v2424_v53  ;;  %v3221_v53 = vmul.f32 0.010204081, %v513_v39 }
  0x97   : > { %1673 = vmatpush2.bf16.msra.mxu1 %v2433_v52  ;;  %v575_v52 = vadd.f32 %v574_v40, %v573_v17 }
  0x98   : > { %1674 = vmatprep.subr.bf16.mxu1 %v2426_v62  ;;  %v616_v62 = vsub.f32 %v2924_v38, %v3142_v47  ;;  %v629_v34 = vsub.f32 %v3136_v33, %v3221_v53 }
  0x99   : > { %1574 = vmatpush2.bf16.msra.mxu0 %v2423_v11  ;;  %v576_v58 = vrot.slane %v575_v52, 1 }
  0x9a   : > { %1575 = vmatprep.subr.bf16.mxu0 %v2416_v14  ;;  %v3230_v6 = vpop.eup %2510 }
  0x9b   : > { %1675 = vmatpush2.bf16.msra.mxu1 %v2425_v13  ;;  %v636_v7 = vmul.f32 %v3230_v6, %v606_v26  ;;  %v638_v8 = vmul.f32 %v3230_v6, %v608_v46  ;;  %v640_v9 = vmul.f32 %v3230_v6, %v610_v0  ;;  %v642_v10 = vmul.f32 %v3230_v6, %v612_v31 }
  0x9c   : > { %1676 = vmatprep.subr.bf16.mxu1 %v2418_v20  ;;  %v577_v11 = vadd.f32 %v576_v58, %v575_v52  ;;  %v601_v13 = vmul.f32 %v3221_v53, %v3221_v53  ;;  %v644_v22 = vmul.f32 %v3230_v6, %v614_v59  ;;  %v620_v26 = vsub.f32 %v2944_v54, %v3142_v47 }
  0x9d   : > { %1576 = vmatpush2.bf16.msra.mxu0 %v2415_v25  ;;  %v674_v38 = vmul.f32 %v3226_v56, %v636_v7  ;;  %v676_v14 = vmul.f32 %v3226_v56, %v638_v8  ;;  %v678_v16 = vmul.f32 %v3226_v56, %v640_v9  ;;  %v680_v17 = vmul.f32 %v3226_v56, %v642_v10 }
  0x9e   : > { %1747 = vmatprep.subr.bf16.mxu0 %v2412_v1  ;;  %v599_v20 = vmul.f32 0.010204081, %v577_v11  ;;  %v646_v25 = vmul.f32 %v3230_v6, %v616_v62  ;;  %v682_v31 = vmul.f32 %v3226_v56, %v644_v22  ;;  %v648_v7 = vmul.f32 %v3230_v6, %v618_v32 }
  0x9f   : > { %1677 = vmatpush2.bf16.msra.mxu1 %v2417_v50  ;;  %v712_v39 = vadd.f32 %v3233_v57, %v674_v38  ;;  %v714_v45 = vadd.f32 %v3233_v57, %v676_v14  ;;  %v716_v40 = vadd.f32 %v3233_v57, %v678_v16  ;;  %v718_v46 = vadd.f32 %v3233_v57, %v680_v17 }
  0xa0   : > { %1848 = vmatprep.subr.bf16.mxu1 %v2414_v2  ;;  %v603_v0 = vsub.f32 %v599_v20, %v601_v13  ;;  %v684_v50 = vmul.f32 %v3226_v56, %v646_v25  ;;  %v720_v54 = vadd.f32 %v3233_v57, %v682_v31  ;;  %v650_v10 = vmul.f32 %v3230_v6, %v620_v26 }
  0xa1   : > { %v738_v52 = vmax.f32 %v712_v39, 0.0  ;;  %v740_v1 = vmax.f32 %v714_v45, 0.0  ;;  %v742_v2 = vmax.f32 %v716_v40, 0.0  ;;  %v744_v58 = vmax.f32 %v718_v46, 0.0 }
  0xa2   : > { %v631_v59 = vadd.f32 1e-05, %v603_v0  ;;  %v722_v62 = vadd.f32 %v3233_v57, %v684_v50  ;;  %v746_v11 = vmax.f32 %v720_v54, 0.0  ;;  %v686_v38 = vmul.f32 %v3226_v56, %v648_v7 }
  0xa3   : > { %v3264_v8 = vpack.c.bf16 %v740_v1, %v738_v52  ;;  %v3266_v9 = vpack.c.bf16 %v744_v58, %v742_v2  ;;  %v688_v14 = vmul.f32 %v3226_v56, %v650_v10  ;;  %v652_v32 = vmul.f32 %v3230_v6, %v622_v3  ;;  %v3325_v1 = vld [vmem:[%s2896_s20 + $0x1b0] sm:$0xff]  ;;  %v3330_v58 = vld [vmem:[%s2896_s20 + $0x198] sm:$0xff] }
  0xa4   : > { %2512 = vrsqrt.f32 %v631_v59  ;;  %v748_v13 = vmax.f32 %v722_v62, 0.0  ;;  %v724_v17 = vadd.f32 %v3233_v57, %v686_v38  ;;  %v654_v20 = vmul.f32 %v3230_v6, %v624_v5  ;;  %v3333_v59 = vld [vmem:[%s2896_s20 + $0x1b8] sm:$0xff] }
  0xa5   : > { %1577 = vmatprep.mubr.bf16.mxu0 %v3264_v8  ;;  %1678 = vmatprep.mubr.bf16.mxu1 %v3264_v8  ;;  %v665_v22 = vsub.s32 0, %v3176_v63  ;;  %v726_v25 = vadd.f32 %v3233_v57, %v688_v14  ;;  %v690_v26 = vmul.f32 %v3226_v56, %v652_v32  ;;  %v656_v61 = vmul.f32 %v3230_v6, %v626_v18 }
  0xa6   : > { %v3277_v16 = vpack.c.bf16 %v748_v13, %v746_v11  ;;  %v750_v3 = vmax.f32 %v724_v17, 0.0  ;;  %v692_v39 = vmul.f32 %v3226_v56, %v654_v20  ;;  %v658_v28 = vmul.f32 %v3230_v6, %v628_v19 }
  0xa7   : > { %v752_v5 = vmax.f32 %v726_v25, 0.0  ;;  %v728_v63 = vadd.f32 %v3233_v57, %v690_v26  ;;  %v694_v45 = vmul.f32 %v3226_v56, %v656_v61  ;;  %v660_v18 = vmul.f32 %v3230_v6, %v630_v55  ;;  %v3322_v6 = vld [vmem:[%s2896_s20 + $0x190] sm:$0xff] }
  0xa8   : > { %v730_v40 = vadd.f32 %v3233_v57, %v692_v39  ;;  %v696_v29 = vmul.f32 %v3226_v56, %v658_v28  ;;  %v3307_v19 = vrot.slane %v3200_v36, %v665_v22  ;;  %v3313_v50 = vrot.slane %v3213_v30, %v665_v22 }
  0xa9   : > { %v3309_v46 = vpack.c.bf16 %v752_v5, %v750_v3  ;;  %v754_v0 = vmax.f32 %v728_v63, 0.0  ;;  %v732_v31 = vadd.f32 %v3233_v57, %v694_v45  ;;  %v698_v47 = vmul.f32 %v3226_v56, %v660_v18 }
  0xaa   : > { %v756_v52 = vmax.f32 %v730_v40, 0.0  ;;  %v734_v35 = vadd.f32 %v3233_v57, %v696_v29  ;;  %v605_v55 = vsub.f32 %v3010_v42, %v3221_v53  ;;  %v607_v36 = vsub.f32 %v3015_v43, %v3221_v53 }
  0xab   : > { %v609_v2 = vsub.f32 %v3023_v49, %v3221_v53  ;;  %v758_v30 = vmax.f32 %v732_v31, 0.0  ;;  %v611_v56 = vsub.f32 %v3038_v60, %v3221_v53  ;;  %v3340_v43 = vadd.f32 %v3233_v57, %v698_v47 }
  0xac   : > { %v3337_v54 = vpack.c.bf16 %v756_v52, %v754_v0  ;;  %v760_v42 = vmax.f32 %v734_v35, 0.0  ;;  %v613_v62 = vsub.f32 %v3054_v12, %v3221_v53  ;;  %v615_v49 = vsub.f32 %v3066_v21, %v3221_v53 }
  0xad   : > { %v617_v7 = vsub.f32 %v3077_v37, %v3221_v53  ;;  %v619_v10 = vsub.f32 %v3091_v51, %v3221_v53  ;;  %v2411_v60 = vcombine.low %v3190_v23, %v3193_v24  ;;  %v2413_v11 = vcombine.low %v3203_v41, %v3206_v44 }
  0xae   : > { %v2403_v57 = vcombine.low %v3322_v6, %v3325_v1  ;;  %v3356_v13 = vpack.c.bf16 %v760_v42, %v758_v30  ;;  %v2404_v21 = vcombine.high %v3322_v6, %v3325_v1  ;;  %v2405_v37 = vcombine.low %v3330_v58, %v3333_v59  ;;  %v823_v42 = vld [vmem:[%s2896_s20 + $0x170] sm:$0xff]  ;;  %v808_v6 = vld [vmem:[%s2896_s20 + $0xf8] sm:$0xff] }
  0xaf   : > { %v621_v51 = vsub.f32 %v3104_v4, %v3221_v53  ;;  %v623_v23 = vsub.f32 %v3116_v15, %v3221_v53  ;;  %v625_v63 = vsub.f32 %v3129_v27, %v3221_v53  ;;  %v627_v45 = vsub.f32 %v3147_v48, %v3221_v53 }
  0xb0   : > { %v2406_v30 = vcombine.high %v3330_v58, %v3333_v59 }
  0xb1   : > { %v3358_v12 = vpop.eup %2512 }
  0xb2   : > { %v635_v24 = vmul.f32 %v3358_v12, %v605_v55  ;;  %v637_v41 = vmul.f32 %v3358_v12, %v607_v36  ;;  %v639_v44 = vmul.f32 %v3358_v12, %v609_v2  ;;  %v641_v38 = vmul.f32 %v3358_v12, %v611_v56  ;;  %v819_v56 = vld [vmem:[%s2896_s20 + $0x150] sm:$0xff] }
  0xb3   : > { %v643_v14 = vmul.f32 %v3358_v12, %v613_v62  ;;  %v645_v32 = vmul.f32 %v3358_v12, %v615_v49  ;;  %v647_v17 = vmul.f32 %v3358_v12, %v617_v7  ;;  %v649_v20 = vmul.f32 %v3358_v12, %v619_v10  ;;  %v820_v7 = vld [vmem:[%s2896_s20 + $0x158] sm:$0xff] }
  0xb4   : > { %v673_v4 = vmul.f32 %v3307_v19, %v635_v24  ;;  %v675_v15 = vmul.f32 %v3307_v19, %v637_v41  ;;  %v677_v22 = vmul.f32 %v3307_v19, %v639_v44  ;;  %v679_v25 = vmul.f32 %v3307_v19, %v641_v38  ;;  %v824_v10 = vld [vmem:[%s2896_s20 + $0x178] sm:$0xff] }
  0xb5   : > { %v681_v26 = vmul.f32 %v3307_v19, %v643_v14  ;;  %v683_v61 = vmul.f32 %v3307_v19, %v645_v32  ;;  %v685_v3 = vmul.f32 %v3307_v19, %v647_v17  ;;  %v687_v39 = vmul.f32 %v3307_v19, %v649_v20 }
  0xb6   : > { %v711_v28 = vadd.f32 %v3313_v50, %v673_v4  ;;  %v713_v5 = vadd.f32 %v3313_v50, %v675_v15  ;;  %v715_v35 = vadd.f32 %v3313_v50, %v677_v22  ;;  %v717_v27 = vadd.f32 %v3313_v50, %v679_v25  ;;  %v811_v22 = vld [vmem:[%s2896_s20 + $0x110] sm:$0xff] }
  0xb7   : > { %v719_v40 = vadd.f32 %v3313_v50, %v681_v26  ;;  %v721_v29 = vadd.f32 %v3313_v50, %v683_v61  ;;  %v723_v18 = vadd.f32 %v3313_v50, %v685_v3  ;;  %v725_v0 = vadd.f32 %v3313_v50, %v687_v39  ;;  %v815_v61 = vld [vmem:[%s2896_s20 + $0x130] sm:$0xff] }
  0xb8   : > { %v737_v31 = vmax.f32 %v711_v28, 0.0  ;;  %v739_v52 = vmax.f32 %v713_v5, 0.0  ;;  %v651_v62 = vmul.f32 %v3358_v12, %v621_v51  ;;  %v653_v49 = vmul.f32 %v3358_v12, %v623_v23 }
  0xb9   : > { %v745_v47 = vmax.f32 %v719_v40, 0.0  ;;  %v747_v55 = vmax.f32 %v721_v29, 0.0  ;;  %v749_v48 = vmax.f32 %v723_v18, 0.0  ;;  %v751_v36 = vmax.f32 %v725_v0, 0.0 }
  0xba   : > { %v3396_v2 = vpack.c.bf16 %v739_v52, %v737_v31  ;;  %v655_v44 = vmul.f32 %v3358_v12, %v625_v63  ;;  %v657_v38 = vmul.f32 %v3358_v12, %v627_v45  ;;  %v741_v14 = vmax.f32 %v715_v35, 0.0  ;;  %v803_v31 = vld [vmem:[%s2896_s20 + $0xd0] sm:$0xff] }
  0xbb   : > { %v3406_v24 = vpack.c.bf16 %v747_v55, %v745_v47  ;;  %v3408_v41 = vpack.c.bf16 %v751_v36, %v749_v48  ;;  %v743_v32 = vmax.f32 %v717_v27, 0.0  ;;  %v689_v51 = vmul.f32 %v3307_v19, %v651_v62  ;;  %v807_v35 = vld [vmem:[%s2896_s20 + $0xf0] sm:$0xff]  ;;  %v804_v27 = vld [vmem:[%s2896_s20 + $0xd8] sm:$0xff] }
  0xbc   : > { %1578 = vmatmul.mubr.bf16.vlgmr.msra.gmra.mxu0 %v3396_v2  ;;  %1679 = vmatmul.mubr.bf16.vlgmr.msra.gmra.mxu1 %v3396_v2  ;;  %v691_v23 = vmul.f32 %v3307_v19, %v653_v49  ;;  %v2396_v17 = vcombine.high %v819_v56, %v823_v42  ;;  %v693_v20 = vmul.f32 %v3307_v19, %v655_v44  ;;  %v795_v47 = vld [vmem:[%s2896_s20 + $0x90] sm:$0xff]  ;;  %v796_v48 = vld [vmem:[%s2896_s20 + $0x98] sm:$0xff] }
  0xbd   : > { %1748 = vmatpush1.bf16.msra.mxu0 %v2411_v60  ;;  %1849 = vmatpush1.bf16.msra.mxu1 %v2413_v11  ;;  %v695_v4 = vmul.f32 %v3307_v19, %v657_v38  ;;  %v2398_v15 = vcombine.high %v820_v7, %v824_v10  ;;  %v727_v25 = vadd.f32 %v3313_v50, %v689_v51  ;;  %v812_v60 = vld [vmem:[%s2896_s20 + $0x118] sm:$0xff]  ;;  %v799_v55 = vld [vmem:[%s2896_s20 + $0xb0] sm:$0xff] }
  0xbe   : > { %1749 = vmatprep.subr.bf16.mxu0 %v2404_v21  ;;  %1850 = vmatprep.subr.bf16.mxu1 %v2406_v30  ;;  %v729_v26 = vadd.f32 %v3313_v50, %v691_v23  ;;  %v816_v11 = vld [vmem:[%s2896_s20 + $0x138] sm:$0xff]  ;;  %v731_v3 = vadd.f32 %v3313_v50, %v693_v20  ;;  %v3428_v21 = vpack.c.bf16 %v743_v32, %v741_v14  ;;  %v787_v49 = vld [vmem:[%s2896_s20 + $0x50] sm:$0xff] }
  0xbf   : > { %1587 = vmatprep.mubr.bf16.mxu0 %v3266_v9  ;;  %1688 = vmatprep.mubr.bf16.mxu1 %v3266_v9  ;;  %v733_v39 = vadd.f32 %v3313_v50, %v695_v4  ;;  %v753_v28 = vmax.f32 %v727_v25, 0.0  ;;  %v2395_v63 = vcombine.low %v819_v56, %v823_v42  ;;  %v2397_v45 = vcombine.low %v820_v7, %v824_v10  ;;  %v800_v36 = vld [vmem:[%s2896_s20 + $0xb8] sm:$0xff]  ;;  %v791_v7 = vld [vmem:[%s2896_s20 + $0x70] sm:$0xff] }
  0xc0   : > { %v755_v5 = vmax.f32 %v729_v26, 0.0  ;;  %v757_v40 = vmax.f32 %v731_v3, 0.0  ;;  %v2388_v18 = vcombine.high %v811_v22, %v815_v61  ;;  %v2390_v0 = vcombine.high %v812_v60, %v816_v11  ;;  %v788_v10 = vld [vmem:[%s2896_s20 + $0x58] sm:$0xff]  ;;  %v779_v23 = vld [vmem:[%s2896_s20 + $0x10] sm:$0xff] }
  0xc1   : > { %1750 = vmatpush1.bf16.msra.mxu0 %v2403_v57  ;;  %1851 = vmatpush1.bf16.msra.mxu1 %v2405_v37  ;;  %v759_v29 = vmax.f32 %v733_v39, 0.0  ;;  %v2387_v58 = vcombine.low %v811_v22, %v815_v61  ;;  %v2389_v59 = vcombine.low %v812_v60, %v816_v11  ;;  %v2380_v57 = vcombine.high %v803_v31, %v807_v35  ;;  %v792_v44 = vld [vmem:[%s2896_s20 + $0x78] sm:$0xff]  ;;  %v899_v61 = vld [vmem:[%s2896_s20 + $0x3d0] sm:$0xff] }
  0xc2   : > { %1751 = vmatprep.subr.bf16.mxu0 %v2396_v17  ;;  %1852 = vmatprep.subr.bf16.mxu1 %v2398_v15  ;;  %v3437_v52 = vpack.c.bf16 %v755_v5, %v753_v28  ;;  %v2382_v37 = vcombine.high %v804_v27, %v808_v6  ;;  %v2379_v30 = vcombine.low %v803_v31, %v807_v35  ;;  %v783_v17 = vld [vmem:[%s2896_s20 + $0x30] sm:$0xff]  ;;  %v780_v20 = vld [vmem:[%s2896_s20 + $0x18] sm:$0xff] }
  0xc3   : > { %v3442_v1 = vpack.c.bf16 %v759_v29, %v757_v40  ;;  %v2381_v56 = vcombine.low %v804_v27, %v808_v6  ;;  %v2372_v42 = vcombine.high %v795_v47, %v799_v55  ;;  %v2374_v62 = vcombine.high %v796_v48, %v800_v36  ;;  %v784_v4 = vld [vmem:[%s2896_s20 + $0x38] sm:$0xff]  ;;  %v903_v60 = vld [vmem:[%s2896_s20 + $0x3f0] sm:$0xff] }
  0xc4   : > { %1588 = vmatmul.mubr.bf16.gmra.mxu0 %v3428_v21  ;;  %1689 = vmatmul.mubr.bf16.gmra.mxu1 %v3428_v21  ;;  %v2371_v38 = vcombine.low %v795_v47, %v799_v55  ;;  %v2373_v14 = vcombine.low %v796_v48, %v800_v36  ;;  %v2364_v32 = vcombine.high %v787_v49, %v791_v7  ;;  %v900_v11 = vld [vmem:[%s2896_s20 + $0x3d8] sm:$0xff]  ;;  %v895_v40 = vld [vmem:[%s2896_s20 + $0x3b0] sm:$0xff] }
  0xc5   : > { %1752 = vmatpush1.bf16.msra.mxu0 %v2395_v63  ;;  %1853 = vmatpush1.bf16.msra.mxu1 %v2397_v45  ;;  %v2366_v51 = vcombine.high %v788_v10, %v792_v44  ;;  %v2363_v15 = vcombine.low %v787_v49, %v791_v7  ;;  %v2365_v22 = vcombine.low %v788_v10, %v792_v44  ;;  %v904_v3 = vld [vmem:[%s2896_s20 + $0x3f8] sm:$0xff]  ;;  %v891_v45 = vld [vmem:[%s2896_s20 + $0x390] sm:$0xff] }
  0xc6   : > { %1753 = vmatprep.subr.bf16.mxu0 %v2388_v18  ;;  %1854 = vmatprep.subr.bf16.mxu1 %v2390_v0  ;;  %v2356_v25 = vcombine.high %v779_v23, %v783_v17  ;;  %v2358_v26 = vcombine.high %v780_v20, %v784_v4  ;;  %v2355_v39 = vcombine.low %v779_v23, %v783_v17  ;;  %v892_v29 = vld [vmem:[%s2896_s20 + $0x398] sm:$0xff]  ;;  %v875_v55 = vld [vmem:[%s2896_s20 + $0x310] sm:$0xff] }
  0xc7   : > { %1597 = vmatprep.mubr.bf16.mxu0 %v3277_v16  ;;  %1698 = vmatprep.mubr.bf16.mxu1 %v3277_v16  ;;  %v2357_v28 = vcombine.low %v780_v20, %v784_v4  ;;  %v2476_v5 = vcombine.high %v899_v61, %v903_v60  ;;  %v2478_v63 = vcombine.high %v900_v11, %v904_v3  ;;  %v896_v18 = vld [vmem:[%s2896_s20 + $0x3b8] sm:$0xff]  ;;  %v879_v48 = vld [vmem:[%s2896_s20 + $0x330] sm:$0xff] }
  0xc8   : > { %v659_v0 = vmul.f32 %v3358_v12, %v629_v34  ;;  %v2475_v31 = vcombine.low %v899_v61, %v903_v60  ;;  %v2477_v35 = vcombine.low %v900_v11, %v904_v3  ;;  %v2468_v27 = vcombine.high %v891_v45, %v895_v40  ;;  %v876_v36 = vld [vmem:[%s2896_s20 + $0x318] sm:$0xff]  ;;  %v867_v10 = vld [vmem:[%s2896_s20 + $0x2d0] sm:$0xff] }
  0xc9   : > { %1754 = vmatpush1.bf16.msra.mxu0 %v2387_v58  ;;  %1855 = vmatpush1.bf16.msra.mxu1 %v2389_v59  ;;  %v2470_v6 = vcombine.high %v892_v29, %v896_v18  ;;  %v883_v58 = vld [vmem:[%s2896_s20 + $0x350] sm:$0xff]  ;;  %v2467_v53 = vcombine.low %v891_v45, %v895_v40  ;;  %v2469_v34 = vcombine.low %v892_v29, %v896_v18 }
  0xca   : > { %1755 = vmatprep.subr.bf16.mxu0 %v2380_v57  ;;  %1856 = vmatprep.subr.bf16.mxu1 %v2382_v37  ;;  %v887_v59 = vld [vmem:[%s2896_s20 + $0x370] sm:$0xff]  ;;  %v884_v57 = vld [vmem:[%s2896_s20 + $0x358] sm:$0xff]  ;;  %v697_v33 = vmul.f32 %v3307_v19, %v659_v0  ;;  %v2452_v49 = vcombine.high %v875_v55, %v879_v48 }
  0xcb   : > { %v888_v37 = vld [vmem:[%s2896_s20 + $0x378] sm:$0xff]  ;;  %v2460_v12 = vcombine.high %v883_v58, %v887_v59  ;;  %v871_v44 = vld [vmem:[%s2896_s20 + $0x2f0] sm:$0xff] }
  0xcc   : > { %1598 = vmatmul.mubr.bf16.gmra.mxu0 %v3406_v24  ;;  %1699 = vmatmul.mubr.bf16.gmra.mxu1 %v3406_v24  ;;  %v2462_v47 = vcombine.high %v884_v57, %v888_v37  ;;  %v880_v19 = vld [vmem:[%s2896_s20 + $0x338] sm:$0xff]  ;;  %v2444_v23 = vcombine.high %v867_v10, %v871_v44  ;;  %v859_v20 = vld [vmem:[%s2896_s20 + $0x290] sm:$0xff] }
  0xcd   : > { %1756 = vmatpush1.bf16.msra.mxu0 %v2379_v30  ;;  %1857 = vmatpush1.bf16.msra.mxu1 %v2381_v56  ;;  %v762_v30 = vmax.f32 %v3340_v43, 0.0  ;;  %v735_v56 = vadd.f32 %v3313_v50, %v697_v33  ;;  %v2454_v7 = vcombine.high %v876_v36, %v880_v19  ;;  %v2451_v43 = vcombine.low %v875_v55, %v879_v48  ;;  %v863_v4 = vld [vmem:[%s2896_s20 + $0x2b0] sm:$0xff] }
  0xce   : > { %1757 = vmatprep.subr.bf16.mxu0 %v2372_v42  ;;  %1858 = vmatprep.subr.bf16.mxu1 %v2374_v62  ;;  %v2459_v42 = vcombine.low %v883_v58, %v887_v59  ;;  %v2461_v62 = vcombine.low %v884_v57, %v888_v37  ;;  %v2436_v60 = vcombine.high %v859_v20, %v863_v4  ;;  %v851_v3 = vld [vmem:[%s2896_s20 + $0x250] sm:$0xff] }
  0xcf   : > { %1607 = vmatprep.mubr.bf16.mxu0 %v3309_v46  ;;  %1708 = vmatprep.mubr.bf16.mxu1 %v3309_v46  ;;  %v761_v50 = vmax.f32 %v735_v56, 0.0  ;;  %v843_v18 = vld [vmem:[%s2896_s20 + $0x210] sm:$0xff] }
  0xd0   : > { %v847_v0 = vld [vmem:[%s2896_s20 + $0x230] sm:$0xff] }
  0xd1   : > { %1758 = vmatpush1.bf16.msra.mxu0 %v2371_v38  ;;  %1859 = vmatpush1.bf16.msra.mxu1 %v2373_v14  ;;  %v868_v38 = vld [vmem:[%s2896_s20 + $0x2d8] sm:$0xff]  ;;  %v2420_v58 = vcombine.high %v843_v18, %v847_v0  ;;  %v2419_v57 = vcombine.low %v843_v18, %v847_v0 }
  0xd2   : > { %1759 = vmatprep.subr.bf16.mxu0 %v2364_v32  ;;  %1860 = vmatprep.subr.bf16.mxu1 %v2366_v51  ;;  %v872_v14 = vld [vmem:[%s2896_s20 + $0x2f8] sm:$0xff]  ;;  %v3499_v32 = vpack.c.bf16 %v762_v30, %v762_v30  ;;  %v2453_v51 = vcombine.low %v876_v36, %v880_v19 }
  0xd3   : > { %v2446_v17 = vcombine.high %v868_v38, %v872_v14  ;;  %v2445_v61 = vcombine.low %v868_v38, %v872_v14 }
  0xd4   : > { %1608 = vmatmul.mubr.bf16.gmra.mxu0 %v3408_v41  ;;  %1709 = vmatmul.mubr.bf16.gmra.mxu1 %v3408_v41 }
  0xd5   : > { %1760 = vmatpush1.bf16.msra.mxu0 %v2363_v15  ;;  %1861 = vmatpush1.bf16.msra.mxu1 %v2365_v22  ;;  %v860_v15 = vld [vmem:[%s2896_s20 + $0x298] sm:$0xff] }
  0xd6   : > { %1761 = vmatprep.subr.bf16.mxu0 %v2356_v25  ;;  %1862 = vmatprep.subr.bf16.mxu1 %v2358_v26  ;;  %v864_v22 = vld [vmem:[%s2896_s20 + $0x2b8] sm:$0xff]  ;;  %v3509_v25 = vpack.c.bf16 %v761_v50, %v761_v50  ;;  %v2443_v26 = vcombine.low %v867_v10, %v871_v44 }
  0xd7   : > { %1617 = vmatprep.mubr.bf16.mxu0 %v3337_v54  ;;  %1718 = vmatprep.mubr.bf16.mxu1 %v3337_v54  ;;  %v2438_v11 = vcombine.high %v860_v15, %v864_v22  ;;  %v2437_v45 = vcombine.low %v860_v15, %v864_v22 }
  0xd9   : > { %1762 = vmatpush1.bf16.msra.mxu0 %v2355_v39  ;;  %1863 = vmatpush1.bf16.msra.mxu1 %v2357_v28  ;;  %v855_v39 = vld [vmem:[%s2896_s20 + $0x270] sm:$0xff]  ;;  %v852_v28 = vld [vmem:[%s2896_s20 + $0x258] sm:$0xff] }
  0xda   : > { %1763 = vmatprep.subr.bf16.mxu0 %v2476_v5  ;;  %1864 = vmatprep.subr.bf16.mxu1 %v2478_v63  ;;  %v856_v5 = vld [vmem:[%s2896_s20 + $0x278] sm:$0xff]  ;;  %v2435_v63 = vcombine.low %v859_v20, %v863_v4  ;;  %v2428_v40 = vcombine.high %v851_v3, %v855_v39 }
  0xdb   : > { %v2430_v29 = vcombine.high %v852_v28, %v856_v5 }
  0xdc   : > { %1618 = vmatmul.mubr.bf16.gmra.mxu0 %v3437_v52  ;;  %1719 = vmatmul.mubr.bf16.gmra.mxu1 %v3437_v52 }
  0xdd   : > { %1764 = vmatpush2.bf16.msra.mxu0 %v2475_v31  ;;  %1865 = vmatpush2.bf16.msra.mxu1 %v2477_v35  ;;  %v844_v31 = vld [vmem:[%s2896_s20 + $0x218] sm:$0xff] }
  0xde   : > { %1765 = vmatprep.subr.bf16.mxu0 %v2468_v27  ;;  %1866 = vmatprep.subr.bf16.mxu1 %v2470_v6  ;;  %v848_v35 = vld [vmem:[%s2896_s20 + $0x238] sm:$0xff]  ;;  %v2427_v27 = vcombine.low %v851_v3, %v855_v39  ;;  %v2429_v6 = vcombine.low %v852_v28, %v856_v5  ;;  %s2485_s20 = smul.u32 832, %s442_s5 }
  0xdf   : > { %1627 = vmatprep.mubr.bf16.mxu0 %v3356_v13  ;;  %1728 = vmatprep.mubr.bf16.mxu1 %v3356_v13  ;;  %v2422_v59 = vcombine.high %v844_v31, %v848_v35  ;;  %v2421_v37 = vcombine.low %v844_v31, %v848_v35 }
  0xe0   : > { %s3551_s12 = scalar_lea.vmem [#allocation3], %s2485_s20 }
  0xe1   : > { %1766 = vmatpush2.bf16.msra.mxu0 %v2467_v53  ;;  %1867 = vmatpush2.bf16.msra.mxu1 %v2469_v34 }
  0xe2   : > { %1767 = vmatprep.subr.bf16.mxu0 %v2460_v12  ;;  %1868 = vmatprep.subr.bf16.mxu1 %v2462_v47 }
  0xe4   : > { %1628 = vmatmul.mubr.bf16.gmra.mxu0 %v3442_v1  ;;  %1729 = vmatmul.mubr.bf16.gmra.mxu1 %v3442_v1 }
  0xe5   : > { %1768 = vmatpush2.bf16.msra.mxu0 %v2459_v42  ;;  %1869 = vmatpush2.bf16.msra.mxu1 %v2461_v62 }
  0xe6   : > { %1769 = vmatprep.subr.bf16.mxu0 %v2452_v49  ;;  %1870 = vmatprep.subr.bf16.mxu1 %v2454_v7 }
  0xe7   : > { %1637 = vmatprep.mubr.bf16.mxu0 %v3499_v32  ;;  %1738 = vmatprep.mubr.bf16.mxu1 %v3499_v32 }
  0xe9   : > { %1770 = vmatpush2.bf16.msra.mxu0 %v2451_v43  ;;  %1871 = vmatpush2.bf16.msra.mxu1 %v2453_v51 }
  0xea   : > { %1771 = vmatprep.subr.bf16.mxu0 %v2444_v23  ;;  %1872 = vmatprep.subr.bf16.mxu1 %v2446_v17 }
  0xec   : > { %1638 = vmatmul.mubr.bf16.gmra.mxu0 %v3509_v25  ;;  %1739 = vmatmul.mubr.bf16.gmra.mxu1 %v3509_v25 }
  0xed   : > { %1772 = vmatpush2.bf16.msra.mxu0 %v2443_v26  ;;  %1873 = vmatpush2.bf16.msra.mxu1 %v2445_v61 }
  0xee   : > { %1773 = vmatprep.subr.bf16.mxu0 %v2436_v60  ;;  %1874 = vmatprep.subr.bf16.mxu1 %v2438_v11 }
  0xef   : > { %1779 = vmatprep.mubr.bf16.mxu0 %v3264_v8  ;;  %1880 = vmatprep.mubr.bf16.mxu1 %v3264_v8 }
  0xf1   : > { %1774 = vmatpush2.bf16.msra.mxu0 %v2435_v63  ;;  %1875 = vmatpush2.bf16.msra.mxu1 %v2437_v45 }
  0xf2   : > { %1775 = vmatprep.subr.bf16.mxu0 %v2428_v40  ;;  %1876 = vmatprep.subr.bf16.mxu1 %v2430_v29 }
  0xf5   : > { %1776 = vmatpush2.bf16.msra.mxu0 %v2427_v27  ;;  %1877 = vmatpush2.bf16.msra.mxu1 %v2429_v6 }
  0xf6   : > { %1777 = vmatprep.subr.bf16.mxu0 %v2420_v58  ;;  %1878 = vmatprep.subr.bf16.mxu1 %v2422_v59 }
  0xf9   : > { %1778 = vmatpush2.bf16.msra.mxu0 %v2419_v57  ;;  %1879 = vmatpush2.bf16.msra.mxu1 %v2421_v37 }
  0xfc   : > { %1780 = vmatmul.mubr.bf16.vlgmr.msra.gmra.mxu0 %v3396_v2  ;;  %1881 = vmatmul.mubr.bf16.vlgmr.msra.gmra.mxu1 %v3396_v2 }
  0xfd   : > { %1789 = vmatprep.mubr.bf16.mxu0 %v3266_v9  ;;  %1890 = vmatprep.mubr.bf16.mxu1 %v3266_v9 }
 0x104   : > { %1790 = vmatmul.mubr.bf16.gmra.mxu0 %v3428_v21  ;;  %1891 = vmatmul.mubr.bf16.gmra.mxu1 %v3428_v21 }
 0x105   : > { %1799 = vmatprep.mubr.bf16.mxu0 %v3277_v16  ;;  %1900 = vmatprep.mubr.bf16.mxu1 %v3277_v16 }
 0x10c   : > { %1800 = vmatmul.mubr.bf16.gmra.mxu0 %v3406_v24  ;;  %1901 = vmatmul.mubr.bf16.gmra.mxu1 %v3406_v24 }
 0x10d   : > { %1809 = vmatprep.mubr.bf16.mxu0 %v3309_v46  ;;  %1910 = vmatprep.mubr.bf16.mxu1 %v3309_v46 }
 0x114   : > { %1810 = vmatmul.mubr.bf16.gmra.mxu0 %v3408_v41  ;;  %1911 = vmatmul.mubr.bf16.gmra.mxu1 %v3408_v41 }
 0x115   : > { %1819 = vmatprep.mubr.bf16.mxu0 %v3337_v54  ;;  %1920 = vmatprep.mubr.bf16.mxu1 %v3337_v54 }
 0x11c   : > { %1820 = vmatmul.mubr.bf16.gmra.mxu0 %v3437_v52  ;;  %1921 = vmatmul.mubr.bf16.gmra.mxu1 %v3437_v52 }
 0x11d   : > { %1829 = vmatprep.mubr.bf16.mxu0 %v3356_v13  ;;  %1930 = vmatprep.mubr.bf16.mxu1 %v3356_v13 }
 0x124   : > { %1830 = vmatmul.mubr.bf16.gmra.mxu0 %v3442_v1  ;;  %1931 = vmatmul.mubr.bf16.gmra.mxu1 %v3442_v1 }
 0x125   : > { %1839 = vmatprep.mubr.bf16.mxu0 %v3499_v32  ;;  %1940 = vmatprep.mubr.bf16.mxu1 %v3499_v32 }
 0x12c   : > { %1840 = vmatmul.mubr.bf16.gmra.mxu0 %v3509_v25  ;;  %1941 = vmatmul.mubr.bf16.gmra.mxu1 %v3509_v25 }
 0x17c   : > { %v1579_v8 = vpop.f32.mrf.mxu0  ;;  %v1680_v9 = vpop.f32.mrf.mxu1 }
 0x17d   : > { %1949 = vst [vmem:[%s3551_s12] sm:$0xff] %v1579_v8  ;;  %1951 = vst [vmem:[%s3551_s12 + $0x10] sm:$0xff] %v1680_v9 }
 0x17e   : > { %v1581_v16 = vpop.f32.mrf.mxu0  ;;  %v1682_v46 = vpop.f32.mrf.mxu1 }
 0x17f   : > { %1950 = vst [vmem:[%s3551_s12 + $0x8] sm:$0xff] %v1581_v16  ;;  %1952 = vst [vmem:[%s3551_s12 + $0x18] sm:$0xff] %v1682_v46 }
 0x180   : > { %v1583_v54 = vpop.f32.mrf.mxu0  ;;  %v1684_v13 = vpop.f32.mrf.mxu1 }
 0x181   : > { %1957 = vst [vmem:[%s3551_s12 + $0x40] sm:$0xff] %v1583_v54  ;;  %1959 = vst [vmem:[%s3551_s12 + $0x50] sm:$0xff] %v1684_v13 }
 0x182   : > { %v1585_v2 = vpop.f32.mrf.mxu0  ;;  %v1686_v24 = vpop.f32.mrf.mxu1 }
 0x183   : > { %1958 = vst [vmem:[%s3551_s12 + $0x48] sm:$0xff] %v1585_v2  ;;  %1960 = vst [vmem:[%s3551_s12 + $0x58] sm:$0xff] %v1686_v24 }
 0x184   : > { %v1589_v41 = vpop.f32.mrf.mxu0  ;;  %v1690_v21 = vpop.f32.mrf.mxu1 }
 0x185   : > { %1965 = vst [vmem:[%s3551_s12 + $0x80] sm:$0xff] %v1589_v41  ;;  %1967 = vst [vmem:[%s3551_s12 + $0x90] sm:$0xff] %v1690_v21 }
 0x186   : > { %v1591_v52 = vpop.f32.mrf.mxu0  ;;  %v1692_v1 = vpop.f32.mrf.mxu1 }
 0x187   : > { %1966 = vst [vmem:[%s3551_s12 + $0x88] sm:$0xff] %v1591_v52  ;;  %1968 = vst [vmem:[%s3551_s12 + $0x98] sm:$0xff] %v1692_v1 }
 0x188   : > { %v1593_v33 = vpop.f32.mrf.mxu0  ;;  %v1694_v53 = vpop.f32.mrf.mxu1 }
 0x189   : > { %1973 = vst [vmem:[%s3551_s12 + $0xc0] sm:$0xff] %v1593_v33  ;;  %1975 = vst [vmem:[%s3551_s12 + $0xd0] sm:$0xff] %v1694_v53 }
 0x18a   : > { %v1595_v34 = vpop.f32.mrf.mxu0  ;;  %v1696_v12 = vpop.f32.mrf.mxu1 }
 0x18b   : > { %1974 = vst [vmem:[%s3551_s12 + $0xc8] sm:$0xff] %v1595_v34  ;;  %1976 = vst [vmem:[%s3551_s12 + $0xd8] sm:$0xff] %v1696_v12 }
 0x18c   : > { %v1599_v47 = vpop.f32.mrf.mxu0  ;;  %v1700_v55 = vpop.f32.mrf.mxu1 }
 0x18d   : > { %1981 = vst [vmem:[%s3551_s12 + $0x100] sm:$0xff] %v1599_v47  ;;  %1983 = vst [vmem:[%s3551_s12 + $0x110] sm:$0xff] %v1700_v55 }
 0x18e   : > { %v1601_v48 = vpop.f32.mrf.mxu0  ;;  %v1702_v36 = vpop.f32.mrf.mxu1 }
 0x18f   : > { %1982 = vst [vmem:[%s3551_s12 + $0x108] sm:$0xff] %v1601_v48  ;;  %1984 = vst [vmem:[%s3551_s12 + $0x118] sm:$0xff] %v1702_v36 }
 0x190   : > { %v1603_v19 = vpop.f32.mrf.mxu0  ;;  %v1704_v30 = vpop.f32.mrf.mxu1 }
 0x191   : > { %1989 = vst [vmem:[%s3551_s12 + $0x140] sm:$0xff] %v1603_v19  ;;  %1991 = vst [vmem:[%s3551_s12 + $0x150] sm:$0xff] %v1704_v30 }
 0x192   : > { %v1605_v56 = vpop.f32.mrf.mxu0  ;;  %v1706_v42 = vpop.f32.mrf.mxu1 }
 0x193   : > { %1990 = vst [vmem:[%s3551_s12 + $0x148] sm:$0xff] %v1605_v56  ;;  %1992 = vst [vmem:[%s3551_s12 + $0x158] sm:$0xff] %v1706_v42 }
 0x194   : > { %v1609_v62 = vpop.f32.mrf.mxu0  ;;  %v1710_v49 = vpop.f32.mrf.mxu1 }
 0x195   : > { %1997 = vst [vmem:[%s3551_s12 + $0x180] sm:$0xff] %v1609_v62  ;;  %1999 = vst [vmem:[%s3551_s12 + $0x190] sm:$0xff] %v1710_v49 }
 0x196   : > { %v1611_v7 = vpop.f32.mrf.mxu0  ;;  %v1712_v10 = vpop.f32.mrf.mxu1 }
 0x197   : > { %1998 = vst [vmem:[%s3551_s12 + $0x188] sm:$0xff] %v1611_v7  ;;  %2000 = vst [vmem:[%s3551_s12 + $0x198] sm:$0xff] %v1712_v10 }
 0x198   : > { %v1613_v44 = vpop.f32.mrf.mxu0  ;;  %v1714_v38 = vpop.f32.mrf.mxu1 }
 0x199   : > { %2005 = vst [vmem:[%s3551_s12 + $0x1c0] sm:$0xff] %v1613_v44  ;;  %2007 = vst [vmem:[%s3551_s12 + $0x1d0] sm:$0xff] %v1714_v38 }
 0x19a   : > { %v1615_v14 = vpop.f32.mrf.mxu0  ;;  %v1716_v32 = vpop.f32.mrf.mxu1 }
 0x19b   : > { %2006 = vst [vmem:[%s3551_s12 + $0x1c8] sm:$0xff] %v1615_v14  ;;  %2008 = vst [vmem:[%s3551_s12 + $0x1d8] sm:$0xff] %v1716_v32 }
 0x19c   : > { %v1619_v50 = vpop.f32.mrf.mxu0  ;;  %v1720_v43 = vpop.f32.mrf.mxu1 }
 0x19d   : > { %2013 = vst [vmem:[%s3551_s12 + $0x200] sm:$0xff] %v1619_v50  ;;  %2015 = vst [vmem:[%s3551_s12 + $0x210] sm:$0xff] %v1720_v43 }
 0x19e   : > { %v1621_v51 = vpop.f32.mrf.mxu0  ;;  %v1722_v23 = vpop.f32.mrf.mxu1 }
 0x19f   : > { %2014 = vst [vmem:[%s3551_s12 + $0x208] sm:$0xff] %v1621_v51  ;;  %2016 = vst [vmem:[%s3551_s12 + $0x218] sm:$0xff] %v1722_v23 }
 0x1a0   : > { %v1623_v17 = vpop.f32.mrf.mxu0  ;;  %v1724_v20 = vpop.f32.mrf.mxu1 }
 0x1a1   : > { %2021 = vst [vmem:[%s3551_s12 + $0x240] sm:$0xff] %v1623_v17  ;;  %2023 = vst [vmem:[%s3551_s12 + $0x250] sm:$0xff] %v1724_v20 }
 0x1a2   : > { %v1625_v4 = vpop.f32.mrf.mxu0  ;;  %v1726_v15 = vpop.f32.mrf.mxu1 }
 0x1a3   : > { %2022 = vst [vmem:[%s3551_s12 + $0x248] sm:$0xff] %v1625_v4  ;;  %2024 = vst [vmem:[%s3551_s12 + $0x258] sm:$0xff] %v1726_v15 }
 0x1a4   : > { %v1629_v22 = vpop.f32.mrf.mxu0  ;;  %v1730_v25 = vpop.f32.mrf.mxu1 }
 0x1a5   : > { %2029 = vst [vmem:[%s3551_s12 + $0x280] sm:$0xff] %v1629_v22  ;;  %2031 = vst [vmem:[%s3551_s12 + $0x290] sm:$0xff] %v1730_v25 }
 0x1a6   : > { %v1631_v26 = vpop.f32.mrf.mxu0  ;;  %v1732_v61 = vpop.f32.mrf.mxu1 }
 0x1a7   : > { %2030 = vst [vmem:[%s3551_s12 + $0x288] sm:$0xff] %v1631_v26  ;;  %2032 = vst [vmem:[%s3551_s12 + $0x298] sm:$0xff] %v1732_v61 }
 0x1a8   : > { %v1633_v60 = vpop.f32.mrf.mxu0  ;;  %v1734_v11 = vpop.f32.mrf.mxu1 }
 0x1a9   : > { %2037 = vst [vmem:[%s3551_s12 + $0x2c0] sm:$0xff] %v1633_v60  ;;  %2039 = vst [vmem:[%s3551_s12 + $0x2d0] sm:$0xff] %v1734_v11 }
 0x1aa   : > { %v1635_v3 = vpop.f32.mrf.mxu0  ;;  %v1736_v39 = vpop.f32.mrf.mxu1 }
 0x1ab   : > { %2038 = vst [vmem:[%s3551_s12 + $0x2c8] sm:$0xff] %v1635_v3  ;;  %2040 = vst [vmem:[%s3551_s12 + $0x2d8] sm:$0xff] %v1736_v39 }
 0x1ac   : > { %v1639_v28 = vpop.f32.mrf.mxu0  ;;  %v1740_v5 = vpop.f32.mrf.mxu1 }
 0x1ad   : > { %2045 = vst [vmem:[%s3551_s12 + $0x300] sm:$0x3] %v1639_v28  ;;  %2047 = vst [vmem:[%s3551_s12 + $0x310] sm:$0x3] %v1740_v5  ;;  %v2075_v28 = vld [vmem:[%s3551_s12] sm:$0xff] (%p2593_p5)  ;;  %v2077_v5 = vld [vmem:[%s3551_s12 + $0x8] sm:$0xff] (%p2593_p5) }
 0x1ae   : > { %v1641_v63 = vpop.f32.mrf.mxu0  ;;  %v1742_v45 = vpop.f32.mrf.mxu1  ;;  %2076 = vst [vmem:[%s3667_s23] sm:$0xff] (%p2593_p5), %v2075_v28  ;;  %2078 = vst [vmem:[%s3667_s23 + $0x8] sm:$0xff] (%p2593_p5), %v2077_v5  ;;  %v2203_v28 = vld [vmem:[%s3551_s12 + $0x200] sm:$0xff] (%p2593_p5)  ;;  %v2205_v5 = vld [vmem:[%s3551_s12 + $0x208] sm:$0xff] (%p2593_p5) }
 0x1af   : > { %2046 = vst [vmem:[%s3551_s12 + $0x308] sm:$0x3] %v1641_v63  ;;  %2048 = vst [vmem:[%s3551_s12 + $0x318] sm:$0x3] %v1742_v45  ;;  %v2079_v63 = vld [vmem:[%s3551_s12 + $0x10] sm:$0xff] (%p2593_p5)  ;;  %v2081_v45 = vld [vmem:[%s3551_s12 + $0x18] sm:$0xff] (%p2593_p5) }
 0x1b0   : > { %v1643_v40 = vpop.f32.mrf.mxu0  ;;  %v1744_v29 = vpop.f32.mrf.mxu1  ;;  %2080 = vst [vmem:[%s3667_s23 + $0x10] sm:$0xff] (%p2593_p5), %v2079_v63  ;;  %2082 = vst [vmem:[%s3667_s23 + $0x18] sm:$0xff] (%p2593_p5), %v2081_v45  ;;  %v2207_v63 = vld [vmem:[%s3551_s12 + $0x210] sm:$0xff] (%p2593_p5)  ;;  %v2209_v45 = vld [vmem:[%s3551_s12 + $0x218] sm:$0xff] (%p2593_p5) }
 0x1b1   : > { %2204 = vst [vmem:[%s3667_s23 + $0x400] sm:$0xff] (%p2593_p5), %v2203_v28  ;;  %2206 = vst [vmem:[%s3667_s23 + $0x408] sm:$0xff] (%p2593_p5), %v2205_v5 }
 0x1b2   : > { %v1644_v18 = vpop.f32.mrf.mxu0  ;;  %v1745_v0 = vpop.f32.mrf.mxu1  ;;  %2208 = vst [vmem:[%s3667_s23 + $0x410] sm:$0xff] (%p2593_p5), %v2207_v63  ;;  %2210 = vst [vmem:[%s3667_s23 + $0x418] sm:$0xff] (%p2593_p5), %v2209_v45 }
 0x1bc   : > { %v1781_v31 = vpop.f32.mrf.mxu0  ;;  %v1882_v35 = vpop.f32.mrf.mxu1 }
 0x1bd   : > { %1953 = vst [vmem:[%s3551_s12 + $0x20] sm:$0xff] %v1781_v31  ;;  %1955 = vst [vmem:[%s3551_s12 + $0x30] sm:$0xff] %v1882_v35  ;;  %v2091_v31 = vld [vmem:[%s3551_s12 + $0x40] sm:$0xff] (%p2593_p5)  ;;  %v2093_v35 = vld [vmem:[%s3551_s12 + $0x48] sm:$0xff] (%p2593_p5) }
 0x1be   : > { %v1783_v27 = vpop.f32.mrf.mxu0  ;;  %v1884_v6 = vpop.f32.mrf.mxu1  ;;  %2092 = vst [vmem:[%s3667_s23 + $0x80] sm:$0xff] (%p2593_p5), %v2091_v31  ;;  %2094 = vst [vmem:[%s3667_s23 + $0x88] sm:$0xff] (%p2593_p5), %v2093_v35  ;;  %v2219_v31 = vld [vmem:[%s3551_s12 + $0x240] sm:$0xff] (%p2593_p5)  ;;  %v2221_v35 = vld [vmem:[%s3551_s12 + $0x248] sm:$0xff] (%p2593_p5) }
 0x1bf   : > { %1954 = vst [vmem:[%s3551_s12 + $0x28] sm:$0xff] %v1783_v27  ;;  %1956 = vst [vmem:[%s3551_s12 + $0x38] sm:$0xff] %v1884_v6  ;;  %v2095_v27 = vld [vmem:[%s3551_s12 + $0x50] sm:$0xff] (%p2593_p5)  ;;  %v2097_v6 = vld [vmem:[%s3551_s12 + $0x58] sm:$0xff] (%p2593_p5) }
 0x1c0   : > { %v1785_v58 = vpop.f32.mrf.mxu0  ;;  %v1886_v59 = vpop.f32.mrf.mxu1  ;;  %2096 = vst [vmem:[%s3667_s23 + $0x90] sm:$0xff] (%p2593_p5), %v2095_v27  ;;  %2098 = vst [vmem:[%s3667_s23 + $0x98] sm:$0xff] (%p2593_p5), %v2097_v6  ;;  %v2223_v27 = vld [vmem:[%s3551_s12 + $0x250] sm:$0xff] (%p2593_p5)  ;;  %v2225_v6 = vld [vmem:[%s3551_s12 + $0x258] sm:$0xff] (%p2593_p5) }
 0x1c1   : > { %1961 = vst [vmem:[%s3551_s12 + $0x60] sm:$0xff] %v1785_v58  ;;  %1963 = vst [vmem:[%s3551_s12 + $0x70] sm:$0xff] %v1886_v59 }
 0x1c2   : > { %v1787_v57 = vpop.f32.mrf.mxu0  ;;  %v1888_v37 = vpop.f32.mrf.mxu1  ;;  %2220 = vst [vmem:[%s3667_s23 + $0x480] sm:$0xff] (%p2593_p5), %v2219_v31  ;;  %2222 = vst [vmem:[%s3667_s23 + $0x488] sm:$0xff] (%p2593_p5), %v2221_v35 }
 0x1c3   : > { %1962 = vst [vmem:[%s3551_s12 + $0x68] sm:$0xff] %v1787_v57  ;;  %1964 = vst [vmem:[%s3551_s12 + $0x78] sm:$0xff] %v1888_v37 }
 0x1c4   : > { %v1791_v8 = vpop.f32.mrf.mxu0  ;;  %v1892_v9 = vpop.f32.mrf.mxu1  ;;  %v2083_v40 = vld [vmem:[%s3551_s12 + $0x20] sm:$0xff] (%p2593_p5)  ;;  %v2087_v18 = vld [vmem:[%s3551_s12 + $0x30] sm:$0xff] (%p2593_p5)  ;;  %2224 = vst [vmem:[%s3667_s23 + $0x490] sm:$0xff] (%p2593_p5), %v2223_v27  ;;  %2226 = vst [vmem:[%s3667_s23 + $0x498] sm:$0xff] (%p2593_p5), %v2225_v6 }
 0x1c5   : > { %1969 = vst [vmem:[%s3551_s12 + $0xa0] sm:$0xff] %v1791_v8  ;;  %1971 = vst [vmem:[%s3551_s12 + $0xb0] sm:$0xff] %v1892_v9  ;;  %v2107_v8 = vld [vmem:[%s3551_s12 + $0x80] sm:$0xff] (%p2593_p5)  ;;  %v2109_v9 = vld [vmem:[%s3551_s12 + $0x88] sm:$0xff] (%p2593_p5) }
 0x1c6   : > { %v1793_v16 = vpop.f32.mrf.mxu0  ;;  %v1894_v46 = vpop.f32.mrf.mxu1  ;;  %v2085_v29 = vld [vmem:[%s3551_s12 + $0x28] sm:$0xff] (%p2593_p5)  ;;  %2084 = vst [vmem:[%s3667_s23 + $0x20] sm:$0xff] (%p2593_p5), %v2083_v40  ;;  %v2089_v0 = vld [vmem:[%s3551_s12 + $0x38] sm:$0xff] (%p2593_p5)  ;;  %2088 = vst [vmem:[%s3667_s23 + $0x30] sm:$0xff] (%p2593_p5), %v2087_v18 }
 0x1c7   : > { %1970 = vst [vmem:[%s3551_s12 + $0xa8] sm:$0xff] %v1793_v16  ;;  %1972 = vst [vmem:[%s3551_s12 + $0xb8] sm:$0xff] %v1894_v46  ;;  %v2111_v16 = vld [vmem:[%s3551_s12 + $0x90] sm:$0xff] (%p2593_p5)  ;;  %v2113_v46 = vld [vmem:[%s3551_s12 + $0x98] sm:$0xff] (%p2593_p5) }
 0x1c8   : > { %v1795_v54 = vpop.f32.mrf.mxu0  ;;  %v1896_v13 = vpop.f32.mrf.mxu1  ;;  %2086 = vst [vmem:[%s3667_s23 + $0x28] sm:$0xff] (%p2593_p5), %v2085_v29  ;;  %2090 = vst [vmem:[%s3667_s23 + $0x38] sm:$0xff] (%p2593_p5), %v2089_v0  ;;  %v2099_v58 = vld [vmem:[%s3551_s12 + $0x60] sm:$0xff] (%p2593_p5)  ;;  %v2103_v57 = vld [vmem:[%s3551_s12 + $0x70] sm:$0xff] (%p2593_p5) }
 0x1c9   : > { %1977 = vst [vmem:[%s3551_s12 + $0xe0] sm:$0xff] %v1795_v54  ;;  %1979 = vst [vmem:[%s3551_s12 + $0xf0] sm:$0xff] %v1896_v13 }
 0x1ca   : > { %v1797_v2 = vpop.f32.mrf.mxu0  ;;  %v1898_v24 = vpop.f32.mrf.mxu1  ;;  %v2101_v59 = vld [vmem:[%s3551_s12 + $0x68] sm:$0xff] (%p2593_p5)  ;;  %2100 = vst [vmem:[%s3667_s23 + $0xa0] sm:$0xff] (%p2593_p5), %v2099_v58  ;;  %2104 = vst [vmem:[%s3667_s23 + $0xb0] sm:$0xff] (%p2593_p5), %v2103_v57  ;;  %v2105_v37 = vld [vmem:[%s3551_s12 + $0x78] sm:$0xff] (%p2593_p5) }
 0x1cb   : > { %1978 = vst [vmem:[%s3551_s12 + $0xe8] sm:$0xff] %v1797_v2  ;;  %1980 = vst [vmem:[%s3551_s12 + $0xf8] sm:$0xff] %v1898_v24 }
 0x1cc   : > { %v1801_v41 = vpop.f32.mrf.mxu0  ;;  %v1902_v21 = vpop.f32.mrf.mxu1  ;;  %2102 = vst [vmem:[%s3667_s23 + $0xa8] sm:$0xff] (%p2593_p5), %v2101_v59  ;;  %2106 = vst [vmem:[%s3667_s23 + $0xb8] sm:$0xff] (%p2593_p5), %v2105_v37  ;;  %v2115_v54 = vld [vmem:[%s3551_s12 + $0xa0] sm:$0xff] (%p2593_p5)  ;;  %v2119_v2 = vld [vmem:[%s3551_s12 + $0xb0] sm:$0xff] (%p2593_p5) }
 0x1cd   : > { %1985 = vst [vmem:[%s3551_s12 + $0x120] sm:$0xff] %v1801_v41  ;;  %1987 = vst [vmem:[%s3551_s12 + $0x130] sm:$0xff] %v1902_v21  ;;  %v2123_v41 = vld [vmem:[%s3551_s12 + $0xc0] sm:$0xff] (%p2593_p5)  ;;  %v2125_v21 = vld [vmem:[%s3551_s12 + $0xc8] sm:$0xff] (%p2593_p5) }
 0x1ce   : > { %v1803_v52 = vpop.f32.mrf.mxu0  ;;  %v1904_v1 = vpop.f32.mrf.mxu1  ;;  %2108 = vst [vmem:[%s3667_s23 + $0x100] sm:$0xff] (%p2593_p5), %v2107_v8  ;;  %2110 = vst [vmem:[%s3667_s23 + $0x108] sm:$0xff] (%p2593_p5), %v2109_v9  ;;  %v2117_v13 = vld [vmem:[%s3551_s12 + $0xa8] sm:$0xff] (%p2593_p5)  ;;  %v2121_v24 = vld [vmem:[%s3551_s12 + $0xb8] sm:$0xff] (%p2593_p5) }
 0x1cf   : > { %1986 = vst [vmem:[%s3551_s12 + $0x128] sm:$0xff] %v1803_v52  ;;  %1988 = vst [vmem:[%s3551_s12 + $0x138] sm:$0xff] %v1904_v1  ;;  %v2127_v52 = vld [vmem:[%s3551_s12 + $0xd0] sm:$0xff] (%p2593_p5)  ;;  %v2129_v1 = vld [vmem:[%s3551_s12 + $0xd8] sm:$0xff] (%p2593_p5) }
 0x1d0   : > { %v1805_v33 = vpop.f32.mrf.mxu0  ;;  %v1906_v53 = vpop.f32.mrf.mxu1  ;;  %2112 = vst [vmem:[%s3667_s23 + $0x110] sm:$0xff] (%p2593_p5), %v2111_v16  ;;  %2114 = vst [vmem:[%s3667_s23 + $0x118] sm:$0xff] (%p2593_p5), %v2113_v46  ;;  %v2235_v8 = vld [vmem:[%s3551_s12 + $0x280] sm:$0xff] (%p2593_p5)  ;;  %v2237_v9 = vld [vmem:[%s3551_s12 + $0x288] sm:$0xff] (%p2593_p5) }
 0x1d1   : > { %1993 = vst [vmem:[%s3551_s12 + $0x160] sm:$0xff] %v1805_v33  ;;  %1995 = vst [vmem:[%s3551_s12 + $0x170] sm:$0xff] %v1906_v53  ;;  %v2131_v33 = vld [vmem:[%s3551_s12 + $0xe0] sm:$0xff] (%p2593_p5)  ;;  %v2239_v16 = vld [vmem:[%s3551_s12 + $0x290] sm:$0xff] (%p2593_p5) }
 0x1d2   : > { %v1807_v34 = vpop.f32.mrf.mxu0  ;;  %v1908_v12 = vpop.f32.mrf.mxu1  ;;  %2116 = vst [vmem:[%s3667_s23 + $0x120] sm:$0xff] (%p2593_p5), %v2115_v54  ;;  %2118 = vst [vmem:[%s3667_s23 + $0x128] sm:$0xff] (%p2593_p5), %v2117_v13  ;;  %v2133_v53 = vld [vmem:[%s3551_s12 + $0xe8] sm:$0xff] (%p2593_p5)  ;;  %v2241_v46 = vld [vmem:[%s3551_s12 + $0x298] sm:$0xff] (%p2593_p5) }
 0x1d3   : > { %1994 = vst [vmem:[%s3551_s12 + $0x168] sm:$0xff] %v1807_v34  ;;  %1996 = vst [vmem:[%s3551_s12 + $0x178] sm:$0xff] %v1908_v12  ;;  %v2135_v34 = vld [vmem:[%s3551_s12 + $0xf0] sm:$0xff] (%p2593_p5)  ;;  %v2137_v12 = vld [vmem:[%s3551_s12 + $0xf8] sm:$0xff] (%p2593_p5) }
 0x1d4   : > { %v1811_v47 = vpop.f32.mrf.mxu0  ;;  %v1912_v55 = vpop.f32.mrf.mxu1  ;;  %2120 = vst [vmem:[%s3667_s23 + $0x130] sm:$0xff] (%p2593_p5), %v2119_v2  ;;  %2122 = vst [vmem:[%s3667_s23 + $0x138] sm:$0xff] (%p2593_p5), %v2121_v24 }
 0x1d5   : > { %2001 = vst [vmem:[%s3551_s12 + $0x1a0] sm:$0xff] %v1811_v47  ;;  %2003 = vst [vmem:[%s3551_s12 + $0x1b0] sm:$0xff] %v1912_v55  ;;  %v2139_v47 = vld [vmem:[%s3551_s12 + $0x100] sm:$0xff] (%p2593_p5)  ;;  %v2141_v55 = vld [vmem:[%s3551_s12 + $0x108] sm:$0xff] (%p2593_p5) }
 0x1d6   : > { %v1813_v48 = vpop.f32.mrf.mxu0  ;;  %v1914_v36 = vpop.f32.mrf.mxu1  ;;  %2124 = vst [vmem:[%s3667_s23 + $0x180] sm:$0xff] (%p2593_p5), %v2123_v41  ;;  %2126 = vst [vmem:[%s3667_s23 + $0x188] sm:$0xff] (%p2593_p5), %v2125_v21  ;;  %v2251_v41 = vld [vmem:[%s3551_s12 + $0x2c0] sm:$0xff] (%p2593_p5)  ;;  %v2253_v21 = vld [vmem:[%s3551_s12 + $0x2c8] sm:$0xff] (%p2593_p5) }
 0x1d7   : > { %2002 = vst [vmem:[%s3551_s12 + $0x1a8] sm:$0xff] %v1813_v48  ;;  %2004 = vst [vmem:[%s3551_s12 + $0x1b8] sm:$0xff] %v1914_v36  ;;  %v2143_v48 = vld [vmem:[%s3551_s12 + $0x110] sm:$0xff] (%p2593_p5)  ;;  %v2145_v36 = vld [vmem:[%s3551_s12 + $0x118] sm:$0xff] (%p2593_p5) }
 0x1d8   : > { %v1815_v19 = vpop.f32.mrf.mxu0  ;;  %v1916_v30 = vpop.f32.mrf.mxu1  ;;  %2128 = vst [vmem:[%s3667_s23 + $0x190] sm:$0xff] (%p2593_p5), %v2127_v52  ;;  %2130 = vst [vmem:[%s3667_s23 + $0x198] sm:$0xff] (%p2593_p5), %v2129_v1  ;;  %v2255_v52 = vld [vmem:[%s3551_s12 + $0x2d0] sm:$0xff] (%p2593_p5)  ;;  %v2257_v1 = vld [vmem:[%s3551_s12 + $0x2d8] sm:$0xff] (%p2593_p5) }
 0x1d9   : > { %2009 = vst [vmem:[%s3551_s12 + $0x1e0] sm:$0xff] %v1815_v19  ;;  %2011 = vst [vmem:[%s3551_s12 + $0x1f0] sm:$0xff] %v1916_v30  ;;  %v2147_v19 = vld [vmem:[%s3551_s12 + $0x120] sm:$0xff] (%p2593_p5)  ;;  %v2149_v30 = vld [vmem:[%s3551_s12 + $0x128] sm:$0xff] (%p2593_p5) }
 0x1da   : > { %v1817_v56 = vpop.f32.mrf.mxu0  ;;  %v1918_v42 = vpop.f32.mrf.mxu1  ;;  %2132 = vst [vmem:[%s3667_s23 + $0x1a0] sm:$0xff] (%p2593_p5), %v2131_v33  ;;  %2134 = vst [vmem:[%s3667_s23 + $0x1a8] sm:$0xff] (%p2593_p5), %v2133_v53 }
 0x1db   : > { %2010 = vst [vmem:[%s3551_s12 + $0x1e8] sm:$0xff] %v1817_v56  ;;  %2012 = vst [vmem:[%s3551_s12 + $0x1f8] sm:$0xff] %v1918_v42  ;;  %v2151_v56 = vld [vmem:[%s3551_s12 + $0x130] sm:$0xff] (%p2593_p5)  ;;  %v2153_v42 = vld [vmem:[%s3551_s12 + $0x138] sm:$0xff] (%p2593_p5) }
 0x1dc   : > { %v1821_v62 = vpop.f32.mrf.mxu0  ;;  %v1922_v49 = vpop.f32.mrf.mxu1  ;;  %2136 = vst [vmem:[%s3667_s23 + $0x1b0] sm:$0xff] (%p2593_p5), %v2135_v34  ;;  %2138 = vst [vmem:[%s3667_s23 + $0x1b8] sm:$0xff] (%p2593_p5), %v2137_v12 }
 0x1dd   : > { %2017 = vst [vmem:[%s3551_s12 + $0x220] sm:$0xff] %v1821_v62  ;;  %2019 = vst [vmem:[%s3551_s12 + $0x230] sm:$0xff] %v1922_v49  ;;  %v2155_v62 = vld [vmem:[%s3551_s12 + $0x140] sm:$0xff] (%p2593_p5)  ;;  %v2157_v49 = vld [vmem:[%s3551_s12 + $0x148] sm:$0xff] (%p2593_p5) }
 0x1de   : > { %v1823_v7 = vpop.f32.mrf.mxu0  ;;  %v1924_v10 = vpop.f32.mrf.mxu1  ;;  %2140 = vst [vmem:[%s3667_s23 + $0x200] sm:$0xff] (%p2593_p5), %v2139_v47  ;;  %2142 = vst [vmem:[%s3667_s23 + $0x208] sm:$0xff] (%p2593_p5), %v2141_v55  ;;  %v2267_v47 = vld [vmem:[%s3551_s12 + $0x300] sm:$0xff] (%p2593_p5)  ;;  %v2269_v55 = vld [vmem:[%s3551_s12 + $0x308] sm:$0xff] (%p2593_p5) }
 0x1df   : > { %2018 = vst [vmem:[%s3551_s12 + $0x228] sm:$0xff] %v1823_v7  ;;  %2020 = vst [vmem:[%s3551_s12 + $0x238] sm:$0xff] %v1924_v10  ;;  %v2159_v7 = vld [vmem:[%s3551_s12 + $0x150] sm:$0xff] (%p2593_p5)  ;;  %v2161_v10 = vld [vmem:[%s3551_s12 + $0x158] sm:$0xff] (%p2593_p5) }
 0x1e0   : > { %v1825_v44 = vpop.f32.mrf.mxu0  ;;  %v1926_v38 = vpop.f32.mrf.mxu1  ;;  %2144 = vst [vmem:[%s3667_s23 + $0x210] sm:$0xff] (%p2593_p5), %v2143_v48  ;;  %2146 = vst [vmem:[%s3667_s23 + $0x218] sm:$0xff] (%p2593_p5), %v2145_v36  ;;  %v2271_v48 = vld [vmem:[%s3551_s12 + $0x310] sm:$0xff] (%p2593_p5)  ;;  %v2273_v36 = vld [vmem:[%s3551_s12 + $0x318] sm:$0xff] (%p2593_p5) }
 0x1e1   : > { %2025 = vst [vmem:[%s3551_s12 + $0x260] sm:$0xff] %v1825_v44  ;;  %2027 = vst [vmem:[%s3551_s12 + $0x270] sm:$0xff] %v1926_v38  ;;  %v2163_v44 = vld [vmem:[%s3551_s12 + $0x160] sm:$0xff] (%p2593_p5)  ;;  %v2165_v38 = vld [vmem:[%s3551_s12 + $0x168] sm:$0xff] (%p2593_p5) }
 0x1e2   : > { %v1827_v14 = vpop.f32.mrf.mxu0  ;;  %v1928_v32 = vpop.f32.mrf.mxu1  ;;  %2148 = vst [vmem:[%s3667_s23 + $0x220] sm:$0xff] (%p2593_p5), %v2147_v19  ;;  %2150 = vst [vmem:[%s3667_s23 + $0x228] sm:$0xff] (%p2593_p5), %v2149_v30 }
 0x1e3   : > { %2026 = vst [vmem:[%s3551_s12 + $0x268] sm:$0xff] %v1827_v14  ;;  %2028 = vst [vmem:[%s3551_s12 + $0x278] sm:$0xff] %v1928_v32  ;;  %v2167_v14 = vld [vmem:[%s3551_s12 + $0x170] sm:$0xff] (%p2593_p5)  ;;  %v2169_v32 = vld [vmem:[%s3551_s12 + $0x178] sm:$0xff] (%p2593_p5) }
 0x1e4   : > { %v1831_v50 = vpop.f32.mrf.mxu0  ;;  %v1932_v43 = vpop.f32.mrf.mxu1  ;;  %2152 = vst [vmem:[%s3667_s23 + $0x230] sm:$0xff] (%p2593_p5), %v2151_v56  ;;  %2154 = vst [vmem:[%s3667_s23 + $0x238] sm:$0xff] (%p2593_p5), %v2153_v42  ;;  %v2211_v40 = vld [vmem:[%s3551_s12 + $0x220] sm:$0xff] (%p2593_p5)  ;;  %v2215_v18 = vld [vmem:[%s3551_s12 + $0x230] sm:$0xff] (%p2593_p5) }
 0x1e5   : > { %2033 = vst [vmem:[%s3551_s12 + $0x2a0] sm:$0xff] %v1831_v50  ;;  %2035 = vst [vmem:[%s3551_s12 + $0x2b0] sm:$0xff] %v1932_v43  ;;  %v2171_v50 = vld [vmem:[%s3551_s12 + $0x180] sm:$0xff] (%p2593_p5)  ;;  %v2173_v43 = vld [vmem:[%s3551_s12 + $0x188] sm:$0xff] (%p2593_p5) }
 0x1e6   : > { %v1833_v51 = vpop.f32.mrf.mxu0  ;;  %v1934_v23 = vpop.f32.mrf.mxu1  ;;  %2156 = vst [vmem:[%s3667_s23 + $0x280] sm:$0xff] (%p2593_p5), %v2155_v62  ;;  %2158 = vst [vmem:[%s3667_s23 + $0x288] sm:$0xff] (%p2593_p5), %v2157_v49  ;;  %v2213_v29 = vld [vmem:[%s3551_s12 + $0x228] sm:$0xff] (%p2593_p5)  ;;  %v2217_v0 = vld [vmem:[%s3551_s12 + $0x238] sm:$0xff] (%p2593_p5) }
 0x1e7   : > { %2034 = vst [vmem:[%s3551_s12 + $0x2a8] sm:$0xff] %v1833_v51  ;;  %2036 = vst [vmem:[%s3551_s12 + $0x2b8] sm:$0xff] %v1934_v23  ;;  %v2175_v51 = vld [vmem:[%s3551_s12 + $0x190] sm:$0xff] (%p2593_p5)  ;;  %v2177_v23 = vld [vmem:[%s3551_s12 + $0x198] sm:$0xff] (%p2593_p5) }
 0x1e8   : > { %v1835_v17 = vpop.f32.mrf.mxu0  ;;  %v1936_v20 = vpop.f32.mrf.mxu1  ;;  %2160 = vst [vmem:[%s3667_s23 + $0x290] sm:$0xff] (%p2593_p5), %v2159_v7  ;;  %2162 = vst [vmem:[%s3667_s23 + $0x298] sm:$0xff] (%p2593_p5), %v2161_v10  ;;  %v2227_v58 = vld [vmem:[%s3551_s12 + $0x260] sm:$0xff] (%p2593_p5)  ;;  %v2231_v57 = vld [vmem:[%s3551_s12 + $0x270] sm:$0xff] (%p2593_p5) }
 0x1e9   : > { %2041 = vst [vmem:[%s3551_s12 + $0x2e0] sm:$0xff] %v1835_v17  ;;  %2043 = vst [vmem:[%s3551_s12 + $0x2f0] sm:$0xff] %v1936_v20  ;;  %v2179_v17 = vld [vmem:[%s3551_s12 + $0x1a0] sm:$0xff] (%p2593_p5)  ;;  %v2181_v20 = vld [vmem:[%s3551_s12 + $0x1a8] sm:$0xff] (%p2593_p5) }
 0x1ea   : > { %v1837_v4 = vpop.f32.mrf.mxu0  ;;  %v1938_v15 = vpop.f32.mrf.mxu1  ;;  %2164 = vst [vmem:[%s3667_s23 + $0x2a0] sm:$0xff] (%p2593_p5), %v2163_v44  ;;  %2166 = vst [vmem:[%s3667_s23 + $0x2a8] sm:$0xff] (%p2593_p5), %v2165_v38  ;;  %v2229_v59 = vld [vmem:[%s3551_s12 + $0x268] sm:$0xff] (%p2593_p5)  ;;  %v2233_v37 = vld [vmem:[%s3551_s12 + $0x278] sm:$0xff] (%p2593_p5) }
 0x1eb   : > { %2042 = vst [vmem:[%s3551_s12 + $0x2e8] sm:$0xff] %v1837_v4  ;;  %2044 = vst [vmem:[%s3551_s12 + $0x2f8] sm:$0xff] %v1938_v15  ;;  %v2183_v4 = vld [vmem:[%s3551_s12 + $0x1b0] sm:$0xff] (%p2593_p5)  ;;  %v2185_v15 = vld [vmem:[%s3551_s12 + $0x1b8] sm:$0xff] (%p2593_p5) }
 0x1ec   : > { %v1841_v22 = vpop.f32.mrf.mxu0  ;;  %v1942_v25 = vpop.f32.mrf.mxu1  ;;  %2168 = vst [vmem:[%s3667_s23 + $0x2b0] sm:$0xff] (%p2593_p5), %v2167_v14  ;;  %2170 = vst [vmem:[%s3667_s23 + $0x2b8] sm:$0xff] (%p2593_p5), %v2169_v32  ;;  %v2243_v54 = vld [vmem:[%s3551_s12 + $0x2a0] sm:$0xff] (%p2593_p5)  ;;  %v2247_v2 = vld [vmem:[%s3551_s12 + $0x2b0] sm:$0xff] (%p2593_p5) }
 0x1ed   : > { %2049 = vst [vmem:[%s3551_s12 + $0x320] sm:$0x3] %v1841_v22  ;;  %2051 = vst [vmem:[%s3551_s12 + $0x330] sm:$0x3] %v1942_v25  ;;  %v2187_v22 = vld [vmem:[%s3551_s12 + $0x1c0] sm:$0xff] (%p2593_p5)  ;;  %v2189_v25 = vld [vmem:[%s3551_s12 + $0x1c8] sm:$0xff] (%p2593_p5) }
 0x1ee   : > { %v1843_v26 = vpop.f32.mrf.mxu0  ;;  %v1944_v61 = vpop.f32.mrf.mxu1  ;;  %2059 = sbr.rel (!%p2593_p5) target bundleno = 519 (0x207), region = 63  ;;  %2172 = vst [vmem:[%s3667_s23 + $0x300] sm:$0xff] (%p2593_p5), %v2171_v50  ;;  %2174 = vst [vmem:[%s3667_s23 + $0x308] sm:$0xff] (%p2593_p5), %v2173_v43  ;;  %v2245_v13 = vld [vmem:[%s3551_s12 + $0x2a8] sm:$0xff] (%p2593_p5)  ;;  %v2249_v24 = vld [vmem:[%s3551_s12 + $0x2b8] sm:$0xff] (%p2593_p5) }
 0x1ef   : > { %2050 = vst [vmem:[%s3551_s12 + $0x328] sm:$0x3] %v1843_v26  ;;  %2052 = vst [vmem:[%s3551_s12 + $0x338] sm:$0x3] %v1944_v61  ;;  %v2191_v26 = vld [vmem:[%s3551_s12 + $0x1d0] sm:$0xff] (%p2593_p5)  ;;  %v2193_v61 = vld [vmem:[%s3551_s12 + $0x1d8] sm:$0xff] (%p2593_p5) }
 0x1f0   : > { %v1845_v60 = vpop.f32.mrf.mxu0  ;;  %v1946_v11 = vpop.f32.mrf.mxu1  ;;  %2176 = vst [vmem:[%s3667_s23 + $0x310] sm:$0xff] (%p2593_p5), %v2175_v51  ;;  %2178 = vst [vmem:[%s3667_s23 + $0x318] sm:$0xff] (%p2593_p5), %v2177_v23  ;;  %v2259_v33 = vld [vmem:[%s3551_s12 + $0x2e0] sm:$0xff] (%p2593_p5)  ;;  %v2263_v34 = vld [vmem:[%s3551_s12 + $0x2f0] sm:$0xff] (%p2593_p5) }
 0x1f1   : > { %2180 = vst [vmem:[%s3667_s23 + $0x320] sm:$0xff] (%p2593_p5), %v2179_v17  ;;  %2182 = vst [vmem:[%s3667_s23 + $0x328] sm:$0xff] (%p2593_p5), %v2181_v20  ;;  %v2195_v60 = vld [vmem:[%s3551_s12 + $0x1e0] sm:$0xff] (%p2593_p5)  ;;  %v2197_v11 = vld [vmem:[%s3551_s12 + $0x1e8] sm:$0xff] (%p2593_p5) }
 0x1f2   : > { %v1846_v3 = vpop.f32.mrf.mxu0  ;;  %v1947_v39 = vpop.f32.mrf.mxu1  ;;  %2184 = vst [vmem:[%s3667_s23 + $0x330] sm:$0xff] (%p2593_p5), %v2183_v4  ;;  %2186 = vst [vmem:[%s3667_s23 + $0x338] sm:$0xff] (%p2593_p5), %v2185_v15  ;;  %v2261_v53 = vld [vmem:[%s3551_s12 + $0x2e8] sm:$0xff] (%p2593_p5)  ;;  %v2265_v12 = vld [vmem:[%s3551_s12 + $0x2f8] sm:$0xff] (%p2593_p5) }
 0x1f3   : > { %2188 = vst [vmem:[%s3667_s23 + $0x380] sm:$0xff] %v2187_v22  ;;  %2190 = vst [vmem:[%s3667_s23 + $0x388] sm:$0xff] %v2189_v25  ;;  %v2199_v3 = vld [vmem:[%s3551_s12 + $0x1f0] sm:$0xff]  ;;  %v2201_v39 = vld [vmem:[%s3551_s12 + $0x1f8] sm:$0xff] }
 0x1f4   : > { %2192 = vst [vmem:[%s3667_s23 + $0x390] sm:$0xff] %v2191_v26  ;;  %2194 = vst [vmem:[%s3667_s23 + $0x398] sm:$0xff] %v2193_v61  ;;  %v2275_v19 = vld [vmem:[%s3551_s12 + $0x320] sm:$0xff]  ;;  %v2279_v56 = vld [vmem:[%s3551_s12 + $0x330] sm:$0xff] }
 0x1f5   : > { %2196 = vst [vmem:[%s3667_s23 + $0x3a0] sm:$0xff] %v2195_v60  ;;  %2198 = vst [vmem:[%s3667_s23 + $0x3a8] sm:$0xff] %v2197_v11 }
 0x1f6   : > { %2200 = vst [vmem:[%s3667_s23 + $0x3b0] sm:$0xff] %v2199_v3  ;;  %2202 = vst [vmem:[%s3667_s23 + $0x3b8] sm:$0xff] %v2201_v39  ;;  %v2277_v30 = vld [vmem:[%s3551_s12 + $0x328] sm:$0xff]  ;;  %v2281_v42 = vld [vmem:[%s3551_s12 + $0x338] sm:$0xff] }
 0x1f7   : > { %2212 = vst [vmem:[%s3667_s23 + $0x420] sm:$0xff] %v2211_v40  ;;  %2214 = vst [vmem:[%s3667_s23 + $0x428] sm:$0xff] %v2213_v29 }
 0x1f8   : > { %2216 = vst [vmem:[%s3667_s23 + $0x430] sm:$0xff] %v2215_v18  ;;  %2218 = vst [vmem:[%s3667_s23 + $0x438] sm:$0xff] %v2217_v0 }
 0x1f9   : > { %2228 = vst [vmem:[%s3667_s23 + $0x4a0] sm:$0xff] %v2227_v58  ;;  %2230 = vst [vmem:[%s3667_s23 + $0x4a8] sm:$0xff] %v2229_v59 }
 0x1fa   : > { %2232 = vst [vmem:[%s3667_s23 + $0x4b0] sm:$0xff] %v2231_v57  ;;  %2234 = vst [vmem:[%s3667_s23 + $0x4b8] sm:$0xff] %v2233_v37 }
 0x1fb   : > { %2236 = vst [vmem:[%s3667_s23 + $0x500] sm:$0xff] %v2235_v8  ;;  %2238 = vst [vmem:[%s3667_s23 + $0x508] sm:$0xff] %v2237_v9 }
 0x1fc   : > { %2240 = vst [vmem:[%s3667_s23 + $0x510] sm:$0xff] %v2239_v16  ;;  %2242 = vst [vmem:[%s3667_s23 + $0x518] sm:$0xff] %v2241_v46 }
 0x1fd   : > { %2244 = vst [vmem:[%s3667_s23 + $0x520] sm:$0xff] %v2243_v54  ;;  %2246 = vst [vmem:[%s3667_s23 + $0x528] sm:$0xff] %v2245_v13 }
 0x1fe   : > { %2248 = vst [vmem:[%s3667_s23 + $0x530] sm:$0xff] %v2247_v2  ;;  %2250 = vst [vmem:[%s3667_s23 + $0x538] sm:$0xff] %v2249_v24 }
 0x1ff   : > { %2252 = vst [vmem:[%s3667_s23 + $0x580] sm:$0xff] %v2251_v41  ;;  %2254 = vst [vmem:[%s3667_s23 + $0x588] sm:$0xff] %v2253_v21 }
 0x200   : > { %2256 = vst [vmem:[%s3667_s23 + $0x590] sm:$0xff] %v2255_v52  ;;  %2258 = vst [vmem:[%s3667_s23 + $0x598] sm:$0xff] %v2257_v1 }
 0x201   : > { %2260 = vst [vmem:[%s3667_s23 + $0x5a0] sm:$0xff] %v2259_v33  ;;  %2262 = vst [vmem:[%s3667_s23 + $0x5a8] sm:$0xff] %v2261_v53 }
 0x202   : > { %2264 = vst [vmem:[%s3667_s23 + $0x5b0] sm:$0xff] %v2263_v34  ;;  %2266 = vst [vmem:[%s3667_s23 + $0x5b8] sm:$0xff] %v2265_v12 }
 0x203   : > { %2268 = vst [vmem:[%s3667_s23 + $0x600] sm:$0xff] %v2267_v47  ;;  %2270 = vst [vmem:[%s3667_s23 + $0x608] sm:$0xff] %v2269_v55 }
 0x204   : > { %2272 = vst [vmem:[%s3667_s23 + $0x610] sm:$0xff] %v2271_v48  ;;  %2274 = vst [vmem:[%s3667_s23 + $0x618] sm:$0xff] %v2273_v36 }
 0x205   : > { %2276 = vst [vmem:[%s3667_s23 + $0x620] sm:$0xff] %v2275_v19  ;;  %2278 = vst [vmem:[%s3667_s23 + $0x628] sm:$0xff] %v2277_v30 }
 0x206   : > { %2280 = vst [vmem:[%s3667_s23 + $0x630] sm:$0xff] %v2279_v56  ;;  %2282 = vst [vmem:[%s3667_s23 + $0x638] sm:$0xff] %v2281_v42 }
 0x207 PF: > { %p11_p10 = scmp.ge.s32.totalorder %s2580_s19, 4   ;;  %s3890_s15 = smov %s2532_s16 }
 0x208   : > { %s3891_s16 = smov %s2591_s22  ;;  %s3892_s17 = smov %s2580_s19 }
 0x209   :  { %13 = sbr.rel (!%p11_p10) target bundleno = 2 (0x2), region = 117 }

// kernel: generator_forward.7
= control target key start
LH: loop header
LB: loop body
LE: loop exit
PB: predicated region body
PF: predicated region fallthrough
CT: control target
= control target key end

     0   :  { %v2133_v0 = vmov 0.0   ;;  %vm1051_vm0 = vmmov 0   ;;  %s2128_s3 = inlined_call_operand.vmem [shape: bf16[128,128], index: 3, kind: input, shape index: {}]   ;;  %s2129_s0 = inlined_call_operand.vmem [shape: f32[392,128], index: 0, kind: input, shape index: {}]   ;;  %s2130_s1 = inlined_call_operand.vmem [shape: f32[1,128], index: 1, kind: input, shape index: {}]   ;;  %s2131_s2 = inlined_call_operand.vmem [shape: f32[1,128], index: 2, kind: input, shape index: {}]   ;;  %s2132_s4 = inlined_call_operand.vmem [shape: f32[392,128], index: 4, kind: output, shape index: {}]  }
   0x1   :  { %906 = vmatprep.subr.bf16.mxu0 %v2133_v0  ;;  %v1040_v1 = vld [vmem:[%s2128_s3 + $0x38] sm:$0xff]   ;;  %1022 = vmatprep.subr.bf16.mxu1 %v2133_v0  ;;  %v1041_v2 = vld [vmem:[%s2128_s3 + $0x30] sm:$0xff]   ;;  %v1042_v3 = vld [vmem:[%s2128_s3 + $0x28] sm:$0xff]  }
   0x2   :  { %922 = vmatprep.mubr.msk.bf16.mxu0 %vm1051_vm0, %v2133_v0  ;;  %974 = vmatprep.mubr.msk.bf16.mxu1 %vm1051_vm0, %v2133_v0  ;;  %v1099_v4 = vld [vmem:[%s2129_s0] sm:$0xff]  ;;  %v1104_v5 = vld [vmem:[%s2129_s0 + $0x8] sm:$0xff]  ;;  %v1109_v6 = vld [vmem:[%s2129_s0 + $0x10] sm:$0xff] }
   0x3   :  { %907 = vmatpush3.bf16.msra.mxu0 %v1040_v1  ;;  %1030 = vmatpush3.bf16.msra.mxu1 %v1040_v1  ;;  %v67_v7 = vadd.f32 %v1104_v5, %v1099_v4  ;;  %v1043_v8 = vld [vmem:[%s2128_s3 + $0x20] sm:$0xff]   ;;  %v1119_v9 = vld [vmem:[%s2129_s0 + $0x18] sm:$0xff]  ;;  %v1136_v14 = vld [vmem:[%s2129_s0 + $0x28] sm:$0xff]  ;;  %v121_v23 = vmul.f32 %v1099_v4, %v1099_v4  ;;  %v122_v24 = vmul.f32 %v1104_v5, %v1104_v5 }
   0x4   :  { %908 = vmatprep.subr.bf16.mxu0 %v2133_v0  ;;  %1023 = vmatprep.subr.bf16.mxu1 %v2133_v0  ;;  %v1127_v11 = vld [vmem:[%s2129_s0 + $0x20] sm:$0xff]  ;;  %v1044_v13 = vld [vmem:[%s2128_s3 + $0x18] sm:$0xff]   ;;  %v1144_v16 = vld [vmem:[%s2129_s0 + $0x30] sm:$0xff]  ;;  %v123_v28 = vmul.f32 %v1109_v6, %v1109_v6  ;;  %v124_v31 = vmul.f32 %v1119_v9, %v1119_v9  ;;  %v126_v40 = vmul.f32 %v1136_v14, %v1136_v14 }
   0x5   :  { %v68_v10 = vadd.f32 %v67_v7, %v1109_v6  ;;  %v1045_v18 = vld [vmem:[%s2128_s3 + $0x10] sm:$0xff]   ;;  %v1153_v19 = vld [vmem:[%s2129_s0 + $0x38] sm:$0xff]  ;;  %v1161_v21 = vld [vmem:[%s2129_s0 + $0x40] sm:$0xff]  ;;  %v170_v32 = vadd.f32 %v122_v24, %v121_v23  ;;  %v125_v36 = vmul.f32 %v1127_v11, %v1127_v11  ;;  %v127_v44 = vmul.f32 %v1144_v16, %v1144_v16 }
   0x6   :  { %v1046_v25 = vld [vmem:[%s2128_s3 + $0x8] sm:$0xff]   ;;  %v1184_v29 = vld [vmem:[%s2129_s0 + $0x50] sm:$0xff]  ;;  %v1047_v33 = vld [vmem:[%s2128_s3] sm:$0xff]   ;;  %v128_v48 = vmul.f32 %v1153_v19, %v1153_v19  ;;  %v129_v52 = vmul.f32 %v1161_v21, %v1161_v21 }
   0x7   :  { %909 = vmatpush3.bf16.msra.mxu0 %v1041_v2  ;;  %1031 = vmatpush3.bf16.msra.mxu1 %v1041_v2  ;;  %v69_v12 = vadd.f32 %v68_v10, %v1119_v9  ;;  %v1174_v26 = vld [vmem:[%s2129_s0 + $0x48] sm:$0xff]  ;;  %v1195_v34 = vld [vmem:[%s2129_s0 + $0x58] sm:$0xff]  ;;  %v171_v37 = vadd.f32 %v170_v32, %v123_v28  ;;  %v1205_v38 = vld [vmem:[%s2129_s0 + $0x60] sm:$0xff]  ;;  %v131_v60 = vmul.f32 %v1184_v29, %v1184_v29 }
   0x8   :  { %910 = vmatprep.subr.bf16.mxu0 %v2133_v0  ;;  %1024 = vmatprep.subr.bf16.mxu1 %v2133_v0  ;;  %v1213_v42 = vld [vmem:[%s2129_s0 + $0x68] sm:$0xff]  ;;  %v1221_v46 = vld [vmem:[%s2129_s0 + $0x70] sm:$0xff]  ;;  %v1229_v50 = vld [vmem:[%s2129_s0 + $0x78] sm:$0xff]  ;;  %v130_v56 = vmul.f32 %v1174_v26, %v1174_v26  ;;  %v132_v1 = vmul.f32 %v1195_v34, %v1195_v34 }
   0x9   :  { %v70_v15 = vadd.f32 %v69_v12, %v1127_v11  ;;  %v172_v41 = vadd.f32 %v171_v37, %v124_v31  ;;  %v1237_v54 = vld [vmem:[%s2129_s0 + $0x80] sm:$0xff]  ;;  %v1245_v58 = vld [vmem:[%s2129_s0 + $0x88] sm:$0xff]  ;;  %v1253_v62 = vld [vmem:[%s2129_s0 + $0x90] sm:$0xff] }
   0xa   :  { %v1269_v12 = vld [vmem:[%s2129_s0 + $0xa0] sm:$0xff]  ;;  %v1285_v24 = vld [vmem:[%s2129_s0 + $0xb0] sm:$0xff]  ;;  %v137_v32 = vmul.f32 %v1237_v54, %v1237_v54  ;;  %v138_v37 = vmul.f32 %v1245_v58, %v1245_v58 }
   0xb   :  { %911 = vmatpush3.bf16.msra.mxu0 %v1042_v3  ;;  %1032 = vmatpush3.bf16.msra.mxu1 %v1042_v3  ;;  %v71_v17 = vadd.f32 %v70_v15, %v1136_v14  ;;  %v173_v45 = vadd.f32 %v172_v41, %v125_v36  ;;  %v1261_v3 = vld [vmem:[%s2129_s0 + $0x98] sm:$0xff]  ;;  %2148 = vst [vmem:[#allocation2_spill] sm:$0xff] %v1269_v12  ;;  %2150 = vst [vmem:[#allocation4_spill] sm:$0xff] %v1285_v24 }
   0xc   :  { %912 = vmatprep.subr.bf16.mxu0 %v2133_v0  ;;  %1025 = vmatprep.subr.bf16.mxu1 %v2133_v0  ;;  %v134_v15 = vmul.f32 %v1213_v42, %v1213_v42 }
   0xd   :  { %v72_v20 = vadd.f32 %v71_v17, %v1144_v16  ;;  %v174_v49 = vadd.f32 %v173_v45, %v126_v40  ;;  %v1309_v40 = vld [vmem:[%s2129_s0 + $0xc8] sm:$0xff]  ;;  %v1317_v45 = vld [vmem:[%s2129_s0 + $0xd0] sm:$0xff] }
   0xe   :  { %2153 = vst [vmem:[#allocation7_spill] sm:$0xff] %v1309_v40 }
   0xf   :  { %913 = vmatpush3.bf16.msra.mxu0 %v1043_v8  ;;  %1033 = vmatpush3.bf16.msra.mxu1 %v1043_v8  ;;  %v73_v22 = vadd.f32 %v72_v20, %v1153_v19  ;;  %v175_v53 = vadd.f32 %v174_v49, %v127_v44  ;;  %v133_v8 = vmul.f32 %v1205_v38, %v1205_v38 }
  0x10   :  { %914 = vmatprep.subr.bf16.mxu0 %v2133_v0  ;;  %1026 = vmatprep.subr.bf16.mxu1 %v2133_v0 }
  0x11   :  { %v74_v27 = vadd.f32 %v73_v22, %v1161_v21  ;;  %v176_v57 = vadd.f32 %v175_v53, %v128_v48  ;;  %v135_v22 = vmul.f32 %v1221_v46, %v1221_v46  ;;  %v140_v48 = vmul.f32 %v1261_v3, %v1261_v3 }
  0x12   :  { %v141_v53 = vmul.f32 %v1269_v12, %v1269_v12 }
  0x13   :  { %915 = vmatpush3.bf16.msra.mxu0 %v1044_v13  ;;  %1034 = vmatpush3.bf16.msra.mxu1 %v1044_v13  ;;  %v75_v30 = vadd.f32 %v74_v27, %v1174_v26  ;;  %v177_v61 = vadd.f32 %v176_v57, %v129_v52  ;;  %v136_v27 = vmul.f32 %v1229_v50, %v1229_v50 }
  0x14   :  { %916 = vmatprep.subr.bf16.mxu0 %v2133_v0  ;;  %1027 = vmatprep.subr.bf16.mxu1 %v2133_v0 }
  0x15   :  { %v76_v35 = vadd.f32 %v75_v30, %v1184_v29  ;;  %v178_v2 = vadd.f32 %v177_v61, %v130_v56  ;;  %v1293_v30 = vld [vmem:[%s2129_s0 + $0xb8] sm:$0xff]  ;;  %v1333_v56 = vld [vmem:[%s2129_s0 + $0xe0] sm:$0xff]  ;;  %v1341_v61 = vld [vmem:[%s2129_s0 + $0xe8] sm:$0xff] }
  0x16   :  { %2151 = vst [vmem:[#allocation5_spill] sm:$0xff] %v1293_v30 }
  0x17   :  { %917 = vmatpush3.bf16.msra.mxu0 %v1045_v18  ;;  %1035 = vmatpush3.bf16.msra.mxu1 %v1045_v18  ;;  %v77_v39 = vadd.f32 %v76_v35, %v1195_v34  ;;  %v179_v10 = vadd.f32 %v178_v2, %v131_v60  ;;  %v1277_v18 = vld [vmem:[%s2129_s0 + $0xa8] sm:$0xff]  ;;  %v1301_v35 = vld [vmem:[%s2129_s0 + $0xc0] sm:$0xff] }
  0x18   :  { %918 = vmatprep.subr.bf16.mxu0 %v2133_v0  ;;  %1028 = vmatprep.subr.bf16.mxu1 %v2133_v0  ;;  %2149 = vst [vmem:[#allocation3_spill] sm:$0xff] %v1277_v18  ;;  %2152 = vst [vmem:[#allocation6_spill] sm:$0xff] %v1301_v35 }
  0x19   :  { %v78_v43 = vadd.f32 %v77_v39, %v1205_v38  ;;  %v180_v17 = vadd.f32 %v179_v10, %v132_v1  ;;  %v143_v1 = vmul.f32 %v1285_v24, %v1285_v24  ;;  %v144_v10 = vmul.f32 %v1293_v30, %v1293_v30 }
  0x1b   :  { %919 = vmatpush3.bf16.msra.mxu0 %v1046_v25  ;;  %1036 = vmatpush3.bf16.msra.mxu1 %v1046_v25  ;;  %v79_v47 = vadd.f32 %v78_v43, %v1213_v42  ;;  %v181_v23 = vadd.f32 %v180_v17, %v133_v8  ;;  %v139_v43 = vmul.f32 %v1253_v62, %v1253_v62 }
  0x1c   :  { %920 = vmatprep.subr.bf16.mxu0 %v2133_v0  ;;  %1029 = vmatprep.subr.bf16.mxu1 %v2133_v0 }
  0x1d   :  { %v80_v51 = vadd.f32 %v79_v47, %v1221_v46  ;;  %v182_v28 = vadd.f32 %v181_v23, %v134_v15  ;;  %v1357_v15 = vld [vmem:[%s2129_s0 + $0xf8] sm:$0xff]  ;;  %v1365_v23 = vld [vmem:[%s2129_s0 + $0x100] sm:$0xff] }
  0x1f   :  { %921 = vmatpush3.bf16.msra.mxu0 %v1047_v33  ;;  %1037 = vmatpush3.bf16.msra.mxu1 %v1047_v33  ;;  %v81_v55 = vadd.f32 %v80_v51, %v1229_v50  ;;  %v183_v33 = vadd.f32 %v182_v28, %v135_v22  ;;  %v1325_v51 = vld [vmem:[%s2129_s0 + $0xd8] sm:$0xff] }
  0x21   :  { %v82_v59 = vadd.f32 %v81_v55, %v1237_v54  ;;  %v184_v39 = vadd.f32 %v183_v33, %v136_v27  ;;  %v146_v27 = vmul.f32 %v1309_v40, %v1309_v40  ;;  %v147_v33 = vmul.f32 %v1317_v45, %v1317_v45 }
  0x23   :  { %v83_v63 = vadd.f32 %v82_v59, %v1245_v58  ;;  %v185_v44 = vadd.f32 %v184_v39, %v137_v32  ;;  %v142_v59 = vmul.f32 %v1277_v18, %v1277_v18 }
  0x25   :  { %v84_v7 = vadd.f32 %v83_v63, %v1253_v62  ;;  %v186_v49 = vadd.f32 %v185_v44, %v138_v37  ;;  %v1381_v37 = vld [vmem:[%s2129_s0 + $0x110] sm:$0xff]  ;;  %v1389_v44 = vld [vmem:[%s2129_s0 + $0x118] sm:$0xff] }
  0x27   :  { %v85_v13 = vadd.f32 %v84_v7, %v1261_v3  ;;  %v187_v55 = vadd.f32 %v186_v49, %v139_v43  ;;  %v1349_v7 = vld [vmem:[%s2129_s0 + $0xf0] sm:$0xff] }
  0x29   :  { %v86_v20 = vadd.f32 %v85_v13, %v1269_v12  ;;  %v188_v60 = vadd.f32 %v187_v55, %v140_v48  ;;  %v149_v48 = vmul.f32 %v1333_v56, %v1333_v56  ;;  %v150_v55 = vmul.f32 %v1341_v61, %v1341_v61 }
  0x2b   :  { %v87_v25 = vadd.f32 %v86_v20, %v1277_v18  ;;  %v189_v2 = vadd.f32 %v188_v60, %v141_v53  ;;  %v145_v20 = vmul.f32 %v1301_v35, %v1301_v35 }
  0x2d   :  { %v88_v31 = vadd.f32 %v87_v25, %v1285_v24  ;;  %v190_v13 = vadd.f32 %v189_v2, %v142_v59  ;;  %v1405_v59 = vld [vmem:[%s2129_s0 + $0x128] sm:$0xff]  ;;  %v1413_v2 = vld [vmem:[%s2129_s0 + $0x130] sm:$0xff] }
  0x2f   :  { %v89_v36 = vadd.f32 %v88_v31, %v1293_v30  ;;  %v191_v22 = vadd.f32 %v190_v13, %v143_v1  ;;  %v1373_v31 = vld [vmem:[%s2129_s0 + $0x108] sm:$0xff] }
  0x31   :  { %v90_v41 = vadd.f32 %v89_v36, %v1301_v35  ;;  %v192_v28 = vadd.f32 %v191_v22, %v144_v10  ;;  %v152_v10 = vmul.f32 %v1357_v15, %v1357_v15  ;;  %v153_v22 = vmul.f32 %v1365_v23, %v1365_v23 }
  0x33   :  { %v91_v47 = vadd.f32 %v90_v41, %v1309_v40  ;;  %v193_v36 = vadd.f32 %v192_v28, %v145_v20  ;;  %v148_v41 = vmul.f32 %v1325_v51, %v1325_v51 }
  0x35   :  { %v92_v52 = vadd.f32 %v91_v47, %v1317_v45  ;;  %v194_v43 = vadd.f32 %v193_v36, %v146_v27  ;;  %v1429_v27 = vld [vmem:[%s2129_s0 + $0x140] sm:$0xff]  ;;  %v1437_v36 = vld [vmem:[%s2129_s0 + $0x148] sm:$0xff] }
  0x37   :  { %v93_v57 = vadd.f32 %v92_v52, %v1325_v51  ;;  %v195_v49 = vadd.f32 %v194_v43, %v147_v33  ;;  %v1397_v52 = vld [vmem:[%s2129_s0 + $0x120] sm:$0xff] }
  0x39   :  { %v94_v63 = vadd.f32 %v93_v57, %v1333_v56  ;;  %v196_v57 = vadd.f32 %v195_v49, %v148_v41  ;;  %v155_v41 = vmul.f32 %v1381_v37, %v1381_v37  ;;  %v156_v49 = vmul.f32 %v1389_v44, %v1389_v44 }
  0x3b   :  { %v95_v8 = vadd.f32 %v94_v63, %v1341_v61  ;;  %v151_v63 = vmul.f32 %v1349_v7, %v1349_v7  ;;  %v197_v1 = vadd.f32 %v196_v57, %v149_v48 }
  0x3d   :  { %v96_v17 = vadd.f32 %v95_v8, %v1349_v7  ;;  %v198_v13 = vadd.f32 %v197_v1, %v150_v55  ;;  %v1453_v55 = vld [vmem:[%s2129_s0 + $0x158] sm:$0xff]  ;;  %v1461_v1 = vld [vmem:[%s2129_s0 + $0x160] sm:$0xff] }
  0x3e   :  { %v165_v0 = vmul.f32 %v1461_v1, %v1461_v1 }
  0x3f   :  { %v97_v25 = vadd.f32 %v96_v17, %v1357_v15  ;;  %v1421_v17 = vld [vmem:[%s2129_s0 + $0x138] sm:$0xff] }
  0x41   :  { %v98_v32 = vadd.f32 %v97_v25, %v1365_v23  ;;  %v199_v25 = vadd.f32 %v198_v13, %v151_v63 }
  0x43   :  { %v99_v39 = vadd.f32 %v98_v32, %v1373_v31  ;;  %v154_v32 = vmul.f32 %v1373_v31, %v1373_v31  ;;  %v200_v33 = vadd.f32 %v199_v25, %v152_v10  ;;  %v158_v10 = vmul.f32 %v1405_v59, %v1405_v59 }
  0x44   :  { %v159_v25 = vmul.f32 %v1413_v2, %v1413_v2 }
  0x45   :  { %v100_v47 = vadd.f32 %v99_v39, %v1381_v37  ;;  %v201_v43 = vadd.f32 %v200_v33, %v153_v22 }
  0x47   :  { %v101_v53 = vadd.f32 %v100_v47, %v1389_v44  ;;  %v1445_v47 = vld [vmem:[%s2129_s0 + $0x150] sm:$0xff] }
  0x49   :  { %v102_v60 = vadd.f32 %v101_v53, %v1397_v52  ;;  %v202_v53 = vadd.f32 %v201_v43, %v154_v32  ;;  %v1477_v32 = vld [vmem:[%s2129_s0 + $0x170] sm:$0xff]  ;;  %v1485_v43 = vld [vmem:[%s2129_s0 + $0x178] sm:$0xff] }
  0x4b   :  { %v103_v8 = vadd.f32 %v102_v60, %v1405_v59  ;;  %v157_v60 = vmul.f32 %v1397_v52, %v1397_v52  ;;  %v203_v63 = vadd.f32 %v202_v53, %v155_v41 }
  0x4d   :  { %v104_v20 = vadd.f32 %v103_v8, %v1413_v2  ;;  %v204_v13 = vadd.f32 %v203_v63, %v156_v49  ;;  %v161_v49 = vmul.f32 %v1429_v27, %v1429_v27  ;;  %v162_v63 = vmul.f32 %v1437_v36, %v1437_v36 }
  0x4f   :  { %v105_v28 = vadd.f32 %v104_v20, %v1421_v17  ;;  %v1469_v20 = vld [vmem:[%s2129_s0 + $0x168] sm:$0xff] }
  0x50   :  { %v166_v40 = vmul.f32 %v1469_v20, %v1469_v20 }
  0x51   :  { %v106_v39 = vadd.f32 %v105_v28, %v1429_v27  ;;  %v205_v28 = vadd.f32 %v204_v13, %v157_v60  ;;  %v163_v13 = vmul.f32 %v1445_v47, %v1445_v47 }
  0x53   :  { %v107_v48 = vadd.f32 %v106_v39, %v1437_v36  ;;  %v160_v39 = vmul.f32 %v1421_v17, %v1421_v17  ;;  %v206_v41 = vadd.f32 %v205_v28, %v158_v10 }
  0x55   :  { %v108_v57 = vadd.f32 %v107_v48, %v1445_v47  ;;  %v207_v53 = vadd.f32 %v206_v41, %v159_v25  ;;  %v164_v25 = vmul.f32 %v1453_v55, %v1453_v55 }
  0x57   :  { %v109_v8 = vadd.f32 %v108_v57, %v1453_v55  ;;  %v1493_v57 = vld [vmem:[%s2129_s0 + $0x180] sm:$0xff] }
  0x58   :  { %2154 = vst [vmem:[#allocation8_spill] sm:$0xff] %v1493_v57 }
  0x59   :  { %v110_v22 = vadd.f32 %v109_v8, %v1461_v1  ;;  %v208_v8 = vadd.f32 %v207_v53, %v160_v39 }
  0x5b   :  { %v111_v33 = vadd.f32 %v110_v22, %v1469_v20  ;;  %v209_v22 = vadd.f32 %v208_v8, %v161_v49  ;;  %v168_v49 = vmul.f32 %v1485_v43, %v1485_v43 }
  0x5d   :  { %v112_v48 = vadd.f32 %v111_v33, %v1477_v32  ;;  %v210_v33 = vadd.f32 %v209_v22, %v162_v63  ;;  %v169_v63 = vmul.f32 %v1493_v57, %v1493_v57 }
  0x5f   :  { %v113_v60 = vadd.f32 %v112_v48, %v1485_v43  ;;  %v211_v48 = vadd.f32 %v210_v33, %v163_v13 }
  0x61   :  { %v114_v10 = vadd.f32 %v113_v60, %v1493_v57  ;;  %v212_v39 = vadd.f32 %v211_v48, %v164_v25  ;;  %v167_v60 = vmul.f32 %v1477_v32, %v1477_v32 }
  0x63   :  { %v115_v28 = vrot.slane %v114_v10, 4  ;;  %v213_v35 = vadd.f32 %v212_v39, %v165_v0 }
  0x65   :  { %v116_v41 = vadd.f32 %v115_v28, %v114_v10  ;;  %v214_v8 = vadd.f32 %v213_v35, %v166_v40 }
  0x67   :  { %v117_v53 = vrot.slane %v116_v41, 2  ;;  %v215_v10 = vadd.f32 %v214_v8, %v167_v60 }
  0x69   :  { %v118_v30 = vadd.f32 %v117_v53, %v116_v41  ;;  %v216_v22 = vadd.f32 %v215_v10, %v168_v49 }
  0x6b   :  { %v119_v13 = vrot.slane %v118_v30, 1  ;;  %v217_v28 = vadd.f32 %v216_v22, %v169_v63 }
  0x6d   :  { %v218_v33 = vrot.slane %v217_v28, 4  ;;  %v120_v24 = vadd.f32 %v119_v13, %v118_v30 }
  0x6f   :  { %v219_v25 = vadd.f32 %v218_v33, %v217_v28  ;;  %v1513_v12 = vmul.f32 0.0025510204, %v120_v24 }
  0x71   :  { %v220_v48 = vrot.slane %v219_v25, 2  ;;  %v226_v35 = vmul.f32 %v1513_v12, %v1513_v12  ;;  %v228_v60 = vsub.f32 %v1099_v4, %v1513_v12  ;;  %v229_v30 = vsub.f32 %v1104_v5, %v1513_v12 }
  0x72   :  { %v254_v49 = vsub.f32 %v1317_v45, %v1513_v12  ;;  %v255_v24 = vsub.f32 %v1325_v51, %v1513_v12  ;;  %v231_v8 = vsub.f32 %v1119_v9, %v1513_v12  ;;  %v256_v63 = vsub.f32 %v1333_v56, %v1513_v12 }
  0x73   :  { %v221_v18 = vadd.f32 %v220_v48, %v219_v25  ;;  %v257_v4 = vsub.f32 %v1341_v61, %v1513_v12 }
  0x75   :  { %v222_v0 = vrot.slane %v221_v18, 1 }
  0x77   :  { %v223_v39 = vadd.f32 %v222_v0, %v221_v18  ;;  %v230_v18 = vsub.f32 %v1109_v6, %v1513_v12 }
  0x79   :  { %v225_v40 = vmul.f32 0.0025510204, %v223_v39  ;;  %v1608_v39 = vld [vmem:[%s2130_s1] ss:$0 sm:$0xff] }
  0x7b   :  { %v227_v41 = vsub.f32 %v225_v40, %v226_v35  ;;  %v2157_v40 = vld [vmem:[#allocation4_spill] sm:$0xff]  ;;  %v1625_v35 = vld [vmem:[%s2131_s2] ss:$0 sm:$0xff] }
  0x7d   :  { %v277_v53 = vadd.f32 1e-05, %v227_v41  ;;  %v2155_v41 = vld [vmem:[#allocation2_spill] sm:$0xff] }
  0x7f   :  { %1048 = vrsqrt.f32 %v277_v53  ;;  %v2156_v53 = vld [vmem:[#allocation3_spill] sm:$0xff] }
  0x8c   :  { %v1603_v28 = vpop.eup %1048 }
  0x8d   :  { %v279_v48 = vmul.f32 %v1603_v28, %v228_v60  ;;  %v280_v22 = vmul.f32 %v1603_v28, %v229_v30  ;;  %v305_v10 = vmul.f32 %v1603_v28, %v254_v49  ;;  %v306_v61 = vmul.f32 %v1603_v28, %v255_v24 }
  0x8e   :  { %v281_v0 = vmul.f32 %v1603_v28, %v230_v18  ;;  %v282_v13 = vmul.f32 %v1603_v28, %v231_v8  ;;  %v307_v56 = vmul.f32 %v1603_v28, %v256_v63  ;;  %v308_v33 = vmul.f32 %v1603_v28, %v257_v4 }
  0x8f   :  { %v335_v60 = vmul.f32 %v1608_v39, %v279_v48  ;;  %v336_v30 = vmul.f32 %v1608_v39, %v280_v22  ;;  %v361_v49 = vmul.f32 %v1608_v39, %v305_v10  ;;  %v362_v24 = vmul.f32 %v1608_v39, %v306_v61 }
  0x90   :  { %v337_v9 = vmul.f32 %v1608_v39, %v281_v0  ;;  %v338_v6 = vmul.f32 %v1608_v39, %v282_v13  ;;  %v363_v18 = vmul.f32 %v1608_v39, %v307_v56  ;;  %v364_v8 = vmul.f32 %v1608_v39, %v308_v33 }
  0x91   :  { %v391_v63 = vadd.f32 %v1625_v35, %v335_v60  ;;  %v392_v4 = vadd.f32 %v1625_v35, %v336_v30  ;;  %v417_v48 = vadd.f32 %v1625_v35, %v361_v49  ;;  %v418_v22 = vadd.f32 %v1625_v35, %v362_v24 }
  0x92   :  { %v393_v10 = vadd.f32 %v1625_v35, %v337_v9  ;;  %v394_v61 = vadd.f32 %v1625_v35, %v338_v6  ;;  %v419_v0 = vadd.f32 %v1625_v35, %v363_v18  ;;  %v420_v13 = vadd.f32 %v1625_v35, %v364_v8 }
  0x93   :  { %v440_v51 = vmax.f32 %v391_v63, 0.0  ;;  %v441_v56 = vmax.f32 %v392_v4, 0.0  ;;  %v466_v45 = vmax.f32 %v417_v48, 0.0  ;;  %v467_v33 = vmax.f32 %v418_v22, 0.0 }
  0x94   :  { %v442_v5 = vmax.f32 %v393_v10, 0.0  ;;  %v443_v60 = vmax.f32 %v394_v61, 0.0  ;;  %v468_v57 = vmax.f32 %v419_v0, 0.0  ;;  %v469_v30 = vmax.f32 %v420_v13, 0.0 }
  0x95   :  { %v489_v25 = vpack.c.bf16 %v441_v56, %v440_v51  ;;  %v502_v49 = vpack.c.bf16 %v467_v33, %v466_v45  ;;  %v2159_v24 = vsub.f32 %v1127_v11, %v1513_v12  ;;  %v2160_v6 = vsub.f32 %v1136_v14, %v1513_v12 }
  0x96   :  { %v490_v8 = vpack.c.bf16 %v443_v60, %v442_v5  ;;  %v503_v63 = vpack.c.bf16 %v469_v30, %v468_v57  ;;  %v2161_v4 = vsub.f32 %v1349_v7, %v1513_v12  ;;  %v2162_v45 = vsub.f32 %v1357_v15, %v1513_v12 }
  0x97   :  { %v283_v9 = vmul.f32 %v1603_v28, %v2159_v24  ;;  %v284_v18 = vmul.f32 %v1603_v28, %v2160_v6  ;;  %923 = vmatmul.mubr.bf16.vlgmr.msra.gmra.mxu0 %v489_v25  ;;  %975 = vmatmul.mubr.bf16.vlgmr.msra.gmra.mxu1 %v502_v49  ;;  %v2163_v5 = vsub.f32 %v1144_v16, %v1513_v12  ;;  %v2164_v22 = vmov 0.0  }
  0x98   :  { %v309_v48 = vmul.f32 %v1603_v28, %v2161_v4  ;;  %v310_v51 = vmul.f32 %v1603_v28, %v2162_v45  ;;  %926 = vmatprep.mubr.msk.bf16.mxu0 %vm1051_vm0, %v2164_v22  ;;  %978 = vmatprep.mubr.msk.bf16.mxu1 %vm1051_vm0, %v2164_v22  ;;  %v2165_v25 = vsub.f32 %v1153_v19, %v1513_v12 }
  0x99   :  { %v339_v11 = vmul.f32 %v1608_v39, %v283_v9  ;;  %v340_v14 = vmul.f32 %v1608_v39, %v284_v18  ;;  %v285_v57 = vmul.f32 %v1603_v28, %v2163_v5  ;;  %v2166_v13 = vsub.f32 %v1365_v23, %v1513_v12 }
  0x9a   :  { %v365_v7 = vmul.f32 %v1608_v39, %v309_v48  ;;  %v366_v15 = vmul.f32 %v1608_v39, %v310_v51  ;;  %v286_v10 = vmul.f32 %v1603_v28, %v2165_v25  ;;  %v2167_v19 = vsub.f32 %v1373_v31, %v1513_v12  ;;  %v2168_v48 = vld [vmem:[#allocation6_spill] sm:$0xff]  ;;  %v2169_v51 = vld [vmem:[#allocation7_spill] sm:$0xff] }
  0x9b   :  { %v395_v61 = vadd.f32 %v1625_v35, %v339_v11  ;;  %v396_v16 = vadd.f32 %v1625_v35, %v340_v14  ;;  %v341_v0 = vmul.f32 %v1608_v39, %v285_v57  ;;  %v311_v56 = vmul.f32 %v1603_v28, %v2166_v13 }
  0x9c   :  { %v421_v33 = vadd.f32 %v1625_v35, %v365_v7  ;;  %v422_v60 = vadd.f32 %v1625_v35, %v366_v15  ;;  %v342_v30 = vmul.f32 %v1608_v39, %v286_v10  ;;  %v312_v49 = vmul.f32 %v1603_v28, %v2167_v19 }
  0x9d   :  { %v444_v24 = vmax.f32 %v395_v61, 0.0  ;;  %v445_v9 = vmax.f32 %v396_v16, 0.0  ;;  %v397_v6 = vadd.f32 %v1625_v35, %v341_v0  ;;  %v367_v18 = vmul.f32 %v1608_v39, %v311_v56 }
  0x9e   :  { %v398_v23 = vadd.f32 %v1625_v35, %v342_v30  ;;  %v368_v4 = vmul.f32 %v1608_v39, %v312_v49  ;;  %v252_v45 = vsub.f32 %v2168_v48, %v1513_v12  ;;  %v253_v11 = vsub.f32 %v2169_v51, %v1513_v12 }
  0x9f   :  { %v470_v14 = vmax.f32 %v421_v33, 0.0  ;;  %v471_v31 = vmax.f32 %v422_v60, 0.0  ;;  %v423_v5 = vadd.f32 %v1625_v35, %v367_v18  ;;  %v2170_v57 = vsub.f32 %v1161_v21, %v1513_v12  ;;  %927 = vmatmul.mubr.bf16.gmra.mxu0 %v490_v8  ;;  %979 = vmatmul.mubr.bf16.gmra.mxu1 %v503_v63 }
  0xa0   :  { %v491_v15 = vpack.c.bf16 %v445_v9, %v444_v24  ;;  %v446_v25 = vmax.f32 %v397_v6, 0.0  ;;  %v424_v10 = vadd.f32 %v1625_v35, %v368_v4  ;;  %v2171_v61 = vsub.f32 %v1174_v26, %v1513_v12  ;;  %930 = vmatprep.mubr.msk.bf16.mxu0 %vm1051_vm0, %v2164_v22  ;;  %982 = vmatprep.mubr.msk.bf16.mxu1 %vm1051_vm0, %v2164_v22 }
  0xa1   :  { %v287_v7 = vmul.f32 %v1603_v28, %v2170_v57  ;;  %v447_v0 = vmax.f32 %v398_v23, 0.0  ;;  %v2172_v56 = vsub.f32 %v1381_v37, %v1513_v12  ;;  %v2173_v33 = vsub.f32 %v1389_v44, %v1513_v12 }
  0xa2   :  { %v288_v16 = vmul.f32 %v1603_v28, %v2171_v61  ;;  %v472_v26 = vmax.f32 %v423_v5, 0.0  ;;  %v473_v8 = vmax.f32 %v424_v10, 0.0  ;;  %v2174_v37 = vsub.f32 %v1184_v29, %v1513_v12 }
  0xa3   :  { %v343_v13 = vmul.f32 %v1608_v39, %v287_v7  ;;  %v313_v21 = vmul.f32 %v1603_v28, %v2172_v56  ;;  %v314_v60 = vmul.f32 %v1603_v28, %v2173_v33  ;;  %v2175_v24 = vsub.f32 %v1195_v34, %v1513_v12 }
  0xa4   :  { %v344_v63 = vmul.f32 %v1608_v39, %v288_v16  ;;  %v289_v30 = vmul.f32 %v1603_v28, %v2174_v37  ;;  %v504_v6 = vpack.c.bf16 %v471_v31, %v470_v14  ;;  %v2176_v29 = vsub.f32 %v1397_v52, %v1513_v12 }
  0xa5   :  { %v399_v19 = vadd.f32 %v1625_v35, %v343_v13  ;;  %v369_v44 = vmul.f32 %v1608_v39, %v313_v21  ;;  %v370_v49 = vmul.f32 %v1608_v39, %v314_v60  ;;  %v290_v9 = vmul.f32 %v1603_v28, %v2175_v24 }
  0xa6   :  { %v400_v18 = vadd.f32 %v1625_v35, %v344_v63  ;;  %v345_v23 = vmul.f32 %v1608_v39, %v289_v30  ;;  %v315_v4 = vmul.f32 %v1603_v28, %v2176_v29  ;;  %v2177_v14 = vsub.f32 %v1405_v59, %v1513_v12 }
  0xa7   :  { %v448_v5 = vmax.f32 %v399_v19, 0.0  ;;  %v425_v57 = vadd.f32 %v1625_v35, %v369_v44  ;;  %v426_v7 = vadd.f32 %v1625_v35, %v370_v49  ;;  %v346_v10 = vmul.f32 %v1608_v39, %v290_v9  ;;  %931 = vmatmul.mubr.bf16.gmra.mxu0 %v491_v15  ;;  %983 = vmatmul.mubr.bf16.gmra.mxu1 %v504_v6 }
  0xa8   :  { %v449_v34 = vmax.f32 %v400_v18, 0.0  ;;  %v401_v61 = vadd.f32 %v1625_v35, %v345_v23  ;;  %v316_v31 = vmul.f32 %v1603_v28, %v2177_v14  ;;  %v371_v16 = vmul.f32 %v1608_v39, %v315_v4  ;;  %934 = vmatprep.mubr.msk.bf16.mxu0 %vm1051_vm0, %v2164_v22  ;;  %986 = vmatprep.mubr.msk.bf16.mxu1 %vm1051_vm0, %v2164_v22 }
  0xa9   :  { %v492_v52 = vpack.c.bf16 %v447_v0, %v446_v25  ;;  %v505_v13 = vpack.c.bf16 %v473_v8, %v472_v26  ;;  %v402_v56 = vadd.f32 %v1625_v35, %v346_v10  ;;  %v2178_v21 = vsub.f32 %v1205_v38, %v1513_v12 }
  0xaa   :  { %v474_v60 = vmax.f32 %v425_v57, 0.0  ;;  %v475_v63 = vmax.f32 %v426_v7, 0.0  ;;  %v372_v37 = vmul.f32 %v1608_v39, %v316_v31  ;;  %v427_v30 = vadd.f32 %v1625_v35, %v371_v16 }
  0xab   :  { %v291_v33 = vmul.f32 %v1603_v28, %v2178_v21  ;;  %v1758_v59 = vpack.c.bf16 %v449_v34, %v448_v5  ;;  %v450_v19 = vmax.f32 %v401_v61, 0.0  ;;  %v2179_v25 = vsub.f32 %v1213_v42, %v1513_v12 }
  0xac   :  { %v451_v26 = vmax.f32 %v402_v56, 0.0  ;;  %v428_v15 = vadd.f32 %v1625_v35, %v372_v37  ;;  %v2180_v8 = vsub.f32 %v1413_v2, %v1513_v12  ;;  %v2181_v42 = vsub.f32 %v1421_v17, %v1513_v12 }
  0xad   :  { %v292_v0 = vmul.f32 %v1603_v28, %v2179_v25  ;;  %v347_v38 = vmul.f32 %v1608_v39, %v291_v33  ;;  %v476_v24 = vmax.f32 %v427_v30, 0.0  ;;  %v2182_v18 = vsub.f32 %v1221_v46, %v1513_v12 }
  0xae   :  { %v317_v44 = vmul.f32 %v1603_v28, %v2180_v8  ;;  %v318_v49 = vmul.f32 %v1603_v28, %v2181_v42  ;;  %v477_v29 = vmax.f32 %v428_v15, 0.0  ;;  %v2183_v17 = vsub.f32 %v1229_v50, %v1513_v12 }
  0xaf   :  { %v348_v9 = vmul.f32 %v1608_v39, %v292_v0  ;;  %v1780_v6 = vadd.f32 %v1625_v35, %v347_v38  ;;  %v293_v23 = vmul.f32 %v1603_v28, %v2182_v18  ;;  %v506_v57 = vpack.c.bf16 %v475_v63, %v474_v60  ;;  %935 = vmatmul.mubr.bf16.gmra.mxu0 %v492_v52 }
  0xb0   :  { %v373_v2 = vmul.f32 %v1608_v39, %v317_v44  ;;  %v374_v4 = vmul.f32 %v1608_v39, %v318_v49  ;;  %v294_v5 = vmul.f32 %v1603_v28, %v2183_v17  ;;  %v2184_v46 = vsub.f32 %v1429_v27, %v1513_v12  ;;  %987 = vmatmul.mubr.bf16.gmra.mxu1 %v505_v13 }
  0xb1   :  { %v1793_v7 = vadd.f32 %v1625_v35, %v348_v9  ;;  %v349_v10 = vmul.f32 %v1608_v39, %v293_v23  ;;  %v1800_v61 = vpack.c.bf16 %v451_v26, %v450_v19  ;;  %v452_v16 = vmax.f32 %v1780_v6, 0.0  ;;  %938 = vmatprep.mubr.msk.bf16.mxu0 %vm1051_vm0, %v2164_v22  ;;  %990 = vmatprep.mubr.msk.bf16.mxu1 %vm1051_vm0, %v2164_v22 }
  0xb2   :  { %v319_v34 = vmul.f32 %v1603_v28, %v2184_v46  ;;  %v1803_v14 = vadd.f32 %v1625_v35, %v373_v2  ;;  %v1806_v50 = vadd.f32 %v1625_v35, %v374_v4  ;;  %v350_v31 = vmul.f32 %v1608_v39, %v294_v5 }
  0xb3   :  { %v405_v56 = vadd.f32 %v1625_v35, %v349_v10  ;;  %v2185_v21 = vsub.f32 %v1437_v36, %v1513_v12  ;;  %v1816_v60 = vpack.c.bf16 %v477_v29, %v476_v24  ;;  %v453_v63 = vmax.f32 %v1793_v7, 0.0 }
  0xb4   :  { %v375_v33 = vmul.f32 %v1608_v39, %v319_v34  ;;  %v406_v37 = vadd.f32 %v1625_v35, %v350_v31  ;;  %v2186_v30 = vsub.f32 %v1237_v54, %v1513_v12  ;;  %v478_v25 = vmax.f32 %v1803_v14, 0.0 }
  0xb5   :  { %v320_v27 = vmul.f32 %v1603_v28, %v2185_v21  ;;  %v454_v36 = vmax.f32 %v405_v56, 0.0  ;;  %v479_v26 = vmax.f32 %v1806_v50, 0.0  ;;  %v2187_v52 = vsub.f32 %v1245_v58, %v1513_v12 }
  0xb6   :  { %v295_v19 = vmul.f32 %v1603_v28, %v2186_v30  ;;  %v431_v38 = vadd.f32 %v1625_v35, %v375_v33  ;;  %v455_v54 = vmax.f32 %v406_v37, 0.0  ;;  %v2188_v42 = vsub.f32 %v1445_v47, %v1513_v12 }
  0xb7   :  { %v376_v0 = vmul.f32 %v1608_v39, %v320_v27  ;;  %v296_v13 = vmul.f32 %v1603_v28, %v2187_v52  ;;  %v2189_v24 = vsub.f32 %v1453_v55, %v1513_v12  ;;  %v2190_v29 = vsub.f32 %v1253_v62, %v1513_v12  ;;  %939 = vmatmul.mubr.bf16.gmra.mxu0 %v1758_v59 }
  0xb8   :  { %v351_v15 = vmul.f32 %v1608_v39, %v295_v19  ;;  %v480_v44 = vmax.f32 %v431_v38, 0.0  ;;  %v321_v49 = vmul.f32 %v1603_v28, %v2188_v42  ;;  %v1846_v18 = vpack.c.bf16 %v455_v54, %v454_v36  ;;  %991 = vmatmul.mubr.bf16.gmra.mxu1 %v506_v57  ;;  %942 = vmatprep.mubr.msk.bf16.mxu0 %vm1051_vm0, %v2164_v22 }
  0xb9   :  { %v432_v8 = vadd.f32 %v1625_v35, %v376_v0  ;;  %v322_v9 = vmul.f32 %v1603_v28, %v2189_v24  ;;  %v352_v58 = vmul.f32 %v1608_v39, %v296_v13  ;;  %v297_v2 = vmul.f32 %v1603_v28, %v2190_v29  ;;  %994 = vmatprep.mubr.msk.bf16.mxu1 %vm1051_vm0, %v2164_v22 }
  0xba   :  { %v407_v23 = vadd.f32 %v1625_v35, %v351_v15  ;;  %v377_v47 = vmul.f32 %v1608_v39, %v321_v49  ;;  %v2191_v55 = vsub.f32 %v1261_v3, %v1513_v12  ;;  %v2192_v62 = vsub.f32 %v1461_v1, %v1513_v12 }
  0xbb   :  { %v481_v4 = vmax.f32 %v432_v8, 0.0  ;;  %v378_v17 = vmul.f32 %v1608_v39, %v322_v9  ;;  %v408_v10 = vadd.f32 %v1625_v35, %v352_v58  ;;  %v353_v34 = vmul.f32 %v1608_v39, %v297_v2 }
  0xbc   :  { %v298_v5 = vmul.f32 %v1603_v28, %v2191_v55  ;;  %v456_v46 = vmax.f32 %v407_v23, 0.0  ;;  %v323_v31 = vmul.f32 %v1603_v28, %v2192_v62  ;;  %v433_v21 = vadd.f32 %v1625_v35, %v377_v47 }
  0xbd   :  { %v1866_v56 = vpack.c.bf16 %v481_v4, %v480_v44  ;;  %v434_v27 = vadd.f32 %v1625_v35, %v378_v17  ;;  %v457_v33 = vmax.f32 %v408_v10, 0.0  ;;  %v409_v37 = vadd.f32 %v1625_v35, %v353_v34  ;;  %v2199_v10 = vld [vmem:[#allocation5_spill] sm:$0xff] }
  0xbe   :  { %v354_v3 = vmul.f32 %v1608_v39, %v298_v5  ;;  %v2193_v30 = vsub.f32 %v1469_v20, %v1513_v12  ;;  %v379_v1 = vmul.f32 %v1608_v39, %v323_v31  ;;  %v482_v36 = vmax.f32 %v433_v21, 0.0  ;;  %v2201_v21 = vld [vmem:[#allocation8_spill] sm:$0xff] }
  0xbf   :  { %v483_v0 = vmax.f32 %v434_v27, 0.0  ;;  %v2194_v54 = vsub.f32 %v2155_v41, %v1513_v12  ;;  %v1887_v20 = vpack.c.bf16 %v457_v33, %v456_v46  ;;  %v458_v13 = vmax.f32 %v409_v37, 0.0  ;;  %943 = vmatmul.mubr.bf16.gmra.mxu0 %v1800_v61 }
  0xc0   :  { %v324_v19 = vmul.f32 %v1603_v28, %v2193_v30  ;;  %v410_v38 = vadd.f32 %v1625_v35, %v354_v3  ;;  %v435_v57 = vadd.f32 %v1625_v35, %v379_v1  ;;  %v2195_v41 = vsub.f32 %v2156_v53, %v1513_v12  ;;  %995 = vmatmul.mubr.bf16.gmra.mxu1 %v1816_v60 }
  0xc1   :  { %v299_v52 = vmul.f32 %v1603_v28, %v2194_v54  ;;  %v510_v15 = vpack.c.bf16 %v483_v0, %v482_v36  ;;  %v2196_v9 = vsub.f32 %v1477_v32, %v1513_v12  ;;  %v2197_v23 = vsub.f32 %v1485_v43, %v1513_v12  ;;  %946 = vmatprep.mubr.msk.bf16.mxu0 %vm1051_vm0, %v2164_v22 }
  0xc2   :  { %v380_v59 = vmul.f32 %v1608_v39, %v324_v19  ;;  %v459_v8 = vmax.f32 %v410_v38, 0.0  ;;  %v300_v44 = vmul.f32 %v1603_v28, %v2195_v41  ;;  %v484_v24 = vmax.f32 %v435_v57, 0.0  ;;  %998 = vmatprep.mubr.msk.bf16.mxu1 %vm1051_vm0, %v2164_v22 }
  0xc3   :  { %v355_v42 = vmul.f32 %v1608_v39, %v299_v52  ;;  %v325_v58 = vmul.f32 %v1603_v28, %v2196_v9  ;;  %v326_v29 = vmul.f32 %v1603_v28, %v2197_v23  ;;  %v2198_v47 = vsub.f32 %v2157_v40, %v1513_v12 }
  0xc4   :  { %v436_v49 = vadd.f32 %v1625_v35, %v380_v59  ;;  %v498_v2 = vpack.c.bf16 %v459_v8, %v458_v13  ;;  %v356_v53 = vmul.f32 %v1608_v39, %v300_v44  ;;  %v2200_v43 = vsub.f32 %v2199_v10, %v1513_v12 }
  0xc5   :  { %v411_v4 = vadd.f32 %v1625_v35, %v355_v42  ;;  %v301_v17 = vmul.f32 %v1603_v28, %v2198_v47  ;;  %v381_v32 = vmul.f32 %v1608_v39, %v325_v58  ;;  %v382_v5 = vmul.f32 %v1608_v39, %v326_v29 }
  0xc6   :  { %v485_v55 = vmax.f32 %v436_v49, 0.0  ;;  %v302_v46 = vmul.f32 %v1603_v28, %v2200_v43  ;;  %v412_v34 = vadd.f32 %v1625_v35, %v356_v53  ;;  %v2202_v40 = vsub.f32 %v2201_v21, %v1513_v12 }
  0xc7   :  { %v460_v62 = vmax.f32 %v411_v4, 0.0  ;;  %v357_v31 = vmul.f32 %v1608_v39, %v301_v17  ;;  %v437_v33 = vadd.f32 %v1625_v35, %v381_v32  ;;  %v438_v37 = vadd.f32 %v1625_v35, %v382_v5 }
  0xc8   :  { %v327_v27 = vmul.f32 %v1603_v28, %v2202_v40  ;;  %v511_v3 = vpack.c.bf16 %v485_v55, %v484_v24  ;;  %v358_v30 = vmul.f32 %v1608_v39, %v302_v46  ;;  %v461_v19 = vmax.f32 %v412_v34, 0.0 }
  0xc9   :  { %v413_v1 = vadd.f32 %v1625_v35, %v357_v31  ;;  %v303_v0 = vmul.f32 %v1603_v28, %v252_v45  ;;  %v486_v38 = vmax.f32 %v437_v33, 0.0  ;;  %v487_v61 = vmax.f32 %v438_v37, 0.0 }
  0xca   :  { %v383_v36 = vmul.f32 %v1608_v39, %v327_v27  ;;  %v414_v60 = vadd.f32 %v1625_v35, %v358_v30  ;;  %v304_v54 = vmul.f32 %v1603_v28, %v253_v11  ;;  %v499_v52 = vpack.c.bf16 %v461_v19, %v460_v62 }
  0xcb   :  { %v462_v13 = vmax.f32 %v413_v1, 0.0  ;;  %v359_v45 = vmul.f32 %v1608_v39, %v303_v0  ;;  %v512_v59 = vpack.c.bf16 %v487_v61, %v486_v38  ;;  %v495_v41 = vpack.c.bf16 %v453_v63, %v452_v16 }
  0xcc   :  { %v439_v48 = vadd.f32 %v1625_v35, %v383_v36  ;;  %v463_v57 = vmax.f32 %v414_v60, 0.0  ;;  %v360_v8 = vmul.f32 %v1608_v39, %v304_v54  ;;  %v508_v12 = vpack.c.bf16 %v479_v26, %v478_v25 }
  0xcd   :  { %v415_v28 = vadd.f32 %v1625_v35, %v359_v45  ;;  %947 = vmatmul.mubr.bf16.gmra.mxu0 %v495_v41 }
  0xce   :  { %v500_v51 = vpack.c.bf16 %v463_v57, %v462_v13  ;;  %v416_v11 = vadd.f32 %v1625_v35, %v360_v8  ;;  %999 = vmatmul.mubr.bf16.gmra.mxu1 %v508_v12  ;;  %950 = vmatprep.mubr.msk.bf16.mxu0 %vm1051_vm0, %v2164_v22  ;;  %v488_v35 = vmax.f32 %v439_v48, 0.0 }
  0xcf   :  { %v464_v44 = vmax.f32 %v415_v28, 0.0  ;;  %1002 = vmatprep.mubr.msk.bf16.mxu1 %vm1051_vm0, %v2164_v22 }
  0xd0   :  { %v465_v42 = vmax.f32 %v416_v11, 0.0  ;;  %v513_v6 = vpack.c.bf16 %v488_v35, %v488_v35 }
  0xd2   :  { %v501_v39 = vpack.c.bf16 %v465_v42, %v464_v44 }
  0xd5   :  { %951 = vmatmul.mubr.bf16.gmra.mxu0 %v1846_v18 }
  0xd6   :  { %1003 = vmatmul.mubr.bf16.gmra.mxu1 %v1866_v56  ;;  %954 = vmatprep.mubr.msk.bf16.mxu0 %vm1051_vm0, %v2164_v22 }
  0xd7   :  { %1006 = vmatprep.mubr.msk.bf16.mxu1 %vm1051_vm0, %v2164_v22 }
  0xdd   :  { %955 = vmatmul.mubr.bf16.gmra.mxu0 %v1887_v20 }
  0xde   :  { %1007 = vmatmul.mubr.bf16.gmra.mxu1 %v510_v15  ;;  %958 = vmatprep.mubr.msk.bf16.mxu0 %vm1051_vm0, %v2164_v22 }
  0xdf   :  { %1010 = vmatprep.mubr.msk.bf16.mxu1 %vm1051_vm0, %v2164_v22 }
  0xe5   :  { %959 = vmatmul.mubr.bf16.gmra.mxu0 %v498_v2 }
  0xe6   :  { %1011 = vmatmul.mubr.bf16.gmra.mxu1 %v511_v3  ;;  %962 = vmatprep.mubr.msk.bf16.mxu0 %vm1051_vm0, %v2164_v22 }
  0xe7   :  { %1014 = vmatprep.mubr.msk.bf16.mxu1 %vm1051_vm0, %v2164_v22 }
  0xed   :  { %963 = vmatmul.mubr.bf16.gmra.mxu0 %v499_v52 }
  0xee   :  { %1015 = vmatmul.mubr.bf16.gmra.mxu1 %v512_v59  ;;  %966 = vmatprep.mubr.msk.bf16.mxu0 %vm1051_vm0, %v2164_v22 }
  0xef   :  { %1018 = vmatprep.mubr.msk.bf16.mxu1 %vm1051_vm0, %v2164_v22 }
  0xf5   :  { %967 = vmatmul.mubr.bf16.gmra.mxu0 %v500_v51 }
  0xf6   :  { %1019 = vmatmul.mubr.bf16.gmra.mxu1 %v513_v6  ;;  %970 = vmatprep.mubr.msk.bf16.mxu0 %vm1051_vm0, %v2164_v22 }
  0xfd   :  { %971 = vmatmul.mubr.bf16.gmra.mxu0 %v501_v39 }
 0x157   :  { %v612_v7 = vpop.f32.mrf.mxu0  ;;  %v716_v14 = vpop.f32.mrf.mxu1 }
 0x158   :  { %810 = vst [vmem:[%s2132_s4] sm:$0xff] %v612_v7  ;;  %836 = vst [vmem:[%s2132_s4 + $0xd0] sm:$0xff] %v716_v14 }
 0x159   :  { %v924_v50 = vpop.f32.mrf.mxu0  ;;  %v976_v16 = vpop.f32.mrf.mxu1 }
 0x15b   :  { %v615_v63 = vpop.f32.mrf.mxu0  ;;  %v719_v25 = vpop.f32.mrf.mxu1 }
 0x15c   :  { %811 = vst [vmem:[%s2132_s4 + $0x8] sm:$0xff] %v615_v63  ;;  %837 = vst [vmem:[%s2132_s4 + $0xd8] sm:$0xff] %v719_v25 }
 0x15d   :  { %v925_v22 = vpop.f32.mrf.mxu0  ;;  %v977_v26 = vpop.f32.mrf.mxu1 }
 0x15f   :  { %v620_v18 = vpop.f32.mrf.mxu0  ;;  %v724_v56 = vpop.f32.mrf.mxu1 }
 0x160   :  { %812 = vst [vmem:[%s2132_s4 + $0x10] sm:$0xff] %v620_v18  ;;  %838 = vst [vmem:[%s2132_s4 + $0xe0] sm:$0xff] %v724_v56 }
 0x161   :  { %v928_v20 = vpop.f32.mrf.mxu0  ;;  %v980_v15 = vpop.f32.mrf.mxu1 }
 0x163   :  { %v623_v49 = vpop.f32.mrf.mxu0  ;;  %v727_v24 = vpop.f32.mrf.mxu1 }
 0x164   :  { %813 = vst [vmem:[%s2132_s4 + $0x18] sm:$0xff] %v623_v49  ;;  %839 = vst [vmem:[%s2132_s4 + $0xe8] sm:$0xff] %v727_v24 }
 0x165   :  { %v929_v9 = vpop.f32.mrf.mxu0  ;;  %v981_v58 = vpop.f32.mrf.mxu1 }
 0x167   :  { %v628_v23 = vpop.f32.mrf.mxu0  ;;  %v732_v29 = vpop.f32.mrf.mxu1 }
 0x168   :  { %814 = vst [vmem:[%s2132_s4 + $0x20] sm:$0xff] %v628_v23  ;;  %840 = vst [vmem:[%s2132_s4 + $0xf0] sm:$0xff] %v732_v29 }
 0x169   :  { %v932_v2 = vpop.f32.mrf.mxu0  ;;  %v984_v53 = vpop.f32.mrf.mxu1 }
 0x16b   :  { %v631_v4 = vpop.f32.mrf.mxu0  ;;  %v735_v47 = vpop.f32.mrf.mxu1 }
 0x16c   :  { %815 = vst [vmem:[%s2132_s4 + $0x28] sm:$0xff] %v631_v4  ;;  %841 = vst [vmem:[%s2132_s4 + $0xf8] sm:$0xff] %v735_v47 }
 0x16d   :  { %v933_v17 = vpop.f32.mrf.mxu0  ;;  %v985_v55 = vpop.f32.mrf.mxu1 }
 0x16f   :  { %v636_v32 = vpop.f32.mrf.mxu0 }
 0x170   :  { %v740_v5 = vpop.f32.mrf.mxu1  ;;  %816 = vst [vmem:[%s2132_s4 + $0x30] sm:$0xff] %v636_v32 }
 0x171   :  { %842 = vst [vmem:[%s2132_s4 + $0x100] sm:$0xff] %v740_v5  ;;  %v936_v10 = vpop.f32.mrf.mxu0 }
 0x172   :  { %v988_v43 = vpop.f32.mrf.mxu1 }
 0x173   :  { %v639_v46 = vpop.f32.mrf.mxu0 }
 0x174   :  { %v743_v34 = vpop.f32.mrf.mxu1  ;;  %817 = vst [vmem:[%s2132_s4 + $0x38] sm:$0xff] %v639_v46 }
 0x175   :  { %843 = vst [vmem:[%s2132_s4 + $0x108] sm:$0xff] %v743_v34  ;;  %v937_v62 = vpop.f32.mrf.mxu0 }
 0x176   :  { %v989_v31 = vpop.f32.mrf.mxu1 }
 0x177   :  { %v644_v21 = vpop.f32.mrf.mxu0 }
 0x178   :  { %v748_v40 = vpop.f32.mrf.mxu1  ;;  %818 = vst [vmem:[%s2132_s4 + $0x40] sm:$0xff] %v644_v21 }
 0x179   :  { %844 = vst [vmem:[%s2132_s4 + $0x110] sm:$0xff] %v748_v40  ;;  %v940_v27 = vpop.f32.mrf.mxu0 }
 0x17a   :  { %v992_v3 = vpop.f32.mrf.mxu1 }
 0x17b   :  { %v647_v33 = vpop.f32.mrf.mxu0 }
 0x17c   :  { %v751_v37 = vpop.f32.mrf.mxu1  ;;  %819 = vst [vmem:[%s2132_s4 + $0x48] sm:$0xff] %v647_v33 }
 0x17d   :  { %845 = vst [vmem:[%s2132_s4 + $0x118] sm:$0xff] %v751_v37  ;;  %v941_v30 = vpop.f32.mrf.mxu0 }
 0x17e   :  { %v993_v19 = vpop.f32.mrf.mxu1 }
 0x17f   :  { %v652_v1 = vpop.f32.mrf.mxu0 }
 0x180   :  { %v756_v36 = vpop.f32.mrf.mxu1  ;;  %820 = vst [vmem:[%s2132_s4 + $0x50] sm:$0xff] %v652_v1 }
 0x181   :  { %846 = vst [vmem:[%s2132_s4 + $0x120] sm:$0xff] %v756_v36  ;;  %v944_v0 = vpop.f32.mrf.mxu0 }
 0x182   :  { %v996_v38 = vpop.f32.mrf.mxu1 }
 0x183   :  { %v655_v61 = vpop.f32.mrf.mxu0 }
 0x184   :  { %v759_v60 = vpop.f32.mrf.mxu1  ;;  %821 = vst [vmem:[%s2132_s4 + $0x58] sm:$0xff] %v655_v61 }
 0x185   :  { %847 = vst [vmem:[%s2132_s4 + $0x128] sm:$0xff] %v759_v60  ;;  %v945_v54 = vpop.f32.mrf.mxu0 }
 0x186   :  { %v997_v52 = vpop.f32.mrf.mxu1 }
 0x18d   :  { %v660_v13 = vpop.f32.mrf.mxu0 }
 0x18e   :  { %v764_v48 = vpop.f32.mrf.mxu1  ;;  %822 = vst [vmem:[%s2132_s4 + $0x60] sm:$0xff] %v660_v13 }
 0x18f   :  { %848 = vst [vmem:[%s2132_s4 + $0x130] sm:$0xff] %v764_v48  ;;  %v948_v45 = vpop.f32.mrf.mxu0 }
 0x190   :  { %v1000_v59 = vpop.f32.mrf.mxu1 }
 0x191   :  { %v663_v57 = vpop.f32.mrf.mxu0 }
 0x192   :  { %v767_v8 = vpop.f32.mrf.mxu1  ;;  %823 = vst [vmem:[%s2132_s4 + $0x68] sm:$0xff] %v663_v57 }
 0x193   :  { %849 = vst [vmem:[%s2132_s4 + $0x138] sm:$0xff] %v767_v8  ;;  %v949_v41 = vpop.f32.mrf.mxu0 }
 0x194   :  { %v1001_v12 = vpop.f32.mrf.mxu1 }
 0x195   :  { %v668_v28 = vpop.f32.mrf.mxu0 }
 0x196   :  { %v772_v51 = vpop.f32.mrf.mxu1  ;;  %824 = vst [vmem:[%s2132_s4 + $0x70] sm:$0xff] %v668_v28 }
 0x197   :  { %850 = vst [vmem:[%s2132_s4 + $0x140] sm:$0xff] %v772_v51  ;;  %v952_v11 = vpop.f32.mrf.mxu0 }
 0x198   :  { %v1004_v44 = vpop.f32.mrf.mxu1 }
 0x199   :  { %v671_v42 = vpop.f32.mrf.mxu0 }
 0x19a   :  { %v775_v39 = vpop.f32.mrf.mxu1  ;;  %825 = vst [vmem:[%s2132_s4 + $0x78] sm:$0xff] %v671_v42 }
 0x19b   :  { %851 = vst [vmem:[%s2132_s4 + $0x148] sm:$0xff] %v775_v39  ;;  %v953_v35 = vpop.f32.mrf.mxu0 }
 0x19c   :  { %v1005_v6 = vpop.f32.mrf.mxu1 }
 0x19d   :  { %v676_v7 = vpop.f32.mrf.mxu0 }
 0x19e   :  { %v780_v14 = vpop.f32.mrf.mxu1  ;;  %826 = vst [vmem:[%s2132_s4 + $0x80] sm:$0xff] %v676_v7 }
 0x19f   :  { %852 = vst [vmem:[%s2132_s4 + $0x150] sm:$0xff] %v780_v14  ;;  %v956_v50 = vpop.f32.mrf.mxu0 }
 0x1a0   :  { %v1008_v16 = vpop.f32.mrf.mxu1 }
 0x1a1   :  { %v679_v63 = vpop.f32.mrf.mxu0 }
 0x1a2   :  { %v783_v25 = vpop.f32.mrf.mxu1  ;;  %827 = vst [vmem:[%s2132_s4 + $0x88] sm:$0xff] %v679_v63 }
 0x1a3   :  { %853 = vst [vmem:[%s2132_s4 + $0x158] sm:$0xff] %v783_v25  ;;  %v957_v22 = vpop.f32.mrf.mxu0 }
 0x1a4   :  { %v1009_v26 = vpop.f32.mrf.mxu1 }
 0x1a5   :  { %v684_v18 = vpop.f32.mrf.mxu0 }
 0x1a6   :  { %v788_v56 = vpop.f32.mrf.mxu1  ;;  %828 = vst [vmem:[%s2132_s4 + $0x90] sm:$0xff] %v684_v18 }
 0x1a7   :  { %854 = vst [vmem:[%s2132_s4 + $0x160] sm:$0xff] %v788_v56  ;;  %v960_v20 = vpop.f32.mrf.mxu0 }
 0x1a8   :  { %v1012_v15 = vpop.f32.mrf.mxu1 }
 0x1a9   :  { %v687_v49 = vpop.f32.mrf.mxu0 }
 0x1aa   :  { %v791_v24 = vpop.f32.mrf.mxu1  ;;  %829 = vst [vmem:[%s2132_s4 + $0x98] sm:$0xff] %v687_v49 }
 0x1ab   :  { %855 = vst [vmem:[%s2132_s4 + $0x168] sm:$0xff] %v791_v24  ;;  %v961_v9 = vpop.f32.mrf.mxu0 }
 0x1ac   :  { %v1013_v58 = vpop.f32.mrf.mxu1 }
 0x1ad   :  { %v692_v23 = vpop.f32.mrf.mxu0 }
 0x1ae   :  { %v796_v29 = vpop.f32.mrf.mxu1  ;;  %830 = vst [vmem:[%s2132_s4 + $0xa0] sm:$0xff] %v692_v23 }
 0x1af   :  { %856 = vst [vmem:[%s2132_s4 + $0x170] sm:$0xff] %v796_v29  ;;  %v964_v2 = vpop.f32.mrf.mxu0 }
 0x1b0   :  { %v1016_v53 = vpop.f32.mrf.mxu1 }
 0x1b1   :  { %v695_v4 = vpop.f32.mrf.mxu0 }
 0x1b2   :  { %v799_v47 = vpop.f32.mrf.mxu1  ;;  %831 = vst [vmem:[%s2132_s4 + $0xa8] sm:$0xff] %v695_v4 }
 0x1b3   :  { %857 = vst [vmem:[%s2132_s4 + $0x178] sm:$0xff] %v799_v47  ;;  %v965_v17 = vpop.f32.mrf.mxu0 }
 0x1b4   :  { %v1017_v55 = vpop.f32.mrf.mxu1 }
 0x1b5   :  { %v700_v32 = vpop.f32.mrf.mxu0 }
 0x1b6   :  { %v804_v5 = vpop.f32.mrf.mxu1  ;;  %832 = vst [vmem:[%s2132_s4 + $0xb0] sm:$0xff] %v700_v32 }
 0x1b7   :  { %858 = vst [vmem:[%s2132_s4 + $0x180] sm:$0xff] %v804_v5  ;;  %v968_v10 = vpop.f32.mrf.mxu0 }
 0x1b8   :  { %v1020_v43 = vpop.f32.mrf.mxu1 }
 0x1b9   :  { %v703_v46 = vpop.f32.mrf.mxu0 }
 0x1ba   :  { %v807_v34 = vpop.f32.mrf.mxu1  ;;  %833 = vst [vmem:[%s2132_s4 + $0xb8] sm:$0xff] %v703_v46 }
 0x1bb   :  { %v969_v62 = vpop.f32.mrf.mxu0 }
 0x1bc   :  { %v1021_v31 = vpop.f32.mrf.mxu1 }
 0x1bd   :  { %v708_v21 = vpop.f32.mrf.mxu0 }
 0x1be   :  { %834 = vst [vmem:[%s2132_s4 + $0xc0] sm:$0xff] %v708_v21 }
 0x1bf   :  { %v972_v40 = vpop.f32.mrf.mxu0 }
 0x1c1   :  { %v711_v27 = vpop.f32.mrf.mxu0 }
 0x1c2   :  { %835 = vst [vmem:[%s2132_s4 + $0xc8] sm:$0xff] %v711_v27 }
 0x1c3   :  { %v973_v3 = vpop.f32.mrf.mxu0 }

</bundles_post_ra>
